<compile_context>
chip_gen: v7x
topology: tpu7x:2x2x1
jax: 0.10.0
libtpu: 0.0.40
codegen_flags: <defaults>
</compile_context>

<pallas_src>
import functools

import jax
import jax.numpy as jnp
from jax import lax
from jax.experimental import pallas as pl
from jax.experimental.pallas import tpu as pltpu


_NEG_INF = -1e30
_VMEM_LIMIT = 32 * 1024 * 1024   # <= half of v7x's 64 MiB physical VMEM


def _round_up(x, m):
    return ((x + m - 1) // m) * m


def _cdiv(a, b):
    return (a + b - 1) // b


def _choose_block(dim, target, align):
    """Largest block <= target that is a multiple of `align` and divides `dim`
    (=> no padding, no output-slice copy).  Falls back to an aligned `target`
    (caller pads) only when no such divisor exists."""
    if dim <= target:
        return dim
    d = (target // align) * align
    while d >= align:
        if dim % d == 0:
            return d
        d -= align
    return max(align, (target // align) * align)


def _block_diag(*mats):
    rows = sum(m.shape[0] for m in mats)
    cols = sum(m.shape[1] for m in mats)
    out = jnp.zeros((rows, cols), mats[0].dtype)
    r = c = 0
    for m in mats:
        out = out.at[r:r + m.shape[0], c:c + m.shape[1]].set(m)
        r += m.shape[0]
        c += m.shape[1]
    return out


# ----------------------------------------------------------------------------
# Fused linear kernel:  o = x @ Wb  [+ (x @ Wa) @ Wbd]  [+ bias]
# (base projection + low-rank LoRA + bias in a single pallas_call)
# ----------------------------------------------------------------------------

def _linear_kernel(*refs, has_lora, has_bias):
    x_ref, wb_ref = refs[0], refs[1]
    i = 2
    if has_lora:
        wa_ref, wbd_ref = refs[i], refs[i + 1]
        i += 2
    if has_bias:
        b_ref = refs[i]
        i += 1
    o_ref = refs[i]

    x = x_ref[...]
    acc = jnp.dot(x, wb_ref[...], preferred_element_type=jnp.float32)
    if has_lora:
        lo = jnp.dot(x, wa_ref[...], preferred_element_type=jnp.float32)
        acc = acc + jnp.dot(lo.astype(wbd_ref.dtype), wbd_ref[...],
                            preferred_element_type=jnp.float32)
    if has_bias:
        acc = acc + b_ref[...].astype(jnp.float32)
    o_ref[...] = acc.astype(o_ref.dtype)


def fused_linear(x, wb, wa=None, wbd=None, bias=None, *, out_dtype=None,
                 block_m=512, block_n=1024):
    """o = x @ wb (+ (x @ wa) @ wbd) (+ bias).   x: (M, K) -> (M, N)."""
    M, K = x.shape
    N = wb.shape[1]
    has_lora = wa is not None
    has_bias = bias is not None
    out_dtype = x.dtype if out_dtype is None else out_dtype

    # blocks are aligned divisors of M / N when possible -> no pad / slice copy
    bm = _choose_block(M, block_m, 16)
    bn = _choose_block(N, block_n, 128)
    # v7x has 2 TensorCores sharded over the "parallel" grid axes: keep >= 2
    # grid steps when the shapes allow it (no-op on the large-shape fast path).
    if _cdiv(M, bm) * _cdiv(N, bn) < 2:
        if bn % 256 == 0:
            bn //= 2
        elif bm % 32 == 0:
            bm //= 2

    Mp, Np = _round_up(M, bm), _round_up(N, bn)
    if Mp != M:
        x = jnp.pad(x, ((0, Mp - M), (0, 0)))
    if Np != N:
        wb = jnp.pad(wb, ((0, 0), (0, Np - N)))
        if has_lora:
            wbd = jnp.pad(wbd, ((0, 0), (0, Np - N)))
        if has_bias:
            bias = jnp.pad(bias, (0, Np - N))

    in_specs = [
        pl.BlockSpec((bm, K), lambda i, j: (i, 0)),
        pl.BlockSpec((K, bn), lambda i, j: (0, j)),
    ]
    args = [x, wb]
    if has_lora:
        R = wa.shape[1]
        in_specs += [
            pl.BlockSpec((K, R), lambda i, j: (0, 0)),
            pl.BlockSpec((R, bn), lambda i, j: (0, j)),
        ]
        args += [wa, wbd]
    if has_bias:
        in_specs.append(pl.BlockSpec((1, bn), lambda i, j: (0, j)))
        args.append(bias.reshape(1, -1))

    out = pl.pallas_call(
        functools.partial(_linear_kernel, has_lora=has_lora, has_bias=has_bias),
        out_shape=jax.ShapeDtypeStruct((Mp, Np), out_dtype),
        grid=(Mp // bm, Np // bn),
        in_specs=in_specs,
        out_specs=pl.BlockSpec((bm, bn), lambda i, j: (i, j)),
        compiler_params=pltpu.CompilerParams(
            dimension_semantics=("parallel", "parallel"),
            vmem_limit_bytes=_VMEM_LIMIT,
        ),
    )(*args)
    if (Mp, Np) != (M, N):
        out = out[:M, :N]
    return out


# ----------------------------------------------------------------------------
# Flash-style attention kernel with the head split folded into the kernel.
# Grid: (batch, q-tiles, kv-tiles); kv axis is an online-softmax reduction.
# All heads of a (b, q-tile) are processed in one grid step using per-head
# lane slices of lane-dense (L, inner) tiles (good HBM DMA, dense out store).
# ----------------------------------------------------------------------------

def _flash_kernel(q_ref, k_ref, v_ref, o_ref, q_sc, m_sc, l_sc, acc_sc, *,
                  heads, dim_head, kv_len, block_kv):
    ki = pl.program_id(2)

    @pl.when(ki == 0)
    def _():
        m_sc[...] = jnp.full_like(m_sc, -jnp.inf)
        l_sc[...] = jnp.zeros_like(l_sc)
        acc_sc[...] = jnp.zeros_like(acc_sc)
        # head-split q once per q tile (softmax scale already folded into the
        # q projection weights, so no per-kv-step multiply is needed).
        q2 = q_ref[0]
        for h in range(heads):
            q_sc[h] = q2[:, h * dim_head:(h + 1) * dim_head]

    k2 = k_ref[0]          # (bkv, inner), bf16
    v2 = v_ref[0]          # (bkv, inner), bf16
    bkv = k2.shape[0]

    need_mask = (kv_len % block_kv) != 0   # divisor tiles normally avoid this
    if need_mask:
        kv_idx = lax.broadcasted_iota(jnp.int32, (1, bkv), 1) + ki * block_kv
        kv_valid = kv_idx < kv_len

    # p @ ones gives the softmax row-sums on the MXU (which is nearly idle at
    # K = dim_head) instead of an XLU cross-lane reduction.
    ones_col = jnp.ones((bkv, 1), dtype=k2.dtype)

    for h in range(heads):
        sl = slice(h * dim_head, (h + 1) * dim_head)
        kh, vh = k2[:, sl], v2[:, sl]
        qh = q_sc[h]

        # q @ k^T via dot_general (no explicit transpose materialization)
        s = lax.dot_general(qh, kh, (((1,), (1,)), ((), ())),
                            preferred_element_type=jnp.float32)   # (bq, bkv)
        if need_mask:
            s = jnp.where(kv_valid, s, _NEG_INF)

        m_prev = m_sc[h]
        m_new = jnp.maximum(m_prev, s.max(axis=-1, keepdims=True))
        alpha = jnp.exp(m_prev - m_new)
        p = jnp.exp(s - m_new)
        pb = p.astype(v2.dtype)            # bf16 MXU operand, f32 accumulation
        l_sc[h] = alpha * l_sc[h] + jnp.dot(pb, ones_col,
                                            preferred_element_type=jnp.float32)
        acc_sc[h] = alpha * acc_sc[h] + jnp.dot(pb, vh,
                                                preferred_element_type=jnp.float32)
        m_sc[h] = m_new

    @pl.when(ki == pl.num_programs(2) - 1)
    def _():
        outs = []
        for h in range(heads):
            inv = pl.reciprocal(l_sc[h], approx=True)   # EUP slot, frees VALU
            outs.append(acc_sc[h] * inv)
        # single lane-dense (bq, inner) store; heads re-merged in VMEM
        o_ref[0] = jnp.concatenate(outs, axis=-1).astype(o_ref.dtype)


def flash_attention(q, k, v, *, heads, dim_head, q_col=0, k_col=0, v_col=0,
                    block_q=512, block_kv=512):
    """q: (B, Lq, Cq) whose query channels live at column block q_col (block
    width inner = heads*dim_head); similarly k / v (they may all alias one
    fused qkv array).  Returns (B, Lq, inner) in q.dtype."""
    inner = heads * dim_head
    B, Lq, _ = q.shape
    _, Lk, _ = k.shape
    assert k.shape[1] == v.shape[1]

    bq = _choose_block(Lq, block_q, 16)
    bkv = _choose_block(Lk, block_kv, 16)
    # v7x: make sure both TensorCores get at least one parallel grid step.
    if B * _cdiv(Lq, bq) < 2 and bq % 32 == 0:
        bq //= 2

    Lq_p, Lk_p = _round_up(Lq, bq), _round_up(Lk, bkv)
    if Lq_p != Lq:
        q = jnp.pad(q, ((0, 0), (0, Lq_p - Lq), (0, 0)))
    if Lk_p != Lk:
        k = jnp.pad(k, ((0, 0), (0, Lk_p - Lk), (0, 0)))
        v = jnp.pad(v, ((0, 0), (0, Lk_p - Lk), (0, 0)))

    kernel = functools.partial(_flash_kernel, heads=heads, dim_head=dim_head,
                               kv_len=Lk, block_kv=bkv)

    out = pl.pallas_call(
        kernel,
        out_shape=jax.ShapeDtypeStruct((B, Lq_p, inner), q.dtype),
        grid=(B, Lq_p // bq, Lk_p // bkv),
        in_specs=[
            pl.BlockSpec((1, bq, inner), lambda b, qi, ki: (b, qi, q_col)),
            pl.BlockSpec((1, bkv, inner), lambda b, qi, ki: (b, ki, k_col)),
            pl.BlockSpec((1, bkv, inner), lambda b, qi, ki: (b, ki, v_col)),
        ],
        out_specs=pl.BlockSpec((1, bq, inner), lambda b, qi, ki: (b, qi, 0)),
        scratch_shapes=[
            pltpu.VMEM((heads, bq, dim_head), q.dtype),       # head-split q
            pltpu.VMEM((heads, bq, 1), jnp.float32),          # m
            pltpu.VMEM((heads, bq, 1), jnp.float32),          # l
            pltpu.VMEM((heads, bq, dim_head), jnp.float32),   # acc
        ],
        compiler_params=pltpu.CompilerParams(
            dimension_semantics=("parallel", "parallel", "arbitrary"),
            vmem_limit_bytes=_VMEM_LIMIT,
        ),
    )(q, k, v)
    if Lq_p != Lq:
        out = out[:, :Lq, :]
    return out


# ----------------------------------------------------------------------------
# Parameter construction (matches the module's __init__ shapes) + one-time prep
# ----------------------------------------------------------------------------

def init_params(key, query_dim, context_dim, heads, dim_head, low_rank=8,
                dtype=jnp.float32):
    inner_dim = heads * dim_head
    ks = jax.random.split(key, 9)

    def lin(k, fan_in, fan_out):
        return jax.random.normal(k, (fan_in, fan_out), dtype) * 0.1

    return {
        "wq": lin(ks[0], query_dim, inner_dim),
        "wk": lin(ks[1], context_dim, inner_dim),
        "wv": lin(ks[2], context_dim, inner_dim),
        # LoRA: down-projection random, up-projection zero-initialized
        "wq_lora_a": lin(ks[3], query_dim, low_rank),
        "wq_lora_b": jnp.zeros((low_rank, inner_dim), dtype),
        "wk_lora_a": lin(ks[4], context_dim, low_rank),
        "wk_lora_b": jnp.zeros((low_rank, inner_dim), dtype),
        "wv_lora_a": lin(ks[5], context_dim, low_rank),
        "wv_lora_b": jnp.zeros((low_rank, inner_dim), dtype),
        # to_out: Linear(inner, query_dim) with bias
        "wo": lin(ks[6], inner_dim, query_dim),
        "bo": jax.random.normal(ks[7], (query_dim,), dtype) * 0.1,
        # to_out_lora: Linear(inner, r, no bias) -> zeroed Linear(r, query_dim)
        "wo_lora_a": lin(ks[8], inner_dim, low_rank),
        "wo_lora_b": jnp.zeros((low_rank, query_dim), dtype),
        "bo_lora": jnp.zeros((query_dim,), dtype),
    }


def prepare_params(params, heads, dim_head, compute_dtype=jnp.bfloat16):
    """One-time parameter preparation (hoisted out of the per-call forward):
       - softmax scale folded into the q projection (base + LoRA-up) weights,
       - q/k/v base weights concatenated and LoRA-up weights block-diagonalized
         so QKV (+ LoRA) is one fused GEMM,
       - output-projection biases pre-summed,
       - everything cast to the bf16 compute dtype (kernels accumulate in f32)."""
    scale = dim_head ** (-0.5)
    cd = compute_dtype
    wq = params["wq"] * scale
    wq_lb = params["wq_lora_b"] * scale
    return {
        # fused self-attention QKV projection
        "qkv_wb": jnp.concatenate([wq, params["wk"], params["wv"]],
                                  axis=1).astype(cd),
        "qkv_wa": jnp.concatenate([params["wq_lora_a"], params["wk_lora_a"],
                                   params["wv_lora_a"]], axis=1).astype(cd),
        "qkv_wbd": _block_diag(wq_lb, params["wk_lora_b"],
                               params["wv_lora_b"]).astype(cd),
        # cross-attention variants (separate q, fused kv)
        "q_wb": wq.astype(cd),
        "q_wa": params["wq_lora_a"].astype(cd),
        "q_wbd": wq_lb.astype(cd),
        "kv_wb": jnp.concatenate([params["wk"], params["wv"]],
                                 axis=1).astype(cd),
        "kv_wa": jnp.concatenate([params["wk_lora_a"], params["wv_lora_a"]],
                                 axis=1).astype(cd),
        "kv_wbd": _block_diag(params["wk_lora_b"],
                              params["wv_lora_b"]).astype(cd),
        # output projection (base + LoRA fused; both biases pre-summed)
        "wo": params["wo"].astype(cd),
        "wo_lora_a": params["wo_lora_a"].astype(cd),
        "wo_lora_b": params["wo_lora_b"].astype(cd),
        "bo_total": (params["bo"] + params["bo_lora"]).astype(jnp.float32),
        # focus_present_mask_only ('v') path uses to_v / to_out WITHOUT LoRA
        "wv": params["wv"].astype(cd),
        "bo": params["bo"].astype(jnp.float32),
    }


# ----------------------------------------------------------------------------
# Forward pass
# ----------------------------------------------------------------------------

def cross_attention_temporal_3dv2(x, prep, *, heads, dim_head, context=None,
                                  focus_present_mask_only=False, mask_mode="v",
                                  compute_dtype=jnp.bfloat16):
    """x: (B, S, F, query_dim) -> (B, S, F, query_dim).  `prep` = prepare_params()."""
    b, s, f, qd = x.shape
    inner = heads * dim_head
    out_dtype = x.dtype

    ctx = x if context is None else context
    cb, cs, cf, cdim = ctx.shape

    x2 = x.reshape(b * s * f, qd).astype(compute_dtype)
    c2 = ctx.reshape(cb * cs * cf, cdim).astype(compute_dtype)

    if focus_present_mask_only:
        if mask_mode == "v":
            # PyTorch branch: res = to_v(context); return dropout(to_out(res))
            # -- deliberately no LoRA terms on this path (matches the module).
            res = fused_linear(c2, prep["wv"])
            out = fused_linear(res, prep["wo"], bias=prep["bo"],
                               out_dtype=out_dtype)
            return out.reshape(cb, cs, cf, qd)
        # TODO(synk): mask_mode == '2d' (per-frame xformers attention) not implemented.
        raise NotImplementedError(f"unknown mask mode {mask_mode}")

    if context is None:
        # one wide GEMM: [q|k|v] base weights + block-diagonal LoRA (scale folded)
        qkv = fused_linear(x2, prep["qkv_wb"], prep["qkv_wa"], prep["qkv_wbd"])
        qkv3 = qkv.reshape(b, s * f, 3 * inner)          # 'b s f c -> b (s f) c'
        if inner % 128 == 0:
            # zero-copy q/k/v + head split: attention kernel reads column blocks
            q_arr = k_arr = v_arr = qkv3
            q_col, k_col, v_col = 0, 1, 2
        else:
            q_arr = qkv3[..., :inner]
            k_arr = qkv3[..., inner:2 * inner]
            v_arr = qkv3[..., 2 * inner:]
            q_col = k_col = v_col = 0
    else:
        q_ = fused_linear(x2, prep["q_wb"], prep["q_wa"], prep["q_wbd"])
        kv = fused_linear(c2, prep["kv_wb"], prep["kv_wa"], prep["kv_wbd"])
        q_arr = q_.reshape(b, s * f, inner)
        kv3 = kv.reshape(cb, cs * cf, 2 * inner)
        q_col = 0
        if inner % 128 == 0:
            k_arr = v_arr = kv3
            k_col, v_col = 0, 1
        else:
            k_arr = kv3[..., :inner]
            v_arr = kv3[..., inner:]
            k_col = v_col = 0

    # TODO(synk): rotary_emb rotation path not implemented (module default is None).
    res = flash_attention(q_arr, k_arr, v_arr, heads=heads, dim_head=dim_head,
                          q_col=q_col, k_col=k_col, v_col=v_col)  # (b, s*f, inner)

    # fused output projection: to_out + to_out_lora + both biases in one kernel
    res2 = res.reshape(b * s * f, inner)
    out = fused_linear(res2, prep["wo"], prep["wo_lora_a"], prep["wo_lora_b"],
                       bias=prep["bo_total"], out_dtype=out_dtype)
    # dropout(p=0.0) is identity
    return out.reshape(b, s, f, qd)


# ----------------------------------------------------------------------------
# Pure-JAX f32 reference (self-attention path) for verification
# ----------------------------------------------------------------------------

def reference_forward(x, params, *, heads, dim_head):
    b, s, f, qd = x.shape
    inner = heads * dim_head
    scale = dim_head ** (-0.5)
    x2 = x.reshape(-1, qd)
    q = x2 @ params["wq"] + (x2 @ params["wq_lora_a"]) @ params["wq_lora_b"]
    k = x2 @ params["wk"] + (x2 @ params["wk_lora_a"]) @ params["wk_lora_b"]
    v = x2 @ params["wv"] + (x2 @ params["wv_lora_a"]) @ params["wv_lora_b"]

    def to_bh(t):
        t = t.reshape(b, s, f, heads, dim_head).transpose(0, 3, 1, 2, 4)
        return t.reshape(b * heads, s * f, dim_head)

    qh, kh, vh = to_bh(q), to_bh(k), to_bh(v)
    att = jax.nn.softmax(jnp.einsum("blc,bmc->blm", qh, kh) * scale, axis=-1)
    res = jnp.einsum("blm,bmc->blc", att, vh)
    res = res.reshape(b, heads, s, f, dim_head).transpose(0, 2, 3, 1, 4)
    res2 = res.reshape(-1, inner)
    out = res2 @ params["wo"] + params["bo"]
    out_lora = (res2 @ params["wo_lora_a"]) @ params["wo_lora_b"] + params["bo_lora"]
    return (out + out_lora).reshape(b, s, f, qd)


# ----------------------------------------------------------------------------
# Main
# ----------------------------------------------------------------------------

if __name__ == "__main__":
    # batch=2, spatial tokens s=8, frames f=4, query_dim=64,
    # heads=8, dim_head=32 -> inner_dim=256 (multiple of 128 -> zero-copy
    # head/qkv split path in the attention kernel is exercised).
    B, S, F, QD = 2, 8, 4, 64
    HEADS, DIM_HEAD = 8, 32

    key = jax.random.PRNGKey(0)
    kx, kp, kl = jax.random.split(key, 3)
    x = jax.random.normal(kx, (B, S, F, QD), jnp.float32)
    params = init_params(kp, QD, QD, HEADS, DIM_HEAD)

    # The module zero-initializes the LoRA up-projections; perturb them here so
    # the fused block-diagonal LoRA path is actually exercised by the check
    # (as it would be with trained weights).
    lks = jax.random.split(kl, 4)
    for i, name in enumerate(["wq_lora_b", "wk_lora_b", "wv_lora_b", "wo_lora_b"]):
        params[name] = 0.1 * jax.random.normal(lks[i], params[name].shape,
                                               jnp.float32)

    # one-time weight fusion / scale folding / bf16 cast (hoisted out of forward)
    prep = prepare_params(params, HEADS, DIM_HEAD)

    fwd = jax.jit(functools.partial(cross_attention_temporal_3dv2,
                                    heads=HEADS, dim_head=DIM_HEAD))
    out = jax.block_until_ready(fwd(x, prep))

    ref = reference_forward(x, params, heads=HEADS, dim_head=DIM_HEAD)
    assert out.shape == (B, S, F, QD)
    assert out.dtype == x.dtype
    # bf16 operands (f32 accumulation) + approx reciprocal -> loosened tolerance
    err = float(jnp.max(jnp.abs(out - ref)))
    assert jnp.allclose(out, ref, atol=4e-2, rtol=4e-2), \
        f"mismatch vs JAX reference (max abs err {err})"

    print("KERNEL_OK")
</pallas_src>

<mosaic_0001>
module attributes {stable_mosaic.version = 11 : i64} {
  func.func @_linear_kernel(%arg0: i32, %arg1: i32, %arg2: memref<64x64xbf16, #tpu.memory_space<vmem>>, %arg3: memref<64x384xbf16, #tpu.memory_space<vmem>>, %arg4: memref<64x24xbf16, #tpu.memory_space<vmem>>, %arg5: memref<24x384xbf16, #tpu.memory_space<vmem>>, %arg6: memref<64x384xbf16, #tpu.memory_space<vmem>>) attributes {dimension_semantics = [#tpu.dimension_semantics<parallel>, #tpu.dimension_semantics<parallel>], iteration_bounds = array<i64: 1, 2>, scalar_prefetch = 0 : i64, scratch_operands = 0 : i64, tpu.core_type = #tpu.core_type<tc>, window_params = [{transform_indices = @transform_0, window_bounds = array<i64: 64, 64>}, {transform_indices = @transform_1, window_bounds = array<i64: 64, 384>}, {pipeline_mode = #tpu.pipeline_mode<synchronous>, transform_indices = @transform_2, window_bounds = array<i64: 64, 24>}, {transform_indices = @transform_3, window_bounds = array<i64: 24, 384>}, {transform_indices = @transform_4, window_bounds = array<i64: 64, 384>}]} {
    %c0 = arith.constant 0 : index
    %c0_0 = arith.constant 0 : index
    %0 = vector.load %arg2[%c0, %c0_0] : memref<64x64xbf16, #tpu.memory_space<vmem>>, vector<64x64xbf16>
    %c0_1 = arith.constant 0 : index
    %c0_2 = arith.constant 0 : index
    %1 = vector.load %arg3[%c0_1, %c0_2] : memref<64x384xbf16, #tpu.memory_space<vmem>>, vector<64x384xbf16>
    %cst = arith.constant dense<0.000000e+00> : vector<64x384xf32>
    %2 = tpu.matmul %0, %1, %cst {dimension_numbers = #tpu.dot_dimension_numbers<[1], [0], [0], [1], [0, 0, 1, 1], [], []>} : vector<64x64xbf16>, vector<64x384xbf16>, vector<64x384xf32> -> vector<64x384xf32>
    %c0_3 = arith.constant 0 : index
    %c0_4 = arith.constant 0 : index
    %3 = vector.load %arg4[%c0_3, %c0_4] : memref<64x24xbf16, #tpu.memory_space<vmem>>, vector<64x24xbf16>
    %cst_5 = arith.constant dense<0.000000e+00> : vector<64x24xf32>
    %4 = tpu.matmul %0, %3, %cst_5 {dimension_numbers = #tpu.dot_dimension_numbers<[1], [0], [0], [1], [0, 0, 1, 1], [], []>} : vector<64x64xbf16>, vector<64x24xbf16>, vector<64x24xf32> -> vector<64x24xf32>
    %5 = arith.truncf %4 : vector<64x24xf32> to vector<64x24xbf16>
    %c0_6 = arith.constant 0 : index
    %c0_7 = arith.constant 0 : index
    %6 = vector.load %arg5[%c0_6, %c0_7] : memref<24x384xbf16, #tpu.memory_space<vmem>>, vector<24x384xbf16>
    %cst_8 = arith.constant dense<0.000000e+00> : vector<64x384xf32>
    %7 = tpu.matmul %5, %6, %cst_8 {dimension_numbers = #tpu.dot_dimension_numbers<[1], [0], [0], [1], [0, 0, 1, 1], [], []>} : vector<64x24xbf16>, vector<24x384xbf16>, vector<64x384xf32> -> vector<64x384xf32>
    %8 = arith.addf %2, %7 : vector<64x384xf32>
    %9 = arith.truncf %8 : vector<64x384xf32> to vector<64x384xbf16>
    %c0_9 = arith.constant 0 : index
    %c0_10 = arith.constant 0 : index
    %10 = vector.load %arg6[%c0_9, %c0_10] : memref<64x384xbf16, #tpu.memory_space<vmem>>, vector<64x384xbf16>
    tpu.vector_store %arg6[%c0_9, %c0_10], %9 {strides = array<i32>} : memref<64x384xbf16, #tpu.memory_space<vmem>>, vector<64x384xbf16>,
    return
  }
  func.func @transform_0(%arg0: i32, %arg1: i32) -> (i32, i32) {
    %c0_i32 = arith.constant 0 : i32
    %c0_i32_0 = arith.constant 0 : i32
    return %arg0, %c0_i32 : i32, i32
  }
  func.func @transform_1(%arg0: i32, %arg1: i32) -> (i32, i32) {
    %c0_i32 = arith.constant 0 : i32
    %c0_i32_0 = arith.constant 0 : i32
    return %c0_i32, %arg1 : i32, i32
  }
  func.func @transform_2(%arg0: i32, %arg1: i32) -> (i32, i32) {
    %c0_i32 = arith.constant 0 : i32
    %c0_i32_0 = arith.constant 0 : i32
    %c0_i32_1 = arith.constant 0 : i32
    return %c0_i32, %c0_i32_0 : i32, i32
  }
  func.func @transform_3(%arg0: i32, %arg1: i32) -> (i32, i32) {
    %c0_i32 = arith.constant 0 : i32
    %c0_i32_0 = arith.constant 0 : i32
    return %c0_i32, %arg1 : i32, i32
  }
  func.func @transform_4(%arg0: i32, %arg1: i32) -> (i32, i32) {
    %c0_i32 = arith.constant 0 : i32
    return %arg0, %arg1 : i32, i32
  }
}

module attributes {stable_mosaic.version = 11 : i64} {
  func.func @_flash_kernel(%arg0: i32, %arg1: i32, %arg2: i32, %arg3: memref<1x32x256xbf16, #tpu.memory_space<vmem>>, %arg4: memref<1x32x256xbf16, #tpu.memory_space<vmem>>, %arg5: memref<1x32x256xbf16, #tpu.memory_space<vmem>>, %arg6: memref<1x32x256xbf16, #tpu.memory_space<vmem>>, %arg7: memref<8x32x32xbf16, #tpu.memory_space<vmem>>, %arg8: memref<8x32x1xf32, #tpu.memory_space<vmem>>, %arg9: memref<8x32x1xf32, #tpu.memory_space<vmem>>, %arg10: memref<8x32x32xf32, #tpu.memory_space<vmem>>) attributes {dimension_semantics = [#tpu.dimension_semantics<parallel>, #tpu.dimension_semantics<parallel>, #tpu.dimension_semantics<arbitrary>], iteration_bounds = array<i64: 2, 1, 1>, scalar_prefetch = 0 : i64, scratch_operands = 4 : i64, tpu.core_type = #tpu.core_type<tc>, window_params = [{transform_indices = @transform_0, window_bounds = array<i64: 1, 32, 256>}, {transform_indices = @transform_1, window_bounds = array<i64: 1, 32, 256>}, {transform_indices = @transform_2, window_bounds = array<i64: 1, 32, 256>}, {transform_indices = @transform_3, window_bounds = array<i64: 1, 32, 256>}]} {
    %c0_i32 = arith.constant 0 : i32
    %0 = arith.cmpi eq, %arg2, %c0_i32 : i32
    %1 = arith.extui %0 : i1 to i32
    %c0_i32_0 = arith.constant 0 : i32
    %2 = arith.cmpi ne, %1, %c0_i32_0 : i32
    scf.if %2 {
      %cst_201 = arith.constant 0xFF800000 : f32
      %299 = vector.broadcast %cst_201 : f32 to vector<8x32x1xf32>
      %c0_202 = arith.constant 0 : index
      %c0_203 = arith.constant 0 : index
      %c0_204 = arith.constant 0 : index
      %300 = vector.load %arg8[%c0_202, %c0_203, %c0_204] : memref<8x32x1xf32, #tpu.memory_space<vmem>>, vector<8x32x1xf32>
      tpu.vector_store %arg8[%c0_202, %c0_203, %c0_204], %299 {strides = array<i32>} : memref<8x32x1xf32, #tpu.memory_space<vmem>>, vector<8x32x1xf32>,
      %cst_205 = arith.constant 0.000000e+00 : f32
      %301 = vector.broadcast %cst_205 : f32 to vector<8x32x1xf32>
      %c0_206 = arith.constant 0 : index
      %c0_207 = arith.constant 0 : index
      %c0_208 = arith.constant 0 : index
      %302 = vector.load %arg9[%c0_206, %c0_207, %c0_208] : memref<8x32x1xf32, #tpu.memory_space<vmem>>, vector<8x32x1xf32>
      tpu.vector_store %arg9[%c0_206, %c0_207, %c0_208], %301 {strides = array<i32>} : memref<8x32x1xf32, #tpu.memory_space<vmem>>, vector<8x32x1xf32>,
      %cst_209 = arith.constant 0.000000e+00 : f32
      %303 = vector.broadcast %cst_209 : f32 to vector<8x32x32xf32>
      %c0_210 = arith.constant 0 : index
      %c0_211 = arith.constant 0 : index
      %c0_212 = arith.constant 0 : index
      %304 = vector.load %arg10[%c0_210, %c0_211, %c0_212] : memref<8x32x32xf32, #tpu.memory_space<vmem>>, vector<8x32x32xf32>
      tpu.vector_store %arg10[%c0_210, %c0_211, %c0_212], %303 {strides = array<i32>} : memref<8x32x32xf32, #tpu.memory_space<vmem>>, vector<8x32x32xf32>,
      %c0_213 = arith.constant 0 : index
      %c0_214 = arith.constant 0 : index
      %c0_215 = arith.constant 0 : index
      %305 = vector.load %arg3[%c0_213, %c0_214, %c0_215] : memref<1x32x256xbf16, #tpu.memory_space<vmem>>, vector<1x32x256xbf16>
      %306 = vector.shape_cast %305 : vector<1x32x256xbf16> to vector<32x256xbf16>
      %307 = vector.extract_strided_slice %306 {offsets = [0, 0], sizes = [32, 32], strides = [1, 1]} : vector<32x256xbf16> to vector<32x32xbf16>
      %c0_216 = arith.constant 0 : index
      %c0_217 = arith.constant 0 : index
      %c0_218 = arith.constant 0 : index
      %308 = vector.load %arg7[%c0_216, %c0_217, %c0_218] : memref<8x32x32xbf16, #tpu.memory_space<vmem>>, vector<1x32x32xbf16>
      %309 = vector.shape_cast %308 : vector<1x32x32xbf16> to vector<32x32xbf16>
      %310 = vector.shape_cast %307 : vector<32x32xbf16> to vector<1x32x32xbf16>
      tpu.vector_store %arg7[%c0_216, %c0_217, %c0_218], %310 {strides = array<i32>} : memref<8x32x32xbf16, #tpu.memory_space<vmem>>, vector<1x32x32xbf16>,
      %311 = vector.extract_strided_slice %306 {offsets = [0, 32], sizes = [32, 32], strides = [1, 1]} : vector<32x256xbf16> to vector<32x32xbf16>
      %c1_219 = arith.constant 1 : index
      %c0_220 = arith.constant 0 : index
      %c0_221 = arith.constant 0 : index
      %312 = vector.load %arg7[%c1_219, %c0_220, %c0_221] : memref<8x32x32xbf16, #tpu.memory_space<vmem>>, vector<1x32x32xbf16>
      %313 = vector.shape_cast %312 : vector<1x32x32xbf16> to vector<32x32xbf16>
      %314 = vector.shape_cast %311 : vector<32x32xbf16> to vector<1x32x32xbf16>
      tpu.vector_store %arg7[%c1_219, %c0_220, %c0_221], %314 {strides = array<i32>} : memref<8x32x32xbf16, #tpu.memory_space<vmem>>, vector<1x32x32xbf16>,
      %315 = vector.extract_strided_slice %306 {offsets = [0, 64], sizes = [32, 32], strides = [1, 1]} : vector<32x256xbf16> to vector<32x32xbf16>
      %c2_222 = arith.constant 2 : index
      %c0_223 = arith.constant 0 : index
      %c0_224 = arith.constant 0 : index
      %316 = vector.load %arg7[%c2_222, %c0_223, %c0_224] : memref<8x32x32xbf16, #tpu.memory_space<vmem>>, vector<1x32x32xbf16>
      %317 = vector.shape_cast %316 : vector<1x32x32xbf16> to vector<32x32xbf16>
      %318 = vector.shape_cast %315 : vector<32x32xbf16> to vector<1x32x32xbf16>
      tpu.vector_store %arg7[%c2_222, %c0_223, %c0_224], %318 {strides = array<i32>} : memref<8x32x32xbf16, #tpu.memory_space<vmem>>, vector<1x32x32xbf16>,
      %319 = vector.extract_strided_slice %306 {offsets = [0, 96], sizes = [32, 32], strides = [1, 1]} : vector<32x256xbf16> to vector<32x32xbf16>
      %c3_225 = arith.constant 3 : index
      %c0_226 = arith.constant 0 : index
      %c0_227 = arith.constant 0 : index
      %320 = vector.load %arg7[%c3_225, %c0_226, %c0_227] : memref<8x32x32xbf16, #tpu.memory_space<vmem>>, vector<1x32x32xbf16>
      %321 = vector.shape_cast %320 : vector<1x32x32xbf16> to vector<32x32xbf16>
      %322 = vector.shape_cast %319 : vector<32x32xbf16> to vector<1x32x32xbf16>
      tpu.vector_store %arg7[%c3_225, %c0_226, %c0_227], %322 {strides = array<i32>} : memref<8x32x32xbf16, #tpu.memory_space<vmem>>, vector<1x32x32xbf16>,
      %323 = vector.extract_strided_slice %306 {offsets = [0, 128], sizes = [32, 32], strides = [1, 1]} : vector<32x256xbf16> to vector<32x32xbf16>
      %c4_228 = arith.constant 4 : index
      %c0_229 = arith.constant 0 : index
      %c0_230 = arith.constant 0 : index
      %324 = vector.load %arg7[%c4_228, %c0_229, %c0_230] : memref<8x32x32xbf16, #tpu.memory_space<vmem>>, vector<1x32x32xbf16>
      %325 = vector.shape_cast %324 : vector<1x32x32xbf16> to vector<32x32xbf16>
      %326 = vector.shape_cast %323 : vector<32x32xbf16> to vector<1x32x32xbf16>
      tpu.vector_store %arg7[%c4_228, %c0_229, %c0_230], %326 {strides = array<i32>} : memref<8x32x32xbf16, #tpu.memory_space<vmem>>, vector<1x32x32xbf16>,
      %327 = vector.extract_strided_slice %306 {offsets = [0, 160], sizes = [32, 32], strides = [1, 1]} : vector<32x256xbf16> to vector<32x32xbf16>
      %c5_231 = arith.constant 5 : index
      %c0_232 = arith.constant 0 : index
      %c0_233 = arith.constant 0 : index
      %328 = vector.load %arg7[%c5_231, %c0_232, %c0_233] : memref<8x32x32xbf16, #tpu.memory_space<vmem>>, vector<1x32x32xbf16>
      %329 = vector.shape_cast %328 : vector<1x32x32xbf16> to vector<32x32xbf16>
      %330 = vector.shape_cast %327 : vector<32x32xbf16> to vector<1x32x32xbf16>
      tpu.vector_store %arg7[%c5_231, %c0_232, %c0_233], %330 {strides = array<i32>} : memref<8x32x32xbf16, #tpu.memory_space<vmem>>, vector<1x32x32xbf16>,
      %331 = vector.extract_strided_slice %306 {offsets = [0, 192], sizes = [32, 32], strides = [1, 1]} : vector<32x256xbf16> to vector<32x32xbf16>
      %c6_234 = arith.constant 6 : index
      %c0_235 = arith.constant 0 : index
      %c0_236 = arith.constant 0 : index
      %332 = vector.load %arg7[%c6_234, %c0_235, %c0_236] : memref<8x32x32xbf16, #tpu.memory_space<vmem>>, vector<1x32x32xbf16>
      %333 = vector.shape_cast %332 : vector<1x32x32xbf16> to vector<32x32xbf16>
      %334 = vector.shape_cast %331 : vector<32x32xbf16> to vector<1x32x32xbf16>
      tpu.vector_store %arg7[%c6_234, %c0_235, %c0_236], %334 {strides = array<i32>} : memref<8x32x32xbf16, #tpu.memory_space<vmem>>, vector<1x32x32xbf16>,
      %335 = vector.extract_strided_slice %306 {offsets = [0, 224], sizes = [32, 32], strides = [1, 1]} : vector<32x256xbf16> to vector<32x32xbf16>
      %c7_237 = arith.constant 7 : index
      %c0_238 = arith.constant 0 : index
      %c0_239 = arith.constant 0 : index
      %336 = vector.load %arg7[%c7_237, %c0_238, %c0_239] : memref<8x32x32xbf16, #tpu.memory_space<vmem>>, vector<1x32x32xbf16>
      %337 = vector.shape_cast %336 : vector<1x32x32xbf16> to vector<32x32xbf16>
      %338 = vector.shape_cast %335 : vector<32x32xbf16> to vector<1x32x32xbf16>
      tpu.vector_store %arg7[%c7_237, %c0_238, %c0_239], %338 {strides = array<i32>} : memref<8x32x32xbf16, #tpu.memory_space<vmem>>, vector<1x32x32xbf16>,
    } else {
    }
    %c0 = arith.constant 0 : index
    %c0_1 = arith.constant 0 : index
    %c0_2 = arith.constant 0 : index
    %3 = vector.load %arg4[%c0, %c0_1, %c0_2] : memref<1x32x256xbf16, #tpu.memory_space<vmem>>, vector<1x32x256xbf16>
    %4 = vector.shape_cast %3 : vector<1x32x256xbf16> to vector<32x256xbf16>
    %c0_3 = arith.constant 0 : index
    %c0_4 = arith.constant 0 : index
    %c0_5 = arith.constant 0 : index
    %5 = vector.load %arg5[%c0_3, %c0_4, %c0_5] : memref<1x32x256xbf16, #tpu.memory_space<vmem>>, vector<1x32x256xbf16>
    %6 = vector.shape_cast %5 : vector<1x32x256xbf16> to vector<32x256xbf16>
    %cst = arith.constant 1.000000e+00 : bf16
    %7 = vector.broadcast %cst : bf16 to vector<32x1xbf16>
    %8 = vector.extract_strided_slice %4 {offsets = [0, 0], sizes = [32, 32], strides = [1, 1]} : vector<32x256xbf16> to vector<32x32xbf16>
    %9 = vector.extract_strided_slice %6 {offsets = [0, 0], sizes = [32, 32], strides = [1, 1]} : vector<32x256xbf16> to vector<32x32xbf16>
    %c0_6 = arith.constant 0 : index
    %c0_7 = arith.constant 0 : index
    %c0_8 = arith.constant 0 : index
    %10 = vector.load %arg7[%c0_6, %c0_7, %c0_8] : memref<8x32x32xbf16, #tpu.memory_space<vmem>>, vector<1x32x32xbf16>
    %11 = vector.shape_cast %10 : vector<1x32x32xbf16> to vector<32x32xbf16>
    %cst_9 = arith.constant dense<0.000000e+00> : vector<32x32xf32>
    %12 = tpu.matmul %11, %8, %cst_9 {dimension_numbers = #tpu.dot_dimension_numbers<[1], [1], [0], [0], [0, 0, 1, 0], [], []>} : vector<32x32xbf16>, vector<32x32xbf16>, vector<32x32xf32> -> vector<32x32xf32>
    %c0_10 = arith.constant 0 : index
    %c0_11 = arith.constant 0 : index
    %c0_12 = arith.constant 0 : index
    %13 = vector.load %arg8[%c0_10, %c0_11, %c0_12] : memref<8x32x1xf32, #tpu.memory_space<vmem>>, vector<1x32x1xf32>
    %14 = vector.shape_cast %13 : vector<1x32x1xf32> to vector<32x1xf32>
    %cst_13 = arith.constant dense<0xFF800000> : vector<32xf32>
    %15 = vector.multi_reduction <maximumf>, %12, %cst_13 [1] : vector<32x32xf32> to vector<32xf32>
    %16 = vector.shape_cast %15 : vector<32xf32> to vector<32x1xf32>
    %17 = arith.maximumf %14, %16 : vector<32x1xf32>
    %18 = arith.subf %14, %17 : vector<32x1xf32>
    %19 = math.exp %18 : vector<32x1xf32>
    %20 = vector.broadcast %17 : vector<32x1xf32> to vector<32x32xf32>
    %21 = arith.subf %12, %20 : vector<32x32xf32>
    %22 = math.exp %21 : vector<32x32xf32>
    %23 = arith.truncf %22 : vector<32x32xf32> to vector<32x32xbf16>
    %c0_14 = arith.constant 0 : index
    %c0_15 = arith.constant 0 : index
    %c0_16 = arith.constant 0 : index
    %24 = vector.load %arg9[%c0_14, %c0_15, %c0_16] : memref<8x32x1xf32, #tpu.memory_space<vmem>>, vector<1x32x1xf32>
    %25 = vector.shape_cast %24 : vector<1x32x1xf32> to vector<32x1xf32>
    %26 = arith.mulf %19, %25 : vector<32x1xf32>
    %cst_17 = arith.constant dense<0.000000e+00> : vector<32x1xf32>
    %27 = tpu.matmul %23, %7, %cst_17 {dimension_numbers = #tpu.dot_dimension_numbers<[1], [0], [0], [1], [0, 0, 1, 1], [], []>} : vector<32x32xbf16>, vector<32x1xbf16>, vector<32x1xf32> -> vector<32x1xf32>
    %28 = arith.addf %26, %27 : vector<32x1xf32>
    %c0_18 = arith.constant 0 : index
    %c0_19 = arith.constant 0 : index
    %c0_20 = arith.constant 0 : index
    %29 = vector.load %arg9[%c0_18, %c0_19, %c0_20] : memref<8x32x1xf32, #tpu.memory_space<vmem>>, vector<1x32x1xf32>
    %30 = vector.shape_cast %29 : vector<1x32x1xf32> to vector<32x1xf32>
    %31 = vector.shape_cast %28 : vector<32x1xf32> to vector<1x32x1xf32>
    tpu.vector_store %arg9[%c0_18, %c0_19, %c0_20], %31 {strides = array<i32>} : memref<8x32x1xf32, #tpu.memory_space<vmem>>, vector<1x32x1xf32>,
    %c0_21 = arith.constant 0 : index
    %c0_22 = arith.constant 0 : index
    %c0_23 = arith.constant 0 : index
    %32 = vector.load %arg10[%c0_21, %c0_22, %c0_23] : memref<8x32x32xf32, #tpu.memory_space<vmem>>, vector<1x32x32xf32>
    %33 = vector.shape_cast %32 : vector<1x32x32xf32> to vector<32x32xf32>
    %34 = vector.broadcast %19 : vector<32x1xf32> to vector<32x32xf32>
    %35 = arith.mulf %34, %33 : vector<32x32xf32>
    %cst_24 = arith.constant dense<0.000000e+00> : vector<32x32xf32>
    %36 = tpu.matmul %23, %9, %cst_24 {dimension_numbers = #tpu.dot_dimension_numbers<[1], [0], [0], [1], [0, 0, 1, 1], [], []>} : vector<32x32xbf16>, vector<32x32xbf16>, vector<32x32xf32> -> vector<32x32xf32>
    %37 = arith.addf %35, %36 : vector<32x32xf32>
    %c0_25 = arith.constant 0 : index
    %c0_26 = arith.constant 0 : index
    %c0_27 = arith.constant 0 : index
    %38 = vector.load %arg10[%c0_25, %c0_26, %c0_27] : memref<8x32x32xf32, #tpu.memory_space<vmem>>, vector<1x32x32xf32>
    %39 = vector.shape_cast %38 : vector<1x32x32xf32> to vector<32x32xf32>
    %40 = vector.shape_cast %37 : vector<32x32xf32> to vector<1x32x32xf32>
    tpu.vector_store %arg10[%c0_25, %c0_26, %c0_27], %40 {strides = array<i32>} : memref<8x32x32xf32, #tpu.memory_space<vmem>>, vector<1x32x32xf32>,
    %c0_28 = arith.constant 0 : index
    %c0_29 = arith.constant 0 : index
    %c0_30 = arith.constant 0 : index
    %41 = vector.load %arg8[%c0_28, %c0_29, %c0_30] : memref<8x32x1xf32, #tpu.memory_space<vmem>>, vector<1x32x1xf32>
    %42 = vector.shape_cast %41 : vector<1x32x1xf32> to vector<32x1xf32>
    %43 = vector.shape_cast %17 : vector<32x1xf32> to vector<1x32x1xf32>
    tpu.vector_store %arg8[%c0_28, %c0_29, %c0_30], %43 {strides = array<i32>} : memref<8x32x1xf32, #tpu.memory_space<vmem>>, vector<1x32x1xf32>,
    %44 = vector.extract_strided_slice %4 {offsets = [0, 32], sizes = [32, 32], strides = [1, 1]} : vector<32x256xbf16> to vector<32x32xbf16>
    %45 = vector.extract_strided_slice %6 {offsets = [0, 32], sizes = [32, 32], strides = [1, 1]} : vector<32x256xbf16> to vector<32x32xbf16>
    %c1 = arith.constant 1 : index
    %c0_31 = arith.constant 0 : index
    %c0_32 = arith.constant 0 : index
    %46 = vector.load %arg7[%c1, %c0_31, %c0_32] : memref<8x32x32xbf16, #tpu.memory_space<vmem>>, vector<1x32x32xbf16>
    %47 = vector.shape_cast %46 : vector<1x32x32xbf16> to vector<32x32xbf16>
    %cst_33 = arith.constant dense<0.000000e+00> : vector<32x32xf32>
    %48 = tpu.matmul %47, %44, %cst_33 {dimension_numbers = #tpu.dot_dimension_numbers<[1], [1], [0], [0], [0, 0, 1, 0], [], []>} : vector<32x32xbf16>, vector<32x32xbf16>, vector<32x32xf32> -> vector<32x32xf32>
    %c1_34 = arith.constant 1 : index
    %c0_35 = arith.constant 0 : index
    %c0_36 = arith.constant 0 : index
    %49 = vector.load %arg8[%c1_34, %c0_35, %c0_36] : memref<8x32x1xf32, #tpu.memory_space<vmem>>, vector<1x32x1xf32>
    %50 = vector.shape_cast %49 : vector<1x32x1xf32> to vector<32x1xf32>
    %cst_37 = arith.constant dense<0xFF800000> : vector<32xf32>
    %51 = vector.multi_reduction <maximumf>, %48, %cst_37 [1] : vector<32x32xf32> to vector<32xf32>
    %52 = vector.shape_cast %51 : vector<32xf32> to vector<32x1xf32>
    %53 = arith.maximumf %50, %52 : vector<32x1xf32>
    %54 = arith.subf %50, %53 : vector<32x1xf32>
    %55 = math.exp %54 : vector<32x1xf32>
    %56 = vector.broadcast %53 : vector<32x1xf32> to vector<32x32xf32>
    %57 = arith.subf %48, %56 : vector<32x32xf32>
    %58 = math.exp %57 : vector<32x32xf32>
    %59 = arith.truncf %58 : vector<32x32xf32> to vector<32x32xbf16>
    %c1_38 = arith.constant 1 : index
    %c0_39 = arith.constant 0 : index
    %c0_40 = arith.constant 0 : index
    %60 = vector.load %arg9[%c1_38, %c0_39, %c0_40] : memref<8x32x1xf32, #tpu.memory_space<vmem>>, vector<1x32x1xf32>
    %61 = vector.shape_cast %60 : vector<1x32x1xf32> to vector<32x1xf32>
    %62 = arith.mulf %55, %61 : vector<32x1xf32>
    %cst_41 = arith.constant dense<0.000000e+00> : vector<32x1xf32>
    %63 = tpu.matmul %59, %7, %cst_41 {dimension_numbers = #tpu.dot_dimension_numbers<[1], [0], [0], [1], [0, 0, 1, 1], [], []>} : vector<32x32xbf16>, vector<32x1xbf16>, vector<32x1xf32> -> vector<32x1xf32>
    %64 = arith.addf %62, %63 : vector<32x1xf32>
    %c1_42 = arith.constant 1 : index
    %c0_43 = arith.constant 0 : index
    %c0_44 = arith.constant 0 : index
    %65 = vector.load %arg9[%c1_42, %c0_43, %c0_44] : memref<8x32x1xf32, #tpu.memory_space<vmem>>, vector<1x32x1xf32>
    %66 = vector.shape_cast %65 : vector<1x32x1xf32> to vector<32x1xf32>
    %67 = vector.shape_cast %64 : vector<32x1xf32> to vector<1x32x1xf32>
    tpu.vector_store %arg9[%c1_42, %c0_43, %c0_44], %67 {strides = array<i32>} : memref<8x32x1xf32, #tpu.memory_space<vmem>>, vector<1x32x1xf32>,
    %c1_45 = arith.constant 1 : index
    %c0_46 = arith.constant 0 : index
    %c0_47 = arith.constant 0 : index
    %68 = vector.load %arg10[%c1_45, %c0_46, %c0_47] : memref<8x32x32xf32, #tpu.memory_space<vmem>>, vector<1x32x32xf32>
    %69 = vector.shape_cast %68 : vector<1x32x32xf32> to vector<32x32xf32>
    %70 = vector.broadcast %55 : vector<32x1xf32> to vector<32x32xf32>
    %71 = arith.mulf %70, %69 : vector<32x32xf32>
    %cst_48 = arith.constant dense<0.000000e+00> : vector<32x32xf32>
    %72 = tpu.matmul %59, %45, %cst_48 {dimension_numbers = #tpu.dot_dimension_numbers<[1], [0], [0], [1], [0, 0, 1, 1], [], []>} : vector<32x32xbf16>, vector<32x32xbf16>, vector<32x32xf32> -> vector<32x32xf32>
    %73 = arith.addf %71, %72 : vector<32x32xf32>
    %c1_49 = arith.constant 1 : index
    %c0_50 = arith.constant 0 : index
    %c0_51 = arith.constant 0 : index
    %74 = vector.load %arg10[%c1_49, %c0_50, %c0_51] : memref<8x32x32xf32, #tpu.memory_space<vmem>>, vector<1x32x32xf32>
    %75 = vector.shape_cast %74 : vector<1x32x32xf32> to vector<32x32xf32>
    %76 = vector.shape_cast %73 : vector<32x32xf32> to vector<1x32x32xf32>
    tpu.vector_store %arg10[%c1_49, %c0_50, %c0_51], %76 {strides = array<i32>} : memref<8x32x32xf32, #tpu.memory_space<vmem>>, vector<1x32x32xf32>,
    %c1_52 = arith.constant 1 : index
    %c0_53 = arith.constant 0 : index
    %c0_54 = arith.constant 0 : index
    %77 = vector.load %arg8[%c1_52, %c0_53, %c0_54] : memref<8x32x1xf32, #tpu.memory_space<vmem>>, vector<1x32x1xf32>
    %78 = vector.shape_cast %77 : vector<1x32x1xf32> to vector<32x1xf32>
    %79 = vector.shape_cast %53 : vector<32x1xf32> to vector<1x32x1xf32>
    tpu.vector_store %arg8[%c1_52, %c0_53, %c0_54], %79 {strides = array<i32>} : memref<8x32x1xf32, #tpu.memory_space<vmem>>, vector<1x32x1xf32>,
    %80 = vector.extract_strided_slice %4 {offsets = [0, 64], sizes = [32, 32], strides = [1, 1]} : vector<32x256xbf16> to vector<32x32xbf16>
    %81 = vector.extract_strided_slice %6 {offsets = [0, 64], sizes = [32, 32], strides = [1, 1]} : vector<32x256xbf16> to vector<32x32xbf16>
    %c2 = arith.constant 2 : index
    %c0_55 = arith.constant 0 : index
    %c0_56 = arith.constant 0 : index
    %82 = vector.load %arg7[%c2, %c0_55, %c0_56] : memref<8x32x32xbf16, #tpu.memory_space<vmem>>, vector<1x32x32xbf16>
    %83 = vector.shape_cast %82 : vector<1x32x32xbf16> to vector<32x32xbf16>
    %cst_57 = arith.constant dense<0.000000e+00> : vector<32x32xf32>
    %84 = tpu.matmul %83, %80, %cst_57 {dimension_numbers = #tpu.dot_dimension_numbers<[1], [1], [0], [0], [0, 0, 1, 0], [], []>} : vector<32x32xbf16>, vector<32x32xbf16>, vector<32x32xf32> -> vector<32x32xf32>
    %c2_58 = arith.constant 2 : index
    %c0_59 = arith.constant 0 : index
    %c0_60 = arith.constant 0 : index
    %85 = vector.load %arg8[%c2_58, %c0_59, %c0_60] : memref<8x32x1xf32, #tpu.memory_space<vmem>>, vector<1x32x1xf32>
    %86 = vector.shape_cast %85 : vector<1x32x1xf32> to vector<32x1xf32>
    %cst_61 = arith.constant dense<0xFF800000> : vector<32xf32>
    %87 = vector.multi_reduction <maximumf>, %84, %cst_61 [1] : vector<32x32xf32> to vector<32xf32>
    %88 = vector.shape_cast %87 : vector<32xf32> to vector<32x1xf32>
    %89 = arith.maximumf %86, %88 : vector<32x1xf32>
    %90 = arith.subf %86, %89 : vector<32x1xf32>
    %91 = math.exp %90 : vector<32x1xf32>
    %92 = vector.broadcast %89 : vector<32x1xf32> to vector<32x32xf32>
    %93 = arith.subf %84, %92 : vector<32x32xf32>
    %94 = math.exp %93 : vector<32x32xf32>
    %95 = arith.truncf %94 : vector<32x32xf32> to vector<32x32xbf16>
    %c2_62 = arith.constant 2 : index
    %c0_63 = arith.constant 0 : index
    %c0_64 = arith.constant 0 : index
    %96 = vector.load %arg9[%c2_62, %c0_63, %c0_64] : memref<8x32x1xf32, #tpu.memory_space<vmem>>, vector<1x32x1xf32>
    %97 = vector.shape_cast %96 : vector<1x32x1xf32> to vector<32x1xf32>
    %98 = arith.mulf %91, %97 : vector<32x1xf32>
    %cst_65 = arith.constant dense<0.000000e+00> : vector<32x1xf32>
    %99 = tpu.matmul %95, %7, %cst_65 {dimension_numbers = #tpu.dot_dimension_numbers<[1], [0], [0], [1], [0, 0, 1, 1], [], []>} : vector<32x32xbf16>, vector<32x1xbf16>, vector<32x1xf32> -> vector<32x1xf32>
    %100 = arith.addf %98, %99 : vector<32x1xf32>
    %c2_66 = arith.constant 2 : index
    %c0_67 = arith.constant 0 : index
    %c0_68 = arith.constant 0 : index
    %101 = vector.load %arg9[%c2_66, %c0_67, %c0_68] : memref<8x32x1xf32, #tpu.memory_space<vmem>>, vector<1x32x1xf32>
    %102 = vector.shape_cast %101 : vector<1x32x1xf32> to vector<32x1xf32>
    %103 = vector.shape_cast %100 : vector<32x1xf32> to vector<1x32x1xf32>
    tpu.vector_store %arg9[%c2_66, %c0_67, %c0_68], %103 {strides = array<i32>} : memref<8x32x1xf32, #tpu.memory_space<vmem>>, vector<1x32x1xf32>,
    %c2_69 = arith.constant 2 : index
    %c0_70 = arith.constant 0 : index
    %c0_71 = arith.constant 0 : index
    %104 = vector.load %arg10[%c2_69, %c0_70, %c0_71] : memref<8x32x32xf32, #tpu.memory_space<vmem>>, vector<1x32x32xf32>
    %105 = vector.shape_cast %104 : vector<1x32x32xf32> to vector<32x32xf32>
    %106 = vector.broadcast %91 : vector<32x1xf32> to vector<32x32xf32>
    %107 = arith.mulf %106, %105 : vector<32x32xf32>
    %cst_72 = arith.constant dense<0.000000e+00> : vector<32x32xf32>
    %108 = tpu.matmul %95, %81, %cst_72 {dimension_numbers = #tpu.dot_dimension_numbers<[1], [0], [0], [1], [0, 0, 1, 1], [], []>} : vector<32x32xbf16>, vector<32x32xbf16>, vector<32x32xf32> -> vector<32x32xf32>
    %109 = arith.addf %107, %108 : vector<32x32xf32>
    %c2_73 = arith.constant 2 : index
    %c0_74 = arith.constant 0 : index
    %c0_75 = arith.constant 0 : index
    %110 = vector.load %arg10[%c2_73, %c0_74, %c0_75] : memref<8x32x32xf32, #tpu.memory_space<vmem>>, vector<1x32x32xf32>
    %111 = vector.shape_cast %110 : vector<1x32x32xf32> to vector<32x32xf32>
    %112 = vector.shape_cast %109 : vector<32x32xf32> to vector<1x32x32xf32>
    tpu.vector_store %arg10[%c2_73, %c0_74, %c0_75], %112 {strides = array<i32>} : memref<8x32x32xf32, #tpu.memory_space<vmem>>, vector<1x32x32xf32>,
    %c2_76 = arith.constant 2 : index
    %c0_77 = arith.constant 0 : index
    %c0_78 = arith.constant 0 : index
    %113 = vector.load %arg8[%c2_76, %c0_77, %c0_78] : memref<8x32x1xf32, #tpu.memory_space<vmem>>, vector<1x32x1xf32>
    %114 = vector.shape_cast %113 : vector<1x32x1xf32> to vector<32x1xf32>
    %115 = vector.shape_cast %89 : vector<32x1xf32> to vector<1x32x1xf32>
    tpu.vector_store %arg8[%c2_76, %c0_77, %c0_78], %115 {strides = array<i32>} : memref<8x32x1xf32, #tpu.memory_space<vmem>>, vector<1x32x1xf32>,
    %116 = vector.extract_strided_slice %4 {offsets = [0, 96], sizes = [32, 32], strides = [1, 1]} : vector<32x256xbf16> to vector<32x32xbf16>
    %117 = vector.extract_strided_slice %6 {offsets = [0, 96], sizes = [32, 32], strides = [1, 1]} : vector<32x256xbf16> to vector<32x32xbf16>
    %c3 = arith.constant 3 : index
    %c0_79 = arith.constant 0 : index
    %c0_80 = arith.constant 0 : index
    %118 = vector.load %arg7[%c3, %c0_79, %c0_80] : memref<8x32x32xbf16, #tpu.memory_space<vmem>>, vector<1x32x32xbf16>
    %119 = vector.shape_cast %118 : vector<1x32x32xbf16> to vector<32x32xbf16>
    %cst_81 = arith.constant dense<0.000000e+00> : vector<32x32xf32>
    %120 = tpu.matmul %119, %116, %cst_81 {dimension_numbers = #tpu.dot_dimension_numbers<[1], [1], [0], [0], [0, 0, 1, 0], [], []>} : vector<32x32xbf16>, vector<32x32xbf16>, vector<32x32xf32> -> vector<32x32xf32>
    %c3_82 = arith.constant 3 : index
    %c0_83 = arith.constant 0 : index
    %c0_84 = arith.constant 0 : index
    %121 = vector.load %arg8[%c3_82, %c0_83, %c0_84] : memref<8x32x1xf32, #tpu.memory_space<vmem>>, vector<1x32x1xf32>
    %122 = vector.shape_cast %121 : vector<1x32x1xf32> to vector<32x1xf32>
    %cst_85 = arith.constant dense<0xFF800000> : vector<32xf32>
    %123 = vector.multi_reduction <maximumf>, %120, %cst_85 [1] : vector<32x32xf32> to vector<32xf32>
    %124 = vector.shape_cast %123 : vector<32xf32> to vector<32x1xf32>
    %125 = arith.maximumf %122, %124 : vector<32x1xf32>
    %126 = arith.subf %122, %125 : vector<32x1xf32>
    %127 = math.exp %126 : vector<32x1xf32>
    %128 = vector.broadcast %125 : vector<32x1xf32> to vector<32x32xf32>
    %129 = arith.subf %120, %128 : vector<32x32xf32>
    %130 = math.exp %129 : vector<32x32xf32>
    %131 = arith.truncf %130 : vector<32x32xf32> to vector<32x32xbf16>
    %c3_86 = arith.constant 3 : index
    %c0_87 = arith.constant 0 : index
    %c0_88 = arith.constant 0 : index
    %132 = vector.load %arg9[%c3_86, %c0_87, %c0_88] : memref<8x32x1xf32, #tpu.memory_space<vmem>>, vector<1x32x1xf32>
    %133 = vector.shape_cast %132 : vector<1x32x1xf32> to vector<32x1xf32>
    %134 = arith.mulf %127, %133 : vector<32x1xf32>
    %cst_89 = arith.constant dense<0.000000e+00> : vector<32x1xf32>
    %135 = tpu.matmul %131, %7, %cst_89 {dimension_numbers = #tpu.dot_dimension_numbers<[1], [0], [0], [1], [0, 0, 1, 1], [], []>} : vector<32x32xbf16>, vector<32x1xbf16>, vector<32x1xf32> -> vector<32x1xf32>
    %136 = arith.addf %134, %135 : vector<32x1xf32>
    %c3_90 = arith.constant 3 : index
    %c0_91 = arith.constant 0 : index
    %c0_92 = arith.constant 0 : index
    %137 = vector.load %arg9[%c3_90, %c0_91, %c0_92] : memref<8x32x1xf32, #tpu.memory_space<vmem>>, vector<1x32x1xf32>
    %138 = vector.shape_cast %137 : vector<1x32x1xf32> to vector<32x1xf32>
    %139 = vector.shape_cast %136 : vector<32x1xf32> to vector<1x32x1xf32>
    tpu.vector_store %arg9[%c3_90, %c0_91, %c0_92], %139 {strides = array<i32>} : memref<8x32x1xf32, #tpu.memory_space<vmem>>, vector<1x32x1xf32>,
    %c3_93 = arith.constant 3 : index
    %c0_94 = arith.constant 0 : index
    %c0_95 = arith.constant 0 : index
    %140 = vector.load %arg10[%c3_93, %c0_94, %c0_95] : memref<8x32x32xf32, #tpu.memory_space<vmem>>, vector<1x32x32xf32>
    %141 = vector.shape_cast %140 : vector<1x32x32xf32> to vector<32x32xf32>
    %142 = vector.broadcast %127 : vector<32x1xf32> to vector<32x32xf32>
    %143 = arith.mulf %142, %141 : vector<32x32xf32>
    %cst_96 = arith.constant dense<0.000000e+00> : vector<32x32xf32>
    %144 = tpu.matmul %131, %117, %cst_96 {dimension_numbers = #tpu.dot_dimension_numbers<[1], [0], [0], [1], [0, 0, 1, 1], [], []>} : vector<32x32xbf16>, vector<32x32xbf16>, vector<32x32xf32> -> vector<32x32xf32>
    %145 = arith.addf %143, %144 : vector<32x32xf32>
    %c3_97 = arith.constant 3 : index
    %c0_98 = arith.constant 0 : index
    %c0_99 = arith.constant 0 : index
    %146 = vector.load %arg10[%c3_97, %c0_98, %c0_99] : memref<8x32x32xf32, #tpu.memory_space<vmem>>, vector<1x32x32xf32>
    %147 = vector.shape_cast %146 : vector<1x32x32xf32> to vector<32x32xf32>
    %148 = vector.shape_cast %145 : vector<32x32xf32> to vector<1x32x32xf32>
    tpu.vector_store %arg10[%c3_97, %c0_98, %c0_99], %148 {strides = array<i32>} : memref<8x32x32xf32, #tpu.memory_space<vmem>>, vector<1x32x32xf32>,
    %c3_100 = arith.constant 3 : index
    %c0_101 = arith.constant 0 : index
    %c0_102 = arith.constant 0 : index
    %149 = vector.load %arg8[%c3_100, %c0_101, %c0_102] : memref<8x32x1xf32, #tpu.memory_space<vmem>>, vector<1x32x1xf32>
    %150 = vector.shape_cast %149 : vector<1x32x1xf32> to vector<32x1xf32>
    %151 = vector.shape_cast %125 : vector<32x1xf32> to vector<1x32x1xf32>
    tpu.vector_store %arg8[%c3_100, %c0_101, %c0_102], %151 {strides = array<i32>} : memref<8x32x1xf32, #tpu.memory_space<vmem>>, vector<1x32x1xf32>,
    %152 = vector.extract_strided_slice %4 {offsets = [0, 128], sizes = [32, 32], strides = [1, 1]} : vector<32x256xbf16> to vector<32x32xbf16>
    %153 = vector.extract_strided_slice %6 {offsets = [0, 128], sizes = [32, 32], strides = [1, 1]} : vector<32x256xbf16> to vector<32x32xbf16>
    %c4 = arith.constant 4 : index
    %c0_103 = arith.constant 0 : index
    %c0_104 = arith.constant 0 : index
    %154 = vector.load %arg7[%c4, %c0_103, %c0_104] : memref<8x32x32xbf16, #tpu.memory_space<vmem>>, vector<1x32x32xbf16>
    %155 = vector.shape_cast %154 : vector<1x32x32xbf16> to vector<32x32xbf16>
    %cst_105 = arith.constant dense<0.000000e+00> : vector<32x32xf32>
    %156 = tpu.matmul %155, %152, %cst_105 {dimension_numbers = #tpu.dot_dimension_numbers<[1], [1], [0], [0], [0, 0, 1, 0], [], []>} : vector<32x32xbf16>, vector<32x32xbf16>, vector<32x32xf32> -> vector<32x32xf32>
    %c4_106 = arith.constant 4 : index
    %c0_107 = arith.constant 0 : index
    %c0_108 = arith.constant 0 : index
    %157 = vector.load %arg8[%c4_106, %c0_107, %c0_108] : memref<8x32x1xf32, #tpu.memory_space<vmem>>, vector<1x32x1xf32>
    %158 = vector.shape_cast %157 : vector<1x32x1xf32> to vector<32x1xf32>
    %cst_109 = arith.constant dense<0xFF800000> : vector<32xf32>
    %159 = vector.multi_reduction <maximumf>, %156, %cst_109 [1] : vector<32x32xf32> to vector<32xf32>
    %160 = vector.shape_cast %159 : vector<32xf32> to vector<32x1xf32>
    %161 = arith.maximumf %158, %160 : vector<32x1xf32>
    %162 = arith.subf %158, %161 : vector<32x1xf32>
    %163 = math.exp %162 : vector<32x1xf32>
    %164 = vector.broadcast %161 : vector<32x1xf32> to vector<32x32xf32>
    %165 = arith.subf %156, %164 : vector<32x32xf32>
    %166 = math.exp %165 : vector<32x32xf32>
    %167 = arith.truncf %166 : vector<32x32xf32> to vector<32x32xbf16>
    %c4_110 = arith.constant 4 : index
    %c0_111 = arith.constant 0 : index
    %c0_112 = arith.constant 0 : index
    %168 = vector.load %arg9[%c4_110, %c0_111, %c0_112] : memref<8x32x1xf32, #tpu.memory_space<vmem>>, vector<1x32x1xf32>
    %169 = vector.shape_cast %168 : vector<1x32x1xf32> to vector<32x1xf32>
    %170 = arith.mulf %163, %169 : vector<32x1xf32>
    %cst_113 = arith.constant dense<0.000000e+00> : vector<32x1xf32>
    %171 = tpu.matmul %167, %7, %cst_113 {dimension_numbers = #tpu.dot_dimension_numbers<[1], [0], [0], [1], [0, 0, 1, 1], [], []>} : vector<32x32xbf16>, vector<32x1xbf16>, vector<32x1xf32> -> vector<32x1xf32>
    %172 = arith.addf %170, %171 : vector<32x1xf32>
    %c4_114 = arith.constant 4 : index
    %c0_115 = arith.constant 0 : index
    %c0_116 = arith.constant 0 : index
    %173 = vector.load %arg9[%c4_114, %c0_115, %c0_116] : memref<8x32x1xf32, #tpu.memory_space<vmem>>, vector<1x32x1xf32>
    %174 = vector.shape_cast %173 : vector<1x32x1xf32> to vector<32x1xf32>
    %175 = vector.shape_cast %172 : vector<32x1xf32> to vector<1x32x1xf32>
    tpu.vector_store %arg9[%c4_114, %c0_115, %c0_116], %175 {strides = array<i32>} : memref<8x32x1xf32, #tpu.memory_space<vmem>>, vector<1x32x1xf32>,
    %c4_117 = arith.constant 4 : index
    %c0_118 = arith.constant 0 : index
    %c0_119 = arith.constant 0 : index
    %176 = vector.load %arg10[%c4_117, %c0_118, %c0_119] : memref<8x32x32xf32, #tpu.memory_space<vmem>>, vector<1x32x32xf32>
    %177 = vector.shape_cast %176 : vector<1x32x32xf32> to vector<32x32xf32>
    %178 = vector.broadcast %163 : vector<32x1xf32> to vector<32x32xf32>
    %179 = arith.mulf %178, %177 : vector<32x32xf32>
    %cst_120 = arith.constant dense<0.000000e+00> : vector<32x32xf32>
    %180 = tpu.matmul %167, %153, %cst_120 {dimension_numbers = #tpu.dot_dimension_numbers<[1], [0], [0], [1], [0, 0, 1, 1], [], []>} : vector<32x32xbf16>, vector<32x32xbf16>, vector<32x32xf32> -> vector<32x32xf32>
    %181 = arith.addf %179, %180 : vector<32x32xf32>
    %c4_121 = arith.constant 4 : index
    %c0_122 = arith.constant 0 : index
    %c0_123 = arith.constant 0 : index
    %182 = vector.load %arg10[%c4_121, %c0_122, %c0_123] : memref<8x32x32xf32, #tpu.memory_space<vmem>>, vector<1x32x32xf32>
    %183 = vector.shape_cast %182 : vector<1x32x32xf32> to vector<32x32xf32>
    %184 = vector.shape_cast %181 : vector<32x32xf32> to vector<1x32x32xf32>
    tpu.vector_store %arg10[%c4_121, %c0_122, %c0_123], %184 {strides = array<i32>} : memref<8x32x32xf32, #tpu.memory_space<vmem>>, vector<1x32x32xf32>,
    %c4_124 = arith.constant 4 : index
    %c0_125 = arith.constant 0 : index
    %c0_126 = arith.constant 0 : index
    %185 = vector.load %arg8[%c4_124, %c0_125, %c0_126] : memref<8x32x1xf32, #tpu.memory_space<vmem>>, vector<1x32x1xf32>
    %186 = vector.shape_cast %185 : vector<1x32x1xf32> to vector<32x1xf32>
    %187 = vector.shape_cast %161 : vector<32x1xf32> to vector<1x32x1xf32>
    tpu.vector_store %arg8[%c4_124, %c0_125, %c0_126], %187 {strides = array<i32>} : memref<8x32x1xf32, #tpu.memory_space<vmem>>, vector<1x32x1xf32>,
    %188 = vector.extract_strided_slice %4 {offsets = [0, 160], sizes = [32, 32], strides = [1, 1]} : vector<32x256xbf16> to vector<32x32xbf16>
    %189 = vector.extract_strided_slice %6 {offsets = [0, 160], sizes = [32, 32], strides = [1, 1]} : vector<32x256xbf16> to vector<32x32xbf16>
    %c5 = arith.constant 5 : index
    %c0_127 = arith.constant 0 : index
    %c0_128 = arith.constant 0 : index
    %190 = vector.load %arg7[%c5, %c0_127, %c0_128] : memref<8x32x32xbf16, #tpu.memory_space<vmem>>, vector<1x32x32xbf16>
    %191 = vector.shape_cast %190 : vector<1x32x32xbf16> to vector<32x32xbf16>
    %cst_129 = arith.constant dense<0.000000e+00> : vector<32x32xf32>
    %192 = tpu.matmul %191, %188, %cst_129 {dimension_numbers = #tpu.dot_dimension_numbers<[1], [1], [0], [0], [0, 0, 1, 0], [], []>} : vector<32x32xbf16>, vector<32x32xbf16>, vector<32x32xf32> -> vector<32x32xf32>
    %c5_130 = arith.constant 5 : index
    %c0_131 = arith.constant 0 : index
    %c0_132 = arith.constant 0 : index
    %193 = vector.load %arg8[%c5_130, %c0_131, %c0_132] : memref<8x32x1xf32, #tpu.memory_space<vmem>>, vector<1x32x1xf32>
    %194 = vector.shape_cast %193 : vector<1x32x1xf32> to vector<32x1xf32>
    %cst_133 = arith.constant dense<0xFF800000> : vector<32xf32>
    %195 = vector.multi_reduction <maximumf>, %192, %cst_133 [1] : vector<32x32xf32> to vector<32xf32>
    %196 = vector.shape_cast %195 : vector<32xf32> to vector<32x1xf32>
    %197 = arith.maximumf %194, %196 : vector<32x1xf32>
    %198 = arith.subf %194, %197 : vector<32x1xf32>
    %199 = math.exp %198 : vector<32x1xf32>
    %200 = vector.broadcast %197 : vector<32x1xf32> to vector<32x32xf32>
    %201 = arith.subf %192, %200 : vector<32x32xf32>
    %202 = math.exp %201 : vector<32x32xf32>
    %203 = arith.truncf %202 : vector<32x32xf32> to vector<32x32xbf16>
    %c5_134 = arith.constant 5 : index
    %c0_135 = arith.constant 0 : index
    %c0_136 = arith.constant 0 : index
    %204 = vector.load %arg9[%c5_134, %c0_135, %c0_136] : memref<8x32x1xf32, #tpu.memory_space<vmem>>, vector<1x32x1xf32>
    %205 = vector.shape_cast %204 : vector<1x32x1xf32> to vector<32x1xf32>
    %206 = arith.mulf %199, %205 : vector<32x1xf32>
    %cst_137 = arith.constant dense<0.000000e+00> : vector<32x1xf32>
    %207 = tpu.matmul %203, %7, %cst_137 {dimension_numbers = #tpu.dot_dimension_numbers<[1], [0], [0], [1], [0, 0, 1, 1], [], []>} : vector<32x32xbf16>, vector<32x1xbf16>, vector<32x1xf32> -> vector<32x1xf32>
    %208 = arith.addf %206, %207 : vector<32x1xf32>
    %c5_138 = arith.constant 5 : index
    %c0_139 = arith.constant 0 : index
    %c0_140 = arith.constant 0 : index
    %209 = vector.load %arg9[%c5_138, %c0_139, %c0_140] : memref<8x32x1xf32, #tpu.memory_space<vmem>>, vector<1x32x1xf32>
    %210 = vector.shape_cast %209 : vector<1x32x1xf32> to vector<32x1xf32>
    %211 = vector.shape_cast %208 : vector<32x1xf32> to vector<1x32x1xf32>
    tpu.vector_store %arg9[%c5_138, %c0_139, %c0_140], %211 {strides = array<i32>} : memref<8x32x1xf32, #tpu.memory_space<vmem>>, vector<1x32x1xf32>,
    %c5_141 = arith.constant 5 : index
    %c0_142 = arith.constant 0 : index
    %c0_143 = arith.constant 0 : index
    %212 = vector.load %arg10[%c5_141, %c0_142, %c0_143] : memref<8x32x32xf32, #tpu.memory_space<vmem>>, vector<1x32x32xf32>
    %213 = vector.shape_cast %212 : vector<1x32x32xf32> to vector<32x32xf32>
    %214 = vector.broadcast %199 : vector<32x1xf32> to vector<32x32xf32>
    %215 = arith.mulf %214, %213 : vector<32x32xf32>
    %cst_144 = arith.constant dense<0.000000e+00> : vector<32x32xf32>
    %216 = tpu.matmul %203, %189, %cst_144 {dimension_numbers = #tpu.dot_dimension_numbers<[1], [0], [0], [1], [0, 0, 1, 1], [], []>} : vector<32x32xbf16>, vector<32x32xbf16>, vector<32x32xf32> -> vector<32x32xf32>
    %217 = arith.addf %215, %216 : vector<32x32xf32>
    %c5_145 = arith.constant 5 : index
    %c0_146 = arith.constant 0 : index
    %c0_147 = arith.constant 0 : index
    %218 = vector.load %arg10[%c5_145, %c0_146, %c0_147] : memref<8x32x32xf32, #tpu.memory_space<vmem>>, vector<1x32x32xf32>
    %219 = vector.shape_cast %218 : vector<1x32x32xf32> to vector<32x32xf32>
    %220 = vector.shape_cast %217 : vector<32x32xf32> to vector<1x32x32xf32>
    tpu.vector_store %arg10[%c5_145, %c0_146, %c0_147], %220 {strides = array<i32>} : memref<8x32x32xf32, #tpu.memory_space<vmem>>, vector<1x32x32xf32>,
    %c5_148 = arith.constant 5 : index
    %c0_149 = arith.constant 0 : index
    %c0_150 = arith.constant 0 : index
    %221 = vector.load %arg8[%c5_148, %c0_149, %c0_150] : memref<8x32x1xf32, #tpu.memory_space<vmem>>, vector<1x32x1xf32>
    %222 = vector.shape_cast %221 : vector<1x32x1xf32> to vector<32x1xf32>
    %223 = vector.shape_cast %197 : vector<32x1xf32> to vector<1x32x1xf32>
    tpu.vector_store %arg8[%c5_148, %c0_149, %c0_150], %223 {strides = array<i32>} : memref<8x32x1xf32, #tpu.memory_space<vmem>>, vector<1x32x1xf32>,
    %224 = vector.extract_strided_slice %4 {offsets = [0, 192], sizes = [32, 32], strides = [1, 1]} : vector<32x256xbf16> to vector<32x32xbf16>
    %225 = vector.extract_strided_slice %6 {offsets = [0, 192], sizes = [32, 32], strides = [1, 1]} : vector<32x256xbf16> to vector<32x32xbf16>
    %c6 = arith.constant 6 : index
    %c0_151 = arith.constant 0 : index
    %c0_152 = arith.constant 0 : index
    %226 = vector.load %arg7[%c6, %c0_151, %c0_152] : memref<8x32x32xbf16, #tpu.memory_space<vmem>>, vector<1x32x32xbf16>
    %227 = vector.shape_cast %226 : vector<1x32x32xbf16> to vector<32x32xbf16>
    %cst_153 = arith.constant dense<0.000000e+00> : vector<32x32xf32>
    %228 = tpu.matmul %227, %224, %cst_153 {dimension_numbers = #tpu.dot_dimension_numbers<[1], [1], [0], [0], [0, 0, 1, 0], [], []>} : vector<32x32xbf16>, vector<32x32xbf16>, vector<32x32xf32> -> vector<32x32xf32>
    %c6_154 = arith.constant 6 : index
    %c0_155 = arith.constant 0 : index
    %c0_156 = arith.constant 0 : index
    %229 = vector.load %arg8[%c6_154, %c0_155, %c0_156] : memref<8x32x1xf32, #tpu.memory_space<vmem>>, vector<1x32x1xf32>
    %230 = vector.shape_cast %229 : vector<1x32x1xf32> to vector<32x1xf32>
    %cst_157 = arith.constant dense<0xFF800000> : vector<32xf32>
    %231 = vector.multi_reduction <maximumf>, %228, %cst_157 [1] : vector<32x32xf32> to vector<32xf32>
    %232 = vector.shape_cast %231 : vector<32xf32> to vector<32x1xf32>
    %233 = arith.maximumf %230, %232 : vector<32x1xf32>
    %234 = arith.subf %230, %233 : vector<32x1xf32>
    %235 = math.exp %234 : vector<32x1xf32>
    %236 = vector.broadcast %233 : vector<32x1xf32> to vector<32x32xf32>
    %237 = arith.subf %228, %236 : vector<32x32xf32>
    %238 = math.exp %237 : vector<32x32xf32>
    %239 = arith.truncf %238 : vector<32x32xf32> to vector<32x32xbf16>
    %c6_158 = arith.constant 6 : index
    %c0_159 = arith.constant 0 : index
    %c0_160 = arith.constant 0 : index
    %240 = vector.load %arg9[%c6_158, %c0_159, %c0_160] : memref<8x32x1xf32, #tpu.memory_space<vmem>>, vector<1x32x1xf32>
    %241 = vector.shape_cast %240 : vector<1x32x1xf32> to vector<32x1xf32>
    %242 = arith.mulf %235, %241 : vector<32x1xf32>
    %cst_161 = arith.constant dense<0.000000e+00> : vector<32x1xf32>
    %243 = tpu.matmul %239, %7, %cst_161 {dimension_numbers = #tpu.dot_dimension_numbers<[1], [0], [0], [1], [0, 0, 1, 1], [], []>} : vector<32x32xbf16>, vector<32x1xbf16>, vector<32x1xf32> -> vector<32x1xf32>
    %244 = arith.addf %242, %243 : vector<32x1xf32>
    %c6_162 = arith.constant 6 : index
    %c0_163 = arith.constant 0 : index
    %c0_164 = arith.constant 0 : index
    %245 = vector.load %arg9[%c6_162, %c0_163, %c0_164] : memref<8x32x1xf32, #tpu.memory_space<vmem>>, vector<1x32x1xf32>
    %246 = vector.shape_cast %245 : vector<1x32x1xf32> to vector<32x1xf32>
    %247 = vector.shape_cast %244 : vector<32x1xf32> to vector<1x32x1xf32>
    tpu.vector_store %arg9[%c6_162, %c0_163, %c0_164], %247 {strides = array<i32>} : memref<8x32x1xf32, #tpu.memory_space<vmem>>, vector<1x32x1xf32>,
    %c6_165 = arith.constant 6 : index
    %c0_166 = arith.constant 0 : index
    %c0_167 = arith.constant 0 : index
    %248 = vector.load %arg10[%c6_165, %c0_166, %c0_167] : memref<8x32x32xf32, #tpu.memory_space<vmem>>, vector<1x32x32xf32>
    %249 = vector.shape_cast %248 : vector<1x32x32xf32> to vector<32x32xf32>
    %250 = vector.broadcast %235 : vector<32x1xf32> to vector<32x32xf32>
    %251 = arith.mulf %250, %249 : vector<32x32xf32>
    %cst_168 = arith.constant dense<0.000000e+00> : vector<32x32xf32>
    %252 = tpu.matmul %239, %225, %cst_168 {dimension_numbers = #tpu.dot_dimension_numbers<[1], [0], [0], [1], [0, 0, 1, 1], [], []>} : vector<32x32xbf16>, vector<32x32xbf16>, vector<32x32xf32> -> vector<32x32xf32>
    %253 = arith.addf %251, %252 : vector<32x32xf32>
    %c6_169 = arith.constant 6 : index
    %c0_170 = arith.constant 0 : index
    %c0_171 = arith.constant 0 : index
    %254 = vector.load %arg10[%c6_169, %c0_170, %c0_171] : memref<8x32x32xf32, #tpu.memory_space<vmem>>, vector<1x32x32xf32>
    %255 = vector.shape_cast %254 : vector<1x32x32xf32> to vector<32x32xf32>
    %256 = vector.shape_cast %253 : vector<32x32xf32> to vector<1x32x32xf32>
    tpu.vector_store %arg10[%c6_169, %c0_170, %c0_171], %256 {strides = array<i32>} : memref<8x32x32xf32, #tpu.memory_space<vmem>>, vector<1x32x32xf32>,
    %c6_172 = arith.constant 6 : index
    %c0_173 = arith.constant 0 : index
    %c0_174 = arith.constant 0 : index
    %257 = vector.load %arg8[%c6_172, %c0_173, %c0_174] : memref<8x32x1xf32, #tpu.memory_space<vmem>>, vector<1x32x1xf32>
    %258 = vector.shape_cast %257 : vector<1x32x1xf32> to vector<32x1xf32>
    %259 = vector.shape_cast %233 : vector<32x1xf32> to vector<1x32x1xf32>
    tpu.vector_store %arg8[%c6_172, %c0_173, %c0_174], %259 {strides = array<i32>} : memref<8x32x1xf32, #tpu.memory_space<vmem>>, vector<1x32x1xf32>,
    %260 = vector.extract_strided_slice %4 {offsets = [0, 224], sizes = [32, 32], strides = [1, 1]} : vector<32x256xbf16> to vector<32x32xbf16>
    %261 = vector.extract_strided_slice %6 {offsets = [0, 224], sizes = [32, 32], strides = [1, 1]} : vector<32x256xbf16> to vector<32x32xbf16>
    %c7 = arith.constant 7 : index
    %c0_175 = arith.constant 0 : index
    %c0_176 = arith.constant 0 : index
    %262 = vector.load %arg7[%c7, %c0_175, %c0_176] : memref<8x32x32xbf16, #tpu.memory_space<vmem>>, vector<1x32x32xbf16>
    %263 = vector.shape_cast %262 : vector<1x32x32xbf16> to vector<32x32xbf16>
    %cst_177 = arith.constant dense<0.000000e+00> : vector<32x32xf32>
    %264 = tpu.matmul %263, %260, %cst_177 {dimension_numbers = #tpu.dot_dimension_numbers<[1], [1], [0], [0], [0, 0, 1, 0], [], []>} : vector<32x32xbf16>, vector<32x32xbf16>, vector<32x32xf32> -> vector<32x32xf32>
    %c7_178 = arith.constant 7 : index
    %c0_179 = arith.constant 0 : index
    %c0_180 = arith.constant 0 : index
    %265 = vector.load %arg8[%c7_178, %c0_179, %c0_180] : memref<8x32x1xf32, #tpu.memory_space<vmem>>, vector<1x32x1xf32>
    %266 = vector.shape_cast %265 : vector<1x32x1xf32> to vector<32x1xf32>
    %cst_181 = arith.constant dense<0xFF800000> : vector<32xf32>
    %267 = vector.multi_reduction <maximumf>, %264, %cst_181 [1] : vector<32x32xf32> to vector<32xf32>
    %268 = vector.shape_cast %267 : vector<32xf32> to vector<32x1xf32>
    %269 = arith.maximumf %266, %268 : vector<32x1xf32>
    %270 = arith.subf %266, %269 : vector<32x1xf32>
    %271 = math.exp %270 : vector<32x1xf32>
    %272 = vector.broadcast %269 : vector<32x1xf32> to vector<32x32xf32>
    %273 = arith.subf %264, %272 : vector<32x32xf32>
    %274 = math.exp %273 : vector<32x32xf32>
    %275 = arith.truncf %274 : vector<32x32xf32> to vector<32x32xbf16>
    %c7_182 = arith.constant 7 : index
    %c0_183 = arith.constant 0 : index
    %c0_184 = arith.constant 0 : index
    %276 = vector.load %arg9[%c7_182, %c0_183, %c0_184] : memref<8x32x1xf32, #tpu.memory_space<vmem>>, vector<1x32x1xf32>
    %277 = vector.shape_cast %276 : vector<1x32x1xf32> to vector<32x1xf32>
    %278 = arith.mulf %271, %277 : vector<32x1xf32>
    %cst_185 = arith.constant dense<0.000000e+00> : vector<32x1xf32>
    %279 = tpu.matmul %275, %7, %cst_185 {dimension_numbers = #tpu.dot_dimension_numbers<[1], [0], [0], [1], [0, 0, 1, 1], [], []>} : vector<32x32xbf16>, vector<32x1xbf16>, vector<32x1xf32> -> vector<32x1xf32>
    %280 = arith.addf %278, %279 : vector<32x1xf32>
    %c7_186 = arith.constant 7 : index
    %c0_187 = arith.constant 0 : index
    %c0_188 = arith.constant 0 : index
    %281 = vector.load %arg9[%c7_186, %c0_187, %c0_188] : memref<8x32x1xf32, #tpu.memory_space<vmem>>, vector<1x32x1xf32>
    %282 = vector.shape_cast %281 : vector<1x32x1xf32> to vector<32x1xf32>
    %283 = vector.shape_cast %280 : vector<32x1xf32> to vector<1x32x1xf32>
    tpu.vector_store %arg9[%c7_186, %c0_187, %c0_188], %283 {strides = array<i32>} : memref<8x32x1xf32, #tpu.memory_space<vmem>>, vector<1x32x1xf32>,
    %c7_189 = arith.constant 7 : index
    %c0_190 = arith.constant 0 : index
    %c0_191 = arith.constant 0 : index
    %284 = vector.load %arg10[%c7_189, %c0_190, %c0_191] : memref<8x32x32xf32, #tpu.memory_space<vmem>>, vector<1x32x32xf32>
    %285 = vector.shape_cast %284 : vector<1x32x32xf32> to vector<32x32xf32>
    %286 = vector.broadcast %271 : vector<32x1xf32> to vector<32x32xf32>
    %287 = arith.mulf %286, %285 : vector<32x32xf32>
    %cst_192 = arith.constant dense<0.000000e+00> : vector<32x32xf32>
    %288 = tpu.matmul %275, %261, %cst_192 {dimension_numbers = #tpu.dot_dimension_numbers<[1], [0], [0], [1], [0, 0, 1, 1], [], []>} : vector<32x32xbf16>, vector<32x32xbf16>, vector<32x32xf32> -> vector<32x32xf32>
    %289 = arith.addf %287, %288 : vector<32x32xf32>
    %c7_193 = arith.constant 7 : index
    %c0_194 = arith.constant 0 : index
    %c0_195 = arith.constant 0 : index
    %290 = vector.load %arg10[%c7_193, %c0_194, %c0_195] : memref<8x32x32xf32, #tpu.memory_space<vmem>>, vector<1x32x32xf32>
    %291 = vector.shape_cast %290 : vector<1x32x32xf32> to vector<32x32xf32>
    %292 = vector.shape_cast %289 : vector<32x32xf32> to vector<1x32x32xf32>
    tpu.vector_store %arg10[%c7_193, %c0_194, %c0_195], %292 {strides = array<i32>} : memref<8x32x32xf32, #tpu.memory_space<vmem>>, vector<1x32x32xf32>,
    %c7_196 = arith.constant 7 : index
    %c0_197 = arith.constant 0 : index
    %c0_198 = arith.constant 0 : index
    %293 = vector.load %arg8[%c7_196, %c0_197, %c0_198] : memref<8x32x1xf32, #tpu.memory_space<vmem>>, vector<1x32x1xf32>
    %294 = vector.shape_cast %293 : vector<1x32x1xf32> to vector<32x1xf32>
    %295 = vector.shape_cast %269 : vector<32x1xf32> to vector<1x32x1xf32>
    tpu.vector_store %arg8[%c7_196, %c0_197, %c0_198], %295 {strides = array<i32>} : memref<8x32x1xf32, #tpu.memory_space<vmem>>, vector<1x32x1xf32>,
    %c0_i32_199 = arith.constant 0 : i32
    %296 = arith.cmpi eq, %arg2, %c0_i32_199 : i32
    %297 = arith.extui %296 : i1 to i32
    %c0_i32_200 = arith.constant 0 : i32
    %298 = arith.cmpi ne, %297, %c0_i32_200 : i32
    scf.if %298 {
      %c0_201 = arith.constant 0 : index
      %c0_202 = arith.constant 0 : index
      %c0_203 = arith.constant 0 : index
      %299 = vector.load %arg9[%c0_201, %c0_202, %c0_203] : memref<8x32x1xf32, #tpu.memory_space<vmem>>, vector<1x32x1xf32>
      %300 = vector.shape_cast %299 : vector<1x32x1xf32> to vector<32x1xf32>
      %301 = tpu.reciprocal %300 {approx = true} : vector<32x1xf32> -> vector<32x1xf32>
      %c0_204 = arith.constant 0 : index
      %c0_205 = arith.constant 0 : index
      %c0_206 = arith.constant 0 : index
      %302 = vector.load %arg10[%c0_204, %c0_205, %c0_206] : memref<8x32x32xf32, #tpu.memory_space<vmem>>, vector<1x32x32xf32>
      %303 = vector.shape_cast %302 : vector<1x32x32xf32> to vector<32x32xf32>
      %304 = vector.broadcast %301 : vector<32x1xf32> to vector<32x32xf32>
      %305 = arith.mulf %303, %304 : vector<32x32xf32>
      %c1_207 = arith.constant 1 : index
      %c0_208 = arith.constant 0 : index
      %c0_209 = arith.constant 0 : index
      %306 = vector.load %arg9[%c1_207, %c0_208, %c0_209] : memref<8x32x1xf32, #tpu.memory_space<vmem>>, vector<1x32x1xf32>
      %307 = vector.shape_cast %306 : vector<1x32x1xf32> to vector<32x1xf32>
      %308 = tpu.reciprocal %307 {approx = true} : vector<32x1xf32> -> vector<32x1xf32>
      %c1_210 = arith.constant 1 : index
      %c0_211 = arith.constant 0 : index
      %c0_212 = arith.constant 0 : index
      %309 = vector.load %arg10[%c1_210, %c0_211, %c0_212] : memref<8x32x32xf32, #tpu.memory_space<vmem>>, vector<1x32x32xf32>
      %310 = vector.shape_cast %309 : vector<1x32x32xf32> to vector<32x32xf32>
      %311 = vector.broadcast %308 : vector<32x1xf32> to vector<32x32xf32>
      %312 = arith.mulf %310, %311 : vector<32x32xf32>
      %c2_213 = arith.constant 2 : index
      %c0_214 = arith.constant 0 : index
      %c0_215 = arith.constant 0 : index
      %313 = vector.load %arg9[%c2_213, %c0_214, %c0_215] : memref<8x32x1xf32, #tpu.memory_space<vmem>>, vector<1x32x1xf32>
      %314 = vector.shape_cast %313 : vector<1x32x1xf32> to vector<32x1xf32>
      %315 = tpu.reciprocal %314 {approx = true} : vector<32x1xf32> -> vector<32x1xf32>
      %c2_216 = arith.constant 2 : index
      %c0_217 = arith.constant 0 : index
      %c0_218 = arith.constant 0 : index
      %316 = vector.load %arg10[%c2_216, %c0_217, %c0_218] : memref<8x32x32xf32, #tpu.memory_space<vmem>>, vector<1x32x32xf32>
      %317 = vector.shape_cast %316 : vector<1x32x32xf32> to vector<32x32xf32>
      %318 = vector.broadcast %315 : vector<32x1xf32> to vector<32x32xf32>
      %319 = arith.mulf %317, %318 : vector<32x32xf32>
      %c3_219 = arith.constant 3 : index
      %c0_220 = arith.constant 0 : index
      %c0_221 = arith.constant 0 : index
      %320 = vector.load %arg9[%c3_219, %c0_220, %c0_221] : memref<8x32x1xf32, #tpu.memory_space<vmem>>, vector<1x32x1xf32>
      %321 = vector.shape_cast %320 : vector<1x32x1xf32> to vector<32x1xf32>
      %322 = tpu.reciprocal %321 {approx = true} : vector<32x1xf32> -> vector<32x1xf32>
      %c3_222 = arith.constant 3 : index
      %c0_223 = arith.constant 0 : index
      %c0_224 = arith.constant 0 : index
      %323 = vector.load %arg10[%c3_222, %c0_223, %c0_224] : memref<8x32x32xf32, #tpu.memory_space<vmem>>, vector<1x32x32xf32>
      %324 = vector.shape_cast %323 : vector<1x32x32xf32> to vector<32x32xf32>
      %325 = vector.broadcast %322 : vector<32x1xf32> to vector<32x32xf32>
      %326 = arith.mulf %324, %325 : vector<32x32xf32>
      %c4_225 = arith.constant 4 : index
      %c0_226 = arith.constant 0 : index
      %c0_227 = arith.constant 0 : index
      %327 = vector.load %arg9[%c4_225, %c0_226, %c0_227] : memref<8x32x1xf32, #tpu.memory_space<vmem>>, vector<1x32x1xf32>
      %328 = vector.shape_cast %327 : vector<1x32x1xf32> to vector<32x1xf32>
      %329 = tpu.reciprocal %328 {approx = true} : vector<32x1xf32> -> vector<32x1xf32>
      %c4_228 = arith.constant 4 : index
      %c0_229 = arith.constant 0 : index
      %c0_230 = arith.constant 0 : index
      %330 = vector.load %arg10[%c4_228, %c0_229, %c0_230] : memref<8x32x32xf32, #tpu.memory_space<vmem>>, vector<1x32x32xf32>
      %331 = vector.shape_cast %330 : vector<1x32x32xf32> to vector<32x32xf32>
      %332 = vector.broadcast %329 : vector<32x1xf32> to vector<32x32xf32>
      %333 = arith.mulf %331, %332 : vector<32x32xf32>
      %c5_231 = arith.constant 5 : index
      %c0_232 = arith.constant 0 : index
      %c0_233 = arith.constant 0 : index
      %334 = vector.load %arg9[%c5_231, %c0_232, %c0_233] : memref<8x32x1xf32, #tpu.memory_space<vmem>>, vector<1x32x1xf32>
      %335 = vector.shape_cast %334 : vector<1x32x1xf32> to vector<32x1xf32>
      %336 = tpu.reciprocal %335 {approx = true} : vector<32x1xf32> -> vector<32x1xf32>
      %c5_234 = arith.constant 5 : index
      %c0_235 = arith.constant 0 : index
      %c0_236 = arith.constant 0 : index
      %337 = vector.load %arg10[%c5_234, %c0_235, %c0_236] : memref<8x32x32xf32, #tpu.memory_space<vmem>>, vector<1x32x32xf32>
      %338 = vector.shape_cast %337 : vector<1x32x32xf32> to vector<32x32xf32>
      %339 = vector.broadcast %336 : vector<32x1xf32> to vector<32x32xf32>
      %340 = arith.mulf %338, %339 : vector<32x32xf32>
      %c6_237 = arith.constant 6 : index
      %c0_238 = arith.constant 0 : index
      %c0_239 = arith.constant 0 : index
      %341 = vector.load %arg9[%c6_237, %c0_238, %c0_239] : memref<8x32x1xf32, #tpu.memory_space<vmem>>, vector<1x32x1xf32>
      %342 = vector.shape_cast %341 : vector<1x32x1xf32> to vector<32x1xf32>
      %343 = tpu.reciprocal %342 {approx = true} : vector<32x1xf32> -> vector<32x1xf32>
      %c6_240 = arith.constant 6 : index
      %c0_241 = arith.constant 0 : index
      %c0_242 = arith.constant 0 : index
      %344 = vector.load %arg10[%c6_240, %c0_241, %c0_242] : memref<8x32x32xf32, #tpu.memory_space<vmem>>, vector<1x32x32xf32>
      %345 = vector.shape_cast %344 : vector<1x32x32xf32> to vector<32x32xf32>
      %346 = vector.broadcast %343 : vector<32x1xf32> to vector<32x32xf32>
      %347 = arith.mulf %345, %346 : vector<32x32xf32>
      %c7_243 = arith.constant 7 : index
      %c0_244 = arith.constant 0 : index
      %c0_245 = arith.constant 0 : index
      %348 = vector.load %arg9[%c7_243, %c0_244, %c0_245] : memref<8x32x1xf32, #tpu.memory_space<vmem>>, vector<1x32x1xf32>
      %349 = vector.shape_cast %348 : vector<1x32x1xf32> to vector<32x1xf32>
      %350 = tpu.reciprocal %349 {approx = true} : vector<32x1xf32> -> vector<32x1xf32>
      %c7_246 = arith.constant 7 : index
      %c0_247 = arith.constant 0 : index
      %c0_248 = arith.constant 0 : index
      %351 = vector.load %arg10[%c7_246, %c0_247, %c0_248] : memref<8x32x32xf32, #tpu.memory_space<vmem>>, vector<1x32x32xf32>
      %352 = vector.shape_cast %351 : vector<1x32x32xf32> to vector<32x32xf32>
      %353 = vector.broadcast %350 : vector<32x1xf32> to vector<32x32xf32>
      %354 = arith.mulf %352, %353 : vector<32x32xf32>
      %355 = tpu.concatenate %305, %312, %319, %326, %333, %340, %347, %354 in 1 : vector<32x32xf32>, vector<32x32xf32>, vector<32x32xf32>, vector<32x32xf32>, vector<32x32xf32>, vector<32x32xf32>, vector<32x32xf32>, vector<32x32xf32> -> vector<32x256xf32>
      %356 = arith.truncf %355 : vector<32x256xf32> to vector<32x256xbf16>
      %c0_249 = arith.constant 0 : index
      %c0_250 = arith.constant 0 : index
      %c0_251 = arith.constant 0 : index
      %357 = vector.load %arg6[%c0_249, %c0_250, %c0_251] : memref<1x32x256xbf16, #tpu.memory_space<vmem>>, vector<1x32x256xbf16>
      %358 = vector.shape_cast %357 : vector<1x32x256xbf16> to vector<32x256xbf16>
      %359 = vector.shape_cast %356 : vector<32x256xbf16> to vector<1x32x256xbf16>
      tpu.vector_store %arg6[%c0_249, %c0_250, %c0_251], %359 {strides = array<i32>} : memref<1x32x256xbf16, #tpu.memory_space<vmem>>, vector<1x32x256xbf16>,
    } else {
    }
    return
  }
  func.func @transform_0(%arg0: i32, %arg1: i32, %arg2: i32) -> (i32, i32, i32) {
    %c0_i32 = arith.constant 0 : i32
    %c0_i32_0 = arith.constant 0 : i32
    return %arg0, %arg1, %c0_i32 : i32, i32, i32
  }
  func.func @transform_1(%arg0: i32, %arg1: i32, %arg2: i32) -> (i32, i32, i32) {
    %c1_i32 = arith.constant 1 : i32
    %c0_i32 = arith.constant 0 : i32
    return %arg0, %arg2, %c1_i32 : i32, i32, i32
  }
  func.func @transform_2(%arg0: i32, %arg1: i32, %arg2: i32) -> (i32, i32, i32) {
    %c2_i32 = arith.constant 2 : i32
    %c0_i32 = arith.constant 0 : i32
    return %arg0, %arg2, %c2_i32 : i32, i32, i32
  }
  func.func @transform_3(%arg0: i32, %arg1: i32, %arg2: i32) -> (i32, i32, i32) {
    %c0_i32 = arith.constant 0 : i32
    %c0_i32_0 = arith.constant 0 : i32
    return %arg0, %arg1, %c0_i32 : i32, i32, i32
  }
}

module attributes {stable_mosaic.version = 11 : i64} {
  func.func @_linear_kernel(%arg0: i32, %arg1: i32, %arg2: memref<32x256xbf16, #tpu.memory_space<vmem>>, %arg3: memref<256x64xbf16, #tpu.memory_space<vmem>>, %arg4: memref<256x8xbf16, #tpu.memory_space<vmem>>, %arg5: memref<8x64xbf16, #tpu.memory_space<vmem>>, %arg6: memref<1x64xf32, #tpu.memory_space<vmem>>, %arg7: memref<32x64xf32, #tpu.memory_space<vmem>>) attributes {dimension_semantics = [#tpu.dimension_semantics<parallel>, #tpu.dimension_semantics<parallel>], iteration_bounds = array<i64: 2, 1>, scalar_prefetch = 0 : i64, scratch_operands = 0 : i64, tpu.core_type = #tpu.core_type<tc>, window_params = [{transform_indices = @transform_0, window_bounds = array<i64: 32, 256>}, {transform_indices = @transform_1, window_bounds = array<i64: 256, 64>}, {pipeline_mode = #tpu.pipeline_mode<synchronous>, transform_indices = @transform_2, window_bounds = array<i64: 256, 8>}, {transform_indices = @transform_3, window_bounds = array<i64: 8, 64>}, {transform_indices = @transform_4, window_bounds = array<i64: 1, 64>}, {transform_indices = @transform_5, window_bounds = array<i64: 32, 64>}]} {
    %c0 = arith.constant 0 : index
    %c0_0 = arith.constant 0 : index
    %0 = vector.load %arg2[%c0, %c0_0] : memref<32x256xbf16, #tpu.memory_space<vmem>>, vector<32x256xbf16>
    %c0_1 = arith.constant 0 : index
    %c0_2 = arith.constant 0 : index
    %1 = vector.load %arg3[%c0_1, %c0_2] : memref<256x64xbf16, #tpu.memory_space<vmem>>, vector<256x64xbf16>
    %cst = arith.constant dense<0.000000e+00> : vector<32x64xf32>
    %2 = tpu.matmul %0, %1, %cst {dimension_numbers = #tpu.dot_dimension_numbers<[1], [0], [0], [1], [0, 0, 1, 1], [], []>} : vector<32x256xbf16>, vector<256x64xbf16>, vector<32x64xf32> -> vector<32x64xf32>
    %c0_3 = arith.constant 0 : index
    %c0_4 = arith.constant 0 : index
    %3 = vector.load %arg4[%c0_3, %c0_4] : memref<256x8xbf16, #tpu.memory_space<vmem>>, vector<256x8xbf16>
    %cst_5 = arith.constant dense<0.000000e+00> : vector<32x8xf32>
    %4 = tpu.matmul %0, %3, %cst_5 {dimension_numbers = #tpu.dot_dimension_numbers<[1], [0], [0], [1], [0, 0, 1, 1], [], []>} : vector<32x256xbf16>, vector<256x8xbf16>, vector<32x8xf32> -> vector<32x8xf32>
    %5 = arith.truncf %4 : vector<32x8xf32> to vector<32x8xbf16>
    %c0_6 = arith.constant 0 : index
    %c0_7 = arith.constant 0 : index
    %6 = vector.load %arg5[%c0_6, %c0_7] : memref<8x64xbf16, #tpu.memory_space<vmem>>, vector<8x64xbf16>
    %cst_8 = arith.constant dense<0.000000e+00> : vector<32x64xf32>
    %7 = tpu.matmul %5, %6, %cst_8 {dimension_numbers = #tpu.dot_dimension_numbers<[1], [0], [0], [1], [0, 0, 1, 1], [], []>} : vector<32x8xbf16>, vector<8x64xbf16>, vector<32x64xf32> -> vector<32x64xf32>
    %8 = arith.addf %2, %7 : vector<32x64xf32>
    %c0_9 = arith.constant 0 : index
    %c0_10 = arith.constant 0 : index
    %9 = vector.load %arg6[%c0_9, %c0_10] : memref<1x64xf32, #tpu.memory_space<vmem>>, vector<1x64xf32>
    %10 = vector.broadcast %9 : vector<1x64xf32> to vector<32x64xf32>
    %11 = arith.addf %8, %10 : vector<32x64xf32>
    %c0_11 = arith.constant 0 : index
    %c0_12 = arith.constant 0 : index
    %12 = vector.load %arg7[%c0_11, %c0_12] : memref<32x64xf32, #tpu.memory_space<vmem>>, vector<32x64xf32>
    tpu.vector_store %arg7[%c0_11, %c0_12], %11 {strides = array<i32>} : memref<32x64xf32, #tpu.memory_space<vmem>>, vector<32x64xf32>,
    return
  }
  func.func @transform_0(%arg0: i32, %arg1: i32) -> (i32, i32) {
    %c0_i32 = arith.constant 0 : i32
    %c0_i32_0 = arith.constant 0 : i32
    return %arg0, %c0_i32 : i32, i32
  }
  func.func @transform_1(%arg0: i32, %arg1: i32) -> (i32, i32) {
    %c0_i32 = arith.constant 0 : i32
    %c0_i32_0 = arith.constant 0 : i32
    return %c0_i32, %arg1 : i32, i32
  }
  func.func @transform_2(%arg0: i32, %arg1: i32) -> (i32, i32) {
    %c0_i32 = arith.constant 0 : i32
    %c0_i32_0 = arith.constant 0 : i32
    %c0_i32_1 = arith.constant 0 : i32
    return %c0_i32, %c0_i32_0 : i32, i32
  }
  func.func @transform_3(%arg0: i32, %arg1: i32) -> (i32, i32) {
    %c0_i32 = arith.constant 0 : i32
    %c0_i32_0 = arith.constant 0 : i32
    return %c0_i32, %arg1 : i32, i32
  }
  func.func @transform_4(%arg0: i32, %arg1: i32) -> (i32, i32) {
    %c0_i32 = arith.constant 0 : i32
    %c0_i32_0 = arith.constant 0 : i32
    return %c0_i32, %arg1 : i32, i32
  }
  func.func @transform_5(%arg0: i32, %arg1: i32) -> (i32, i32) {
    %c0_i32 = arith.constant 0 : i32
    return %arg0, %arg1 : i32, i32
  }
}

</mosaic_0001>

<bundles_post_ra>
// kernel: cross_attention_temporal_3dv2.3
= control target key start
LH: loop header
LB: loop body
LE: loop exit
PB: predicated region body
PF: predicated region fallthrough
CT: control target
= control target key end

     0   :  { %9 = vsyncpa [#allocation3], 0  ;;  %s1805_s0 = inlined_call_operand.vmem [shape: bf16[64,64], index: 0, kind: input, shape index: {}]   ;;  %s1806_s1 = inlined_call_operand.hbm [shape: bf16[64,768], index: 1, kind: input, shape index: {}]   ;;  %s1807_s2 = inlined_call_operand.vmem [shape: bf16[64,24], index: 2, kind: input, shape index: {}]   ;;  %s1808_s3 = inlined_call_operand.vmem [shape: bf16[24,768], index: 3, kind: input, shape index: {}]   ;;  %s1809_s4 = inlined_call_operand.vmem [shape: bf16[64,768], index: 4, kind: output, shape index: {}]  }
   0x1   :  { %11 = vsyncpa [#allocation3 + $0x1], 0  ;;  %s1547_s15 = smov 0   ;;  %s1549_s16 = smov 0  }
   0x2   :  { %s1551_s17 = smov 0   ;;  %s1553_s18 = smov 0  }
   0x3   :  { %s1555_s19 = smov 0   ;;  %s1557_s20 = smov 0  }
   0x4 LB: > { %s1142_s21 = sadd.s32 4294967295, %s1515_s20   ;;  %s26_s22 = sadd.s32 1, %s1511_s19  ;;  %s1515_s20 = sphi %s1557_s20, %s17_s20   ;;  %s1511_s19 = sphi %s1555_s19, %s1818_s19   ;;  %s1507_s18 = sphi %s1553_s18, %s1817_s18   ;;  %s1503_s17 = sphi %s1551_s17, %s1816_s17   ;;  %s1499_s16 = sphi %s1549_s16, %s1815_s16   ;;  %s1495_s15 = sphi %s1547_s15, %s1814_s15  }
   0x5   : > { %p27_p0 = scmp.ge.s32.totalorder %s26_s22, 2  ;;  %s62_s23 = sadd.s32 1, %s1503_s17 }
   0x6   : > { %p69_p1 = scmp.ne.s32.totalorder %s1503_s17, %s1499_s16  ;;  %p70_p2 = scmp.eq.s32.totalorder %s1515_s20, 0 }
   0x7   : > { %s1820_s22 = smov (%p27_p0, %s26_s22), 0  ;;  %p75_p4 = scmp.ne.s32.totalorder %s1499_s16, %s1495_s15 }
   0x8   : > { %p1583_p3 = por %p70_p2, %p69_p1  ;;  %s59_s25 = ssub.s32 %s1511_s19, %s1820_s22 }
   0x9   : > { %p76_p5 = scmp.eq.s32.totalorder %s1142_s21, 0  ;;  %p60_p6 = scmp.eq.s32.totalorder %s59_s25, 0 }
   0xa   : > { %p148_p7 = scmp.eq.s32.totalorder %s1142_s21, 1  ;;  %p1146_p10 = scmp.ge.s32.totalorder %s1515_s20, 2 }
   0xb   : > { %p1590_p8 = por %p76_p5, %p75_p4  ;;  %s1603_s29 = sand.u32 (!%p1146_p10), 1, %s1503_s17  }
   0xc   : > { %s1595_s27 = scalar_select %p60_p6, %s1503_s17, %s62_s23  }
   0xd   : > { %p1597_p9 = por %p148_p7, %p69_p1  ;;  %182 = sbr.rel (%p1146_p10) target bundleno = 50 (0x32), region = 24 }
   0xe   : > { %s1238_s30 = smul.u32 (!%p1146_p10), 192, %s1511_s19  ;;  %s187_s11 = scalar_lea.sflag (!%p1146_p10), [#allocation3], %s1603_s29 }
   0xf   : > { %s1812_s28 = scalar_select %p1597_p9, 1, 0 }
  0x10   : > { %s1348_s5 = smul.u32 (!%p1146_p10), 96, %s1603_s29  ;;  %s1610_s8 = scalar_lea.hbm (!%p1146_p10), %s1806_s1, %s1238_s30 }
  0x11   : > { %s1437_s12 = scalar_lea.hbm (!%p1146_p10), %s1610_s8, 1536  ;;  %s1441_s15 = scalar_lea.hbm (!%p1146_p10), %s1806_s1, 3072 }
  0x12   : > { %s190_s9 = scalar_lea.vmem (!%p1146_p10), [#allocation2], %s1348_s5  ;;  %p1438_p11 = scmp.ne.s32.totalorder (!%p1146_p10), %s1610_s8, %s1437_s12 }
  0x13   : > { %s197_s10 = sshll.u32 (!%p1146_p10), %s190_s9, 4  ;;  %p1442_p0 = scmp.lt.u32.totalorder (!%p1146_p10), %s1610_s8, %s1806_s1  ;;  %s1612_s10 = int_to_ptr.vmem [resolvable:$true] %s197_s10 }
  0x14   : > { %p1439_p12 = pnand %p1438_p11, %p1583_p3  ;;  %p1443_p1 = scmp.lt.u32.totalorder %s1441_s15, %s1437_s12 }
  0x15   : > { %p1445_p4 = scmp.lt.u32.totalorder %s1437_s12, %s1610_s8 }
  0x16   : > { %p1440_p13 = pneg %p1439_p12  ;;  %p1444_p2 = por %p1443_p1, %p1442_p0 }
  0x18   : > { %p1446_p5 = por %p1445_p4, %p1444_p2 }
  0x1a   : > { %p1447_p6 = pnand %p1446_p5, %p1440_p13 }
  0x1c   : > { %1450 = shalt.err (!%p1447_p6)
}
  0x1d   : > { %s1451_s25 = scalar_lea.vmem %s1612_s10, 1536  ;;  %s1517_s30 = smov [#allocation2]  }
  0x1e   : > { %p1452_p7 = scmp.ne.s32.totalorder %s1612_s10, %s1451_s25  ;;  %s1455_s5 = sshll.u32 %s1517_s30, 4  ;;  %s1456_s5 = int_to_ptr.vmem [resolvable:$false] %s1455_s5 }
  0x1f   : > { %s1457_s6 = scalar_lea.vmem %s1456_s5, 3072  ;;  %p1458_p12 = scmp.lt.s32.totalorder %s1612_s10, %s1456_s5 }
  0x20   : > { %p1453_p10 = pnand %p1452_p7, %p1583_p3  ;;  %p1459_p9 = scmp.lt.s32.totalorder %s1457_s6, %s1451_s25 }
  0x22   : > { %p1454_p11 = pneg %p1453_p10  ;;  %p1460_p0 = por %p1459_p9, %p1458_p12 }
  0x24   : > { %p1461_p1 = pnand %p1460_p0, %p1454_p11 }
  0x26   : > { %1464 = shalt.err (!%p1461_p1)
}
  0x27   : > { %s1518_s7 = smov 384   ;;  %s1519_s9 = smov 192  }
  0x28   : > { %s1520_s12 = smov 12   ;;  %206 = sbr.rel (!%p1583_p3) target bundleno = 50 (0x32), region = 32 }
  0x29   : > { %1352 = dma.hbm_to_vmem [thread:$0]  (%p1583_p3), %s1610_s8, 1536, %s1612_s10, %s187_s11, %s1518_s7, %s1519_s9, %s1520_s12  }
  0x2a   : > { %s1349_s13 = smul.u32 (%p1583_p3), 36, %s1603_s29 }
  0x2b   : > { %s1239_s14 = smul.u32 (%p1583_p3), 12, %s1511_s19 }
  0x2c   : > { %s210_s25 = scalar_lea.vmem (%p1583_p3), [#allocation4], %s1349_s13 }
  0x2d   : > { %s213_s23 = scalar_lea.vmem (%p1583_p3), %s1808_s3, %s1239_s14 }
  0x2e   : > { %v228_v0 = vld [vmem:[%s213_s23] sm:$0xff] (%p1583_p3)  ;;  %v230_v1 = vld [vmem:[%s213_s23 + $0x18] sm:$0xff] (%p1583_p3)  ;;  %v232_v2 = vld [vmem:[%s213_s23 + $0x30] sm:$0xff] (%p1583_p3) }
  0x2f   : > { %229 = vst [vmem:[%s210_s25] sm:$0xff] %v228_v0  ;;  %231 = vst [vmem:[%s210_s25 + $0xc] sm:$0xff] %v230_v1  ;;  %v1149_v3 = vld [vmem:[%s213_s23 + $0x8] sm:$0xf]  ;;  %v1151_v4 = vld [vmem:[%s213_s23 + $0x20] sm:$0xf] }
  0x30   : > { %233 = vst [vmem:[%s210_s25 + $0x18] sm:$0xff] %v232_v2  ;;  %v1153_v5 = vld [vmem:[%s213_s23 + $0x38] sm:$0xf]  ;;  %1150 = vst [vmem:[%s210_s25 + $0x8] sm:$0xf] %v1149_v3 }
  0x31   : > { %1152 = vst [vmem:[%s210_s25 + $0x14] sm:$0xf] %v1151_v4  ;;  %1154 = vst [vmem:[%s210_s25 + $0x20] sm:$0xf] %v1153_v5 }
  0x32 PF: > { %p1155_p3 = scmp.ge.s32.totalorder %s1515_s20, 1  ;;  %p251_p9 = scmp.lt.s32.totalorder %s1515_s20, 3 }
  0x34   : > { %p252_p13 = pnand %p1155_p3, %p251_p9 }
  0x35   : > { %s1648_s24 = sand.u32 (!%p252_p13), 1, %s1499_s16  }
  0x36   : > { %255 = sbr.rel (%p252_p13) target bundleno = 578 (0x242), region = 58  ;;  %s258_s8 = scalar_lea.sflag (!%p252_p13), [#allocation3], %s1648_s24 }
  0x37   : > { %s1350_s29 = smul.u32 (!%p252_p13), 96, %s1648_s24 }
  0x39   : > { %s1654_s10 = scalar_lea.vmem (!%p252_p13), [#allocation2], %s1350_s29 }
  0x3d   : > { %1490 = dma.done.wait (%p1590_p8), %s258_s8, 1536  }
  0x3e   : > { %1492 = vsyncadd (%p1590_p8), %s258_s8, 4294965760  ;;  %v1406_v6 = vld [vmem:[%s1807_s2] sm:$0xff]   ;;  %v1407_v7 = vld [vmem:[%s1807_s2 + $0x8] sm:$0xff]   ;;  %s1351_s7 = smul.u32 36, %s1648_s24  ;;  %vm388_vm0 = vcmask 523264   ;;  %vm513_vm1 = vcmask 1043456  }
  0x3f   : > { %1279 = vmatprep.subr.bf16.mxu0 %v1406_v6  ;;  %v1408_v8 = vld [vmem:[%s1807_s2 + $0x10] sm:$0xff]   ;;  %v1673_v9 = vld [vmem:[%s1805_s0] sm:$0xff]   ;;  %v1409_v10 = vld [vmem:[%s1807_s2 + $0x18] sm:$0xff]   ;;  %v1521_v24 = vmov 0   ;;  %vm500_vm2 = vcmask 195584   ;;  %p1813_p8 = scmp.ne.s32.totalorder %s1812_s28, 0 }
  0x40   : > { %1280 = vmatpush3.bf16.msra.mxu0 %v1406_v6  ;;  %1287 = vmatprep.mubr.msk.bf16.mxu0 %vm388_vm0, %v1673_v9  ;;  %s269_s21 = scalar_lea.vmem [#allocation4], %s1351_s7  ;;  %v1683_v14 = vld [vmem:[%s1805_s0 + $0x8] sm:$0xff]   ;;  %v1688_v15 = vld [vmem:[%s1805_s0 + $0x10] sm:$0xff]   ;;  %v1697_v16 = vld [vmem:[%s1805_s0 + $0x18] sm:$0xff]   ;;  %s1256_s24 = smul.u32 (%p1813_p8), 12, %s1507_s18 }
  0x41   : > { %1281 = vmatprep.subr.bf16.mxu0 %v1407_v7  ;;  %v1414_v11 = vld [vmem:[%s269_s21 + $0x4] ss:$12 sps:$4 sm:$0xff]   ;;  %v1416_v12 = vld [vmem:[%s269_s21] ss:$12 sps:$4 sm:$0xff]   ;;  %v1417_v13 = vld [vmem:[%s269_s21 + $0x8] ss:$12 sps:$4 sm:$0xff]   ;;  %555 = vmatprep.mubr.bf16.mxu1 %v1521_v24 }
  0x42   : > { %523 = vmatprep.subr.bf16.mxu1 %v1414_v11  ;;  %v474_v17 = vld [vmem:[%s269_s21 + $0x18] sm:$0xff]  ;;  %v1420_v20 = vld [vmem:[%s269_s21 + $0x20] ss:$0 sps:$4 sm:$0xff]   ;;  %v1424_v25 = vld [vmem:[%s1654_s10 + $0x8] ss:$12 sps:$4 sm:$0xff]   ;;  %s971_s6 = scalar_lea.vmem (%p1813_p8), %s1809_s4, %s1256_s24 }
  0x43   : > { %524 = vmatpush1.bf16.msra.mxu1 %v1416_v12  ;;  %v1172_v18 = vcombine.high %v474_v17, %v474_v17  ;;  %v1171_v19 = vcombine.low %v474_v17, %v474_v17  ;;  %v521_v22 = vsel %vm513_vm1, %v1420_v20, 0  ;;  %v1423_v23 = vld [vmem:[%s1654_s10 + $0x4] ss:$12 sps:$4 sm:$0xff]   ;;  %v1421_v31 = vld [vmem:[%s1654_s10] ss:$12 sps:$4 sm:$0xff]  }
  0x44   : > { %1282 = vmatpush3.bf16.msra.mxu0 %v1407_v7  ;;  %v1425_v33 = vld [vmem:[%s1654_s10 + $0x20] ss:$12 sps:$4 sm:$0xff]   ;;  %v1428_v34 = vld [vmem:[%s1654_s10 + $0x1c] ss:$12 sps:$4 sm:$0xff]   ;;  %v1426_v35 = vld [vmem:[%s1654_s10 + $0x18] ss:$12 sps:$4 sm:$0xff]  }
  0x45   : > { %1283 = vmatprep.subr.bf16.mxu0 %v1408_v8  ;;  %1174 = vmatprep.subr.msk.bf16.mxu1 %vm513_vm1, %v1172_v18  ;;  %v515_v21 = vsel %vm513_vm1, %v1171_v19, 0  ;;  %v1433_v37 = vld [vmem:[%s1654_s10 + $0x34] ss:$12 sps:$4 sm:$0xff]   ;;  %v1429_v39 = vld [vmem:[%s1654_s10 + $0x38] ss:$12 sps:$4 sm:$0xff]  }
  0x46   : > { %v1431_v44 = vld [vmem:[%s1654_s10 + $0x30] ss:$12 sps:$4 sm:$0xff]   ;;  %v1436_v46 = vld [vmem:[%s1654_s10 + $0x4c] ss:$12 sps:$4 sm:$0xff]   ;;  %v1434_v47 = vld [vmem:[%s1654_s10 + $0x48] ss:$12 sps:$4 sm:$0xff]  }
  0x47   : > { %526 = vmatpush1.bf16.msra.mxu1 %v515_v21  ;;  %v1430_v45 = vld [vmem:[%s1654_s10 + $0x50] ss:$12 sps:$4 sm:$0xff]   ;;  %s1747_s10 = scalar_lea.vmem [#allocation5], %s1350_s29 }
  0x48   : > { %1284 = vmatpush3.bf16.msra.mxu0 %v1408_v8  ;;  %725 = vmatprep.subr.bf16.mxu1 %v1423_v23 }
  0x49   : > { %1285 = vmatprep.subr.bf16.mxu0 %v1409_v10 }
  0x4c   : > { %1286 = vmatpush3.bf16.msra.mxu0 %v1409_v10 }
  0x4d   : > { %1295 = vmatprep.subr.bf16.mxu0 %v1417_v13 }
  0x4f   : > { %1288 = vmatmul.mubr.msk.bf16.vlgmr.msra.gmra.mrb[0].mxu0 %vm388_vm0, %v1683_v14 }
  0x50   : > { %1291 = vmatprep.mubr.msk.bf16.mxu0 %vm388_vm0, %v1688_v15  ;;  %1296 = vmatpush3.bf16.msra.mxu0 %v1417_v13 }
  0x51   : > { %1347 = vmatprep.subr.msk.bf16.mxu0 %vm513_vm1, %v1420_v20 }
  0x54   : > { %1298 = vmatpush3.bf16.msra.mxu0 %v521_v22 }
  0x55   : > { %1307 = vmatprep.subr.bf16.mxu0 %v1424_v25 }
  0x57   : > { %1292 = vmatmul.mubr.msk.bf16.gmra.mrb[4].mxu0 %vm388_vm0, %v1697_v16 }
 0x122   : > { %v1289_v26 = vpop.f32.mrb[0].mxu0 }
 0x123   : > { %v435_v27 = vpop.f32.mrb[1].mxu0 }
 0x124   : > { %v1290_v28 = vpop.f32.mrb[2].mxu0 }
 0x125   : > { %v467_v29 = vpack.c.bf16 %v1290_v28, %v1289_v26  ;;  %v438_v30 = vpop.f32.mrb[3].mxu0 }
 0x126   : > { %v466_v32 = vpack.c.bf16 %v438_v30, %v435_v27 }
 0x128   : > { %1175 = vmatmul.mubr.msk.bf16.vlgmr.msra.gmra.mrb[0].mxu1 %vm500_vm2, %v466_v32  ;;  %1299 = vmatprep.mubr.msk.bf16.mxu0 %vm500_vm2, %v466_v32 }
 0x129   : > { %726 = vmatpush1.bf16.msra.mxu1 %v1421_v31  ;;  %1300 = vmatmul.mubr.msk.bf16.vlgmr.msra.gmra.mrb[8].mxu0 %vm500_vm2, %v467_v29 }
 0x12a   : > { %v1293_v36 = vpop.f32.mrb[4].mxu0  ;;  %1308 = vmatpush3.bf16.msra.mxu0 %v1424_v25  ;;  %565 = vmatprep.mubr.bf16.mxu1 %v1521_v24 }
 0x12b   : > { %v451_v38 = vpop.f32.mrb[5].mxu0  ;;  %1309 = vmatprep.subr.bf16.mxu0 %v1425_v33  ;;  %727 = vmatprep.subr.bf16.mxu1 %v1428_v34 }
 0x12c   : > { %v1294_v40 = vpop.f32.mrb[6].mxu0 }
 0x12d   : > { %v469_v41 = vpack.c.bf16 %v1294_v40, %v1293_v36  ;;  %v454_v42 = vpop.f32.mrb[7].mxu0  ;;  %728 = vmatpush1.bf16.msra.mxu1 %v1426_v35 }
 0x12e   : > { %v468_v43 = vpack.c.bf16 %v454_v42, %v451_v38  ;;  %1310 = vmatpush3.bf16.msra.mxu0 %v1425_v33  ;;  %729 = vmatprep.subr.bf16.mxu1 %v1433_v37 }
 0x12f   : > { %1311 = vmatprep.subr.bf16.mxu0 %v1429_v39 }
 0x130   : > { %1176 = vmatmul.mubr.msk.bf16.gmra.mrb[4].mxu1 %vm500_vm2, %v467_v29  ;;  %1303 = vmatprep.mubr.msk.bf16.mxu0 %vm500_vm2, %v468_v43 }
 0x131   : > { %1304 = vmatmul.mubr.msk.bf16.gmra.mrb[12].mxu0 %vm500_vm2, %v469_v41  ;;  %575 = vmatprep.mubr.bf16.mxu1 %v1521_v24 }
 0x132   : > { %1312 = vmatpush3.bf16.msra.mxu0 %v1429_v39  ;;  %730 = vmatpush1.bf16.msra.mxu1 %v1431_v44 }
 0x133   : > { %1313 = vmatprep.subr.bf16.mxu0 %v1430_v45  ;;  %1315 = vmatprep.mubr.msk.bf16.mxu0 %vm388_vm0, %v1673_v9 }
 0x134   : > { %731 = vmatprep.subr.bf16.mxu1 %v1436_v46 }
 0x136   : > { %1314 = vmatpush3.bf16.msra.mxu0 %v1430_v45  ;;  %732 = vmatpush1.bf16.msra.mxu1 %v1434_v47 }
 0x138   : > { %1177 = vmatmul.mubr.msk.bf16.gmra.mrb[8].mxu1 %vm500_vm2, %v468_v43 }
 0x139   : > { %1316 = vmatmul.mubr.msk.bf16.vlgmr.msra.gmra.mrb[8].mxu0 %vm388_vm0, %v1683_v14  ;;  %585 = vmatprep.mubr.bf16.mxu1 %v1521_v24 }
 0x13a   : > { %1319 = vmatprep.mubr.msk.bf16.mxu0 %vm388_vm0, %v1688_v15 }
 0x140   : > { %1178 = vmatmul.mubr.msk.bf16.gmra.mrb[12].mxu1 %vm500_vm2, %v469_v41 }
 0x141   : > { %1320 = vmatmul.mubr.msk.bf16.gmra.mrb[12].mxu0 %vm388_vm0, %v1697_v16  ;;  %757 = vmatprep.mubr.bf16.mxu1 %v1521_v24 }
 0x148   : > { %1195 = vmatmul.mubr.msk.bf16.vlgmr.msra.gmra.mrb[0].mxu1 %vm388_vm0, %v1673_v9 }
 0x149   : > { %767 = vmatprep.mubr.bf16.mxu1 %v1521_v24 }
 0x150   : > { %1196 = vmatmul.mubr.msk.bf16.gmra.mrb[4].mxu1 %vm388_vm0, %v1683_v14 }
 0x151   : > { %777 = vmatprep.mubr.bf16.mxu1 %v1521_v24 }
 0x158   : > { %1197 = vmatmul.mubr.msk.bf16.gmra.mrb[8].mxu1 %vm388_vm0, %v1688_v15 }
 0x159   : > { %787 = vmatprep.mubr.bf16.mxu1 %v1521_v24 }
 0x160   : > { %1198 = vmatmul.mubr.msk.bf16.gmra.mrb[12].mxu1 %vm388_vm0, %v1697_v16 }
 0x20c   : > { %v1317_v48 = vpop.f32.mrb[8].mxu0 }
 0x20d   : > { %v1245_v49 = vpack.c.bf16 %v1317_v48, %v1317_v48  ;;  %v832_v50 = vpop.f32.mrb[9].mxu0 }
 0x20e   : > { %v1241_v51 = vpack.c.bf16 %v832_v50, %v832_v50  ;;  %v1318_v52 = vpop.f32.mrb[10].mxu0 }
 0x20f   : > { %948 = vst [vmem:[%s1747_s10 + $0x20] sm:$0xf] %v1245_v49  ;;  %v1247_v53 = vpack.c.bf16 %v1318_v52, %v1318_v52  ;;  %v835_v54 = vpop.f32.mrb[11].mxu0 }
 0x210   : > { %944 = vst [vmem:[%s1747_s10 + $0x8] sm:$0xf] %v1241_v51  ;;  %v1243_v55 = vpack.c.bf16 %v835_v54, %v835_v54 }
 0x211   : > { %950 = vst [vmem:[%s1747_s10 + $0x2c] sm:$0xf] %v1247_v53 }
 0x212   : > { %946 = vst [vmem:[%s1747_s10 + $0x14] sm:$0xf] %v1243_v55 }
 0x214   : > { %v1321_v56 = vpop.f32.mrb[12].mxu0 }
 0x215   : > { %v1253_v57 = vpack.c.bf16 %v1321_v56, %v1321_v56  ;;  %v848_v58 = vpop.f32.mrb[13].mxu0 }
 0x216   : > { %v1249_v59 = vpack.c.bf16 %v848_v58, %v848_v58  ;;  %v1322_v60 = vpop.f32.mrb[14].mxu0  ;;  %v1224_v34 = vld [vmem:[%s1747_s10 + $0x20] sm:$0xf] (%p1813_p8) }
 0x217   : > { %956 = vst [vmem:[%s1747_s10 + $0x50] sm:$0xf] %v1253_v57  ;;  %v1255_v61 = vpack.c.bf16 %v1322_v60, %v1322_v60  ;;  %v851_v62 = vpop.f32.mrb[15].mxu0  ;;  %v1220_v32 = vld [vmem:[%s1747_s10 + $0x8] sm:$0xf] (%p1813_p8) }
 0x218   : > { %952 = vst [vmem:[%s1747_s10 + $0x38] sm:$0xf] %v1249_v59  ;;  %v1251_v63 = vpack.c.bf16 %v851_v62, %v851_v62  ;;  %1221 = vst [vmem:[%s971_s6 + $0x8] sm:$0xf] (%p1813_p8), %v1220_v32  ;;  %v1226_v35 = vld [vmem:[%s1747_s10 + $0x2c] sm:$0xf] (%p1813_p8) }
 0x219   : > { %958 = vst [vmem:[%s1747_s10 + $0x5c] sm:$0xf] %v1255_v61  ;;  %v1222_v33 = vld [vmem:[%s1747_s10 + $0x14] sm:$0xf] (%p1813_p8)  ;;  %1225 = vst [vmem:[%s971_s6 + $0x38] sm:$0xf] (%p1813_p8), %v1224_v34 }
 0x21a   : > { %954 = vst [vmem:[%s1747_s10 + $0x44] sm:$0xf] %v1251_v63  ;;  %1223 = vst [vmem:[%s971_s6 + $0x20] sm:$0xf] (%p1813_p8), %v1222_v33 }
 0x21b   : > { %v759_v0 = vpop.f32.mrb[0].mxu1  ;;  %1227 = vst [vmem:[%s971_s6 + $0x50] sm:$0xf] (%p1813_p8), %v1226_v35 }
 0x21c   : > { %v761_v1 = vpop.f32.mrb[1].mxu1 }
 0x21d   : > { %v1240_v2 = vpack.c.bf16 %v761_v1, %v759_v0  ;;  %v763_v3 = vpop.f32.mrb[2].mxu1 }
 0x21e   : > { %v765_v4 = vpop.f32.mrb[3].mxu1  ;;  %v1232_v38 = vld [vmem:[%s1747_s10 + $0x50] sm:$0xf] (%p1813_p8) }
 0x21f   : > { %943 = vst [vmem:[%s1747_s10] sm:$0xff] %v1240_v2  ;;  %v1242_v5 = vpack.c.bf16 %v765_v4, %v763_v3  ;;  %v1228_v36 = vld [vmem:[%s1747_s10 + $0x38] sm:$0xf] (%p1813_p8)  ;;  %1233 = vst [vmem:[%s971_s6 + $0x98] sm:$0xf] (%p1813_p8), %v1232_v38 }
 0x220   : > { %1229 = vst [vmem:[%s971_s6 + $0x68] sm:$0xf] (%p1813_p8), %v1228_v36  ;;  %v1234_v39 = vld [vmem:[%s1747_s10 + $0x5c] sm:$0xf] (%p1813_p8) }
 0x221   : > { %945 = vst [vmem:[%s1747_s10 + $0xc] sm:$0xff] %v1242_v5  ;;  %v1230_v37 = vld [vmem:[%s1747_s10 + $0x44] sm:$0xf] (%p1813_p8)  ;;  %1235 = vst [vmem:[%s971_s6 + $0xb0] sm:$0xf] (%p1813_p8), %v1234_v39 }
 0x222   : > { %1231 = vst [vmem:[%s971_s6 + $0x80] sm:$0xf] (%p1813_p8), %v1230_v37 }
 0x223   : > { %v769_v6 = vpop.f32.mrb[4].mxu1 }
 0x224   : > { %v771_v7 = vpop.f32.mrb[5].mxu1 }
 0x225   : > { %v1244_v8 = vpack.c.bf16 %v771_v7, %v769_v6  ;;  %v773_v9 = vpop.f32.mrb[6].mxu1 }
 0x226   : > { %v775_v10 = vpop.f32.mrb[7].mxu1  ;;  %v986_v24 = vld [vmem:[%s1747_s10] sm:$0xff] (%p1813_p8) }
 0x227   : > { %947 = vst [vmem:[%s1747_s10 + $0x18] sm:$0xff] %v1244_v8  ;;  %v1246_v11 = vpack.c.bf16 %v775_v10, %v773_v9  ;;  %987 = vst [vmem:[%s971_s6] sm:$0xff] (%p1813_p8), %v986_v24 }
 0x228   : > { %v988_v25 = vld [vmem:[%s1747_s10 + $0xc] sm:$0xff] (%p1813_p8) }
 0x229   : > { %949 = vst [vmem:[%s1747_s10 + $0x24] sm:$0xff] %v1246_v11  ;;  %989 = vst [vmem:[%s971_s6 + $0x18] sm:$0xff] (%p1813_p8), %v988_v25 }
 0x22b   : > { %v779_v12 = vpop.f32.mrb[8].mxu1 }
 0x22c   : > { %v781_v13 = vpop.f32.mrb[9].mxu1 }
 0x22d   : > { %v1248_v14 = vpack.c.bf16 %v781_v13, %v779_v12  ;;  %v783_v15 = vpop.f32.mrb[10].mxu1 }
 0x22e   : > { %v785_v16 = vpop.f32.mrb[11].mxu1  ;;  %v990_v26 = vld [vmem:[%s1747_s10 + $0x18] sm:$0xff] (%p1813_p8) }
 0x22f   : > { %951 = vst [vmem:[%s1747_s10 + $0x30] sm:$0xff] %v1248_v14  ;;  %v1250_v17 = vpack.c.bf16 %v785_v16, %v783_v15  ;;  %991 = vst [vmem:[%s971_s6 + $0x30] sm:$0xff] (%p1813_p8), %v990_v26 }
 0x230   : > { %v992_v27 = vld [vmem:[%s1747_s10 + $0x24] sm:$0xff] (%p1813_p8) }
 0x231   : > { %953 = vst [vmem:[%s1747_s10 + $0x3c] sm:$0xff] %v1250_v17  ;;  %993 = vst [vmem:[%s971_s6 + $0x48] sm:$0xff] (%p1813_p8), %v992_v27 }
 0x233   : > { %v789_v18 = vpop.f32.mrb[12].mxu1  ;;  %965 = sbr.rel (!%p1813_p8) target bundleno = 578 (0x242), region = 70 }
 0x234   : > { %v791_v19 = vpop.f32.mrb[13].mxu1 }
 0x235   : > { %v1252_v20 = vpack.c.bf16 %v791_v19, %v789_v18  ;;  %v793_v21 = vpop.f32.mrb[14].mxu1 }
 0x236   : > { %v795_v22 = vpop.f32.mrb[15].mxu1  ;;  %v994_v28 = vld [vmem:[%s1747_s10 + $0x30] sm:$0xff] (%p1813_p8) }
 0x237   : > { %955 = vst [vmem:[%s1747_s10 + $0x48] sm:$0xff] %v1252_v20  ;;  %v1254_v23 = vpack.c.bf16 %v795_v22, %v793_v21  ;;  %995 = vst [vmem:[%s971_s6 + $0x60] sm:$0xff] (%p1813_p8), %v994_v28 }
 0x238   : > { %v996_v29 = vld [vmem:[%s1747_s10 + $0x3c] sm:$0xff] (%p1813_p8) }
 0x239   : > { %957 = vst [vmem:[%s1747_s10 + $0x54] sm:$0xff] %v1254_v23  ;;  %997 = vst [vmem:[%s971_s6 + $0x78] sm:$0xff] (%p1813_p8), %v996_v29 }
 0x23e   : > { %v998_v30 = vld [vmem:[%s1747_s10 + $0x48] sm:$0xff] }
 0x23f   : > { %999 = vst [vmem:[%s971_s6 + $0x90] sm:$0xff] %v998_v30 }
 0x240   : > { %v1000_v31 = vld [vmem:[%s1747_s10 + $0x54] sm:$0xff] }
 0x241   : > { %1001 = vst [vmem:[%s971_s6 + $0xa8] sm:$0xff] %v1000_v31 }
 0x242 PF: > { %s17_s20 = sadd.s32 1, %s1515_s20   ;;  %s1814_s15 = smov %s1499_s16 }
 0x243   : > { %p14_p2 = scmp.ge.s32.totalorder %s17_s20, 4   ;;  %s1815_s16 = smov %s1503_s17 }
 0x244   : > { %s1816_s17 = smov %s1595_s27  ;;  %s1817_s18 = smov %s1511_s19 }
 0x245   : > { %s1818_s19 = smov %s1820_s22  ;;  %16 = sbr.rel (!%p14_p2) target bundleno = 4 (0x4), region = 151 }
 0x24c   :  { %1040 = vsyncpa [#allocation3], 1 }
 0x24d   :  { %1042 = vsyncpa [#allocation3 + $0x1], 1 }

// kernel: cross_attention_temporal_3dv2.5
= control target key start
LH: loop header
LB: loop body
LE: loop exit
PB: predicated region body
PF: predicated region fallthrough
CT: control target
= control target key end

     0   :  { %10 = vsyncpa [#allocation3], 0  ;;  %s1434_s0 = inlined_call_operand.vmem [shape: bf16[64,256], index: 0, kind: input, shape index: {}]   ;;  %s1435_s1 = inlined_call_operand.vmem [shape: bf16[256,64], index: 1, kind: input, shape index: {}]   ;;  %s1436_s2 = inlined_call_operand.vmem [shape: bf16[256,8], index: 2, kind: input, shape index: {}]   ;;  %s1437_s3 = inlined_call_operand.vmem [shape: bf16[8,64], index: 3, kind: input, shape index: {}]   ;;  %s1438_s4 = inlined_call_operand.vmem [shape: f32[1,64], index: 4, kind: input, shape index: {}]   ;;  %s1439_s5 = inlined_call_operand.hbm [shape: f32[64,64], index: 5, kind: output, shape index: {}]  }
   0x1   :  { %12 = vsyncpa [#allocation3 + $0x1], 0  ;;  %s1210_s18 = smov 0   ;;  %s1212_s19 = smov 0  }
   0x2   :  { %s1214_s20 = smov 0   ;;  %s1216_s21 = smov 0  }
   0x3   :  { %s1218_s22 = smov 0   ;;  %s1220_s23 = smov 0  }
   0x4 LB: > { %s878_s24 = sadd.s32 4294967295, %s1175_s23   ;;  %s879_s25 = sadd.s32 4294967294, %s1175_s23   ;;  %s1175_s23 = sphi %s1220_s23, %s18_s23   ;;  %s1171_s22 = sphi %s1218_s22, %s1446_s22   ;;  %s1167_s21 = sphi %s1216_s21, %s1445_s21   ;;  %s1163_s20 = sphi %s1214_s20, %s1444_s20   ;;  %s1159_s19 = sphi %s1212_s19, %s1443_s19   ;;  %s1155_s18 = sphi %s1210_s18, %s1442_s18  }
   0x5   : > { %s30_s26 = sadd.s32 1, %s1171_s22  ;;  %s164_s27 = sadd.s32 1, %s1163_s20 }
   0x6   : > { %p32_p0 = scmp.ge.s32.totalorder %s30_s26, 2  ;;  %p174_p1 = scmp.ne.s32.totalorder %s1163_s20, %s1159_s19 }
   0x7   : > { %p175_p2 = scmp.eq.s32.totalorder %s878_s24, 1  ;;  %p180_p3 = scmp.ne.s32.totalorder %s1159_s19, %s1155_s18 }
   0x8   : > { %s1448_s26 = smov (%p32_p0, %s30_s26), 0  ;;  %p181_p5 = scmp.eq.s32.totalorder %s879_s25, 1 }
   0x9   : > { %p1250_p4 = por %p175_p2, %p174_p1  ;;  %s159_s29 = ssub.s32 %s1171_s22, %s1448_s26 }
   0xa   : > { %p885_p6 = scmp.ge.s32.totalorder %s1175_s23, 1  ;;  %p162_p7 = scmp.eq.s32.totalorder %s159_s29, 0 }
   0xb   : > { %p1257_p8 = por %p181_p5, %p180_p3  ;;  %p232_p9 = scmp.lt.s32.totalorder %s1175_s23, 3 }
   0xc   : > { %s1263_s6 = scalar_select %p162_p7, %s1163_s20, %s164_s27  }
   0xd   : > { %p233_p10 = pnand %p885_p6, %p232_p9 }
   0xe   : > { %v1059_v0 = vld [vmem:[%s1436_s2 + $0x40] sm:$0xff] (!%p233_p10)   ;;  %s887_s9 = sshll.u32 (!%p233_p10), %s1167_s21, 2  ;;  %v1061_v2 = vld [vmem:[%s1436_s2 + $0x48] sm:$0xff] (!%p233_p10)   ;;  %v1063_v4 = vld [vmem:[%s1436_s2 + $0x50] sm:$0xff] (!%p233_p10)   ;;  %vm535_vm0 = vcmask (!%p233_p10), 1043456   ;;  %vm528_vm1 = vcmask (!%p233_p10), 64512  }
   0xf   : > { %236 = sbr.rel (%p233_p10) target bundleno = 550 (0x226), region = 40  ;;  %v1060_v1 = vld [vmem:[%s1436_s2] sm:$0xff] (!%p233_p10)   ;;  %936 = vmatprep.subr.bf16.mxu0 (!%p233_p10), %v1059_v0  ;;  %v1062_v3 = vld [vmem:[%s1436_s2 + $0x8] sm:$0xff] (!%p233_p10)   ;;  %p273_p11 = scmp.lt.s32.totalorder (!%p233_p10), %s887_s9, 7  ;;  %v1064_v5 = vld [vmem:[%s1436_s2 + $0x10] sm:$0xff] (!%p233_p10)   ;;  %vm744_vm2 = vcmask (!%p233_p10), 523264  }
  0x10   : > { %937 = vmatpush3.bf16.msra.mxu0 (!%p233_p10), %v1060_v1  ;;  %v1065_v6 = vld [vmem:[%s1436_s2 + $0x58] sm:$0xff] (!%p233_p10)   ;;  %v1067_v8 = vld [vmem:[%s1436_s2 + $0x60] sm:$0xff] (!%p233_p10)   ;;  %v1069_v10 = vld [vmem:[%s1436_s2 + $0x68] sm:$0xff] (!%p233_p10)   ;;  %s935_s8 = sshll.u32 (!%p233_p10), %s1167_s21, 9  ;;  %s1177_s16 = smov (!%p233_p10), [#allocation2]  }
  0x11   : > { %938 = vmatprep.subr.bf16.mxu0 (!%p233_p10), %v1061_v2  ;;  %v1066_v7 = vld [vmem:[%s1436_s2 + $0x18] sm:$0xff] (!%p233_p10)   ;;  %v1068_v9 = vld [vmem:[%s1436_s2 + $0x20] sm:$0xff] (!%p233_p10)   ;;  %v1070_v12 = vld [vmem:[%s1436_s2 + $0x28] sm:$0xff] (!%p233_p10)   ;;  %s1380_s13 = scalar_lea.hbm (!%p233_p10), %s1439_s5, %s935_s8  ;;  %s1101_s17 = sshll.u32 (!%p233_p10), %s1177_s16, 4  ;;  %s1102_s17 = int_to_ptr.vmem [resolvable:$false] %s1101_s17 }
  0x12   : > { %v1071_v13 = vld [vmem:[%s1436_s2 + $0x70] sm:$0xff] (!%p233_p10)   ;;  %v1073_v15 = vld [vmem:[%s1436_s2 + $0x78] sm:$0xff] (!%p233_p10)   ;;  %v527_v20 = vld [vmem:[%s1437_s3] sm:$0xf] (!%p233_p10)  ;;  %s1103_s24 = scalar_lea.vmem (!%p233_p10), %s1102_s17, 1024 }
  0x13   : > { %v1072_v14 = vld [vmem:[%s1436_s2 + $0x30] sm:$0xff] (!%p233_p10)   ;;  %v1074_v16 = vld [vmem:[%s1436_s2 + $0x38] sm:$0xff] (!%p233_p10)   ;;  %1001 = vmatprep.subr.msk.bf16.mxu1 (!%p233_p10), %vm535_vm0, %v527_v20  ;;  %v537_v21 = vsel (!%p233_p10), %vm535_vm0, %v527_v20, 0  ;;  %v1081_v22 = vld [vmem:[%s1435_s1 + $0x40] sm:$0xff] (!%p233_p10)  }
  0x14   : > { %939 = vmatpush3.bf16.msra.mxu0 (!%p233_p10), %v1062_v3  ;;  %996 = vmatpush3.bf16.msra.mxu1 (!%p233_p10), %v537_v21  ;;  %v1082_v36 = vld [vmem:[%s1435_s1] sm:$0xff] (!%p233_p10)   ;;  %v1083_v38 = vld [vmem:[%s1435_s1 + $0x48] sm:$0xff] (!%p233_p10)   ;;  %v1085_v40 = vld [vmem:[%s1435_s1 + $0x50] sm:$0xff] (!%p233_p10)  }
  0x15   : > { %940 = vmatprep.subr.bf16.mxu0 (!%p233_p10), %v1063_v4  ;;  %967 = vmatprep.subr.bf16.mxu1 (!%p233_p10), %v1081_v22  ;;  %v1084_v39 = vld [vmem:[%s1435_s1 + $0x8] sm:$0xff] (!%p233_p10)   ;;  %v1086_v41 = vld [vmem:[%s1435_s1 + $0x10] sm:$0xff] (!%p233_p10)   ;;  %v1087_v42 = vld [vmem:[%s1435_s1 + $0x58] sm:$0xff] (!%p233_p10)  }
  0x16   : > { %s1450_s9 = smov (!%p273_p11, %s887_s9), 7  ;;  %v1088_v43 = vld [vmem:[%s1435_s1 + $0x18] sm:$0xff]   ;;  %v1089_v44 = vld [vmem:[%s1435_s1 + $0x60] sm:$0xff]   ;;  %v1091_v46 = vld [vmem:[%s1435_s1 + $0x68] sm:$0xff]  }
  0x17   : > { %s934_s10 = sshll.u32 %s1450_s9, 3  ;;  %v1090_v45 = vld [vmem:[%s1435_s1 + $0x20] sm:$0xff]   ;;  %v1092_v47 = vld [vmem:[%s1435_s1 + $0x28] sm:$0xff]   ;;  %v1093_v48 = vld [vmem:[%s1435_s1 + $0x70] sm:$0xff]  }
  0x18   : > { %941 = vmatpush3.bf16.msra.mxu0 %v1064_v5  ;;  %s277_s15 = scalar_lea.vmem %s1434_s0, %s934_s10  ;;  %v1094_v49 = vld [vmem:[%s1435_s1 + $0x30] sm:$0xff]   ;;  %v1095_v50 = vld [vmem:[%s1435_s1 + $0x78] sm:$0xff]   ;;  %v928_v60 = vld [vmem:[%s1438_s4] ss:$0 sm:$0xff] }
  0x19   : > { %942 = vmatprep.subr.bf16.mxu0 %v1065_v6  ;;  %v1077_v11 = vld [vmem:[%s277_s15 + $0x4] ss:$8 sps:$4 sm:$0xff]   ;;  %v1075_v17 = vld [vmem:[%s277_s15] ss:$8 sps:$4 sm:$0xff]   ;;  %v1078_v18 = vld [vmem:[%s277_s15 + $0x14] ss:$8 sps:$4 sm:$0xff]  }
  0x1a   : > { %508 = vmatprep.mubr.bf16.mxu0 %v1077_v11  ;;  %v1080_v19 = vld [vmem:[%s277_s15 + $0x10] ss:$8 sps:$4 sm:$0xff]   ;;  %s269_s15 = sand.u32 1, %s1159_s19  }
  0x1b   : > { %v1096_v51 = vld [vmem:[%s1435_s1 + $0x38] sm:$0xff]   ;;  %s886_s9 = sshll.u32 %s269_s15, 5  ;;  %s1388_s21 = scalar_lea.sflag [#allocation3], %s269_s15 }
  0x1c   : > { %943 = vmatpush3.bf16.msra.mxu0 %v1066_v7  ;;  %s271_s7 = scalar_lea.vmem [#allocation2], %s886_s9 }
  0x1d   : > { %944 = vmatprep.subr.bf16.mxu0 %v1067_v8  ;;  %s764_s10 = sshll.u32 %s271_s7, 4  ;;  %s1382_s10 = int_to_ptr.vmem [resolvable:$true] %s764_s10 }
  0x1e   : > { %s1097_s14 = scalar_lea.vmem %s1382_s10, 512  ;;  %p1104_p1 = scmp.lt.s32.totalorder %s1382_s10, %s1102_s17 }
  0x1f   : > { %p1098_p12 = scmp.ne.s32.totalorder %s1382_s10, %s1097_s14  ;;  %p1105_p2 = scmp.lt.s32.totalorder %s1103_s24, %s1097_s14 }
  0x20   : > { %945 = vmatpush3.bf16.msra.mxu0 %v1068_v9 }
  0x21   : > { %946 = vmatprep.subr.bf16.mxu0 %v1069_v10  ;;  %p1099_p13 = pnand %p1098_p12, %p1250_p4  ;;  %p1106_p3 = por %p1105_p2, %p1104_p1 }
  0x23   : > { %p1100_p0 = pneg %p1099_p13 }
  0x24   : > { %947 = vmatpush3.bf16.msra.mxu0 %v1070_v12 }
  0x25   : > { %948 = vmatprep.subr.bf16.mxu0 %v1071_v13  ;;  %p1107_p5 = pnand %p1106_p3, %p1100_p0 }
  0x28   : > { %949 = vmatpush3.bf16.msra.mxu0 %v1072_v14 }
  0x29   : > { %950 = vmatprep.subr.bf16.mxu0 %v1073_v15 }
  0x2c   : > { %951 = vmatpush3.bf16.msra.mxu0 %v1074_v16 }
  0x2f   : > { %509 = vmatmul.mubr.bf16.vlgmr.msra.gmra.mrb[0].mxu0 %v1075_v17 }
  0x30   : > { %516 = vmatprep.mubr.bf16.mxu0 %v1078_v18 }
  0x37   : > { %517 = vmatmul.mubr.bf16.gmra.mrb[4].mxu0 %v1080_v19 }
 0x102   : > { %v952_v23 = vpop.f32.mrb[0].mxu0 }
 0x103   : > { %v953_v24 = vpop.f32.mrb[1].mxu0 }
 0x104   : > { %v954_v25 = vadd.f32 %v953_v24, %v952_v23  ;;  %v955_v26 = vpop.f32.mrb[2].mxu0 }
 0x105   : > { %v956_v27 = vpop.f32.mrb[3].mxu0 }
 0x106   : > { %v957_v28 = vadd.f32 %v956_v27, %v955_v26 }
 0x108   : > { %v525_v29 = vpack.c.bf16 %v957_v28, %v954_v25 }
 0x10a   : > { %v958_v30 = vpop.f32.mrb[4].mxu0  ;;  %997 = vmatprep.mubr.msk.bf16.mxu1 %vm528_vm1, %v525_v29 }
 0x10b   : > { %v959_v31 = vpop.f32.mrb[5].mxu0 }
 0x10c   : > { %v960_v32 = vadd.f32 %v959_v31, %v958_v30  ;;  %v961_v33 = vpop.f32.mrb[6].mxu0 }
 0x10d   : > { %v962_v34 = vpop.f32.mrb[7].mxu0 }
 0x10e   : > { %v963_v35 = vadd.f32 %v962_v34, %v961_v33 }
 0x110   : > { %v526_v37 = vpack.c.bf16 %v963_v35, %v960_v32 }
 0x112   : > { %998 = vmatmul.mubr.msk.bf16.vlgmr.msra.gmra.mrb[0].mxu1 %vm528_vm1, %v526_v37 }
 0x113   : > { %968 = vmatpush3.bf16.msra.mxu1 %v1082_v36  ;;  %716 = vmatprep.mubr.bf16.mxu1 %v1077_v11 }
 0x114   : > { %969 = vmatprep.subr.bf16.mxu1 %v1083_v38 }
 0x117   : > { %970 = vmatpush3.bf16.msra.mxu1 %v1084_v39 }
 0x118   : > { %971 = vmatprep.subr.bf16.mxu1 %v1085_v40 }
 0x11b   : > { %972 = vmatpush3.bf16.msra.mxu1 %v1086_v41 }
 0x11c   : > { %973 = vmatprep.subr.bf16.mxu1 %v1087_v42 }
 0x11f   : > { %974 = vmatpush3.bf16.msra.mxu1 %v1088_v43 }
 0x120   : > { %975 = vmatprep.subr.bf16.mxu1 %v1089_v44 }
 0x123   : > { %976 = vmatpush3.bf16.msra.mxu1 %v1090_v45 }
 0x124   : > { %977 = vmatprep.subr.bf16.mxu1 %v1091_v46 }
 0x127   : > { %978 = vmatpush3.bf16.msra.mxu1 %v1092_v47 }
 0x128   : > { %979 = vmatprep.subr.bf16.mxu1 %v1093_v48 }
 0x12b   : > { %980 = vmatpush3.bf16.msra.mxu1 %v1094_v49 }
 0x12c   : > { %981 = vmatprep.subr.bf16.mxu1 %v1095_v50 }
 0x12f   : > { %982 = vmatpush3.bf16.msra.mxu1 %v1096_v51 }
 0x132   : > { %717 = vmatmul.mubr.bf16.vlgmr.msra.gmra.mrb[4].mxu1 %v1075_v17 }
 0x133   : > { %724 = vmatprep.mubr.bf16.mxu1 %v1078_v18 }
 0x13a   : > { %725 = vmatmul.mubr.bf16.gmra.mrb[8].mxu1 %v1080_v19 }
 0x1e5   : > { %v999_v52 = vpop.f32.mrb[0].mxu1 }
 0x1e6   : > { %v573_v53 = vpop.f32.mrb[1].mxu1 }
 0x1e7   : > { %v1000_v54 = vpop.f32.mrb[2].mxu1 }
 0x1e8   : > { %v576_v55 = vpop.f32.mrb[3].mxu1 }
 0x205   : > { %v983_v56 = vpop.f32.mrb[4].mxu1 }
 0x206   : > { %v984_v57 = vpop.f32.mrb[5].mxu1 }
 0x207   : > { %v985_v58 = vadd.f32 %v984_v57, %v983_v56  ;;  %v986_v59 = vpop.f32.mrb[6].mxu1 }
 0x208   : > { %v987_v61 = vpop.f32.mrb[7].mxu1 }
 0x209   : > { %v719_v62 = vadd.f32 %v985_v58, %v573_v53  ;;  %v988_v63 = vadd.f32 %v987_v61, %v986_v59 }
 0x20b   : > { %v740_v0 = vadd.f32 %v928_v60, %v719_v62  ;;  %v722_v1 = vadd.f32 %v988_v63, %v576_v55 }
 0x20d   : > { %745 = vst.msk [vmem:[%s271_s7] sm:$0xff] %vm744_vm2, %v740_v0  ;;  %v741_v2 = vadd.f32 %v928_v60, %v722_v1  ;;  %v989_v3 = vpop.f32.mrb[8].mxu1 }
 0x20e   : > { %v990_v4 = vpop.f32.mrb[9].mxu1 }
 0x20f   : > { %746 = vst.msk [vmem:[%s271_s7 + $0x8] sm:$0xff] %vm744_vm2, %v741_v2  ;;  %v991_v5 = vadd.f32 %v990_v4, %v989_v3  ;;  %v992_v6 = vpop.f32.mrb[10].mxu1 }
 0x210   : > { %v993_v7 = vpop.f32.mrb[11].mxu1 }
 0x211   : > { %v727_v8 = vadd.f32 %v999_v52, %v991_v5  ;;  %v994_v9 = vadd.f32 %v993_v7, %v992_v6 }
 0x213   : > { %v742_v10 = vadd.f32 %v928_v60, %v727_v8  ;;  %v730_v11 = vadd.f32 %v1000_v54, %v994_v9 }
 0x215   : > { %747 = vst.msk [vmem:[%s271_s7 + $0x10] sm:$0xff] %vm744_vm2, %v742_v10  ;;  %v743_v12 = vadd.f32 %v928_v60, %v730_v11 }
 0x217   : > { %748 = vst.msk [vmem:[%s271_s7 + $0x18] sm:$0xff] %vm744_vm2, %v743_v12 }
 0x218   : > { %1110 = shalt.err (!%p1107_p5)
}
 0x219   : > { %s1111_s25 = scalar_lea.hbm %s1380_s13, 512  ;;  %s1115_s27 = scalar_lea.hbm %s1439_s5, 1024 }
 0x21a   : > { %p1112_p6 = scmp.ne.s32.totalorder %s1380_s13, %s1111_s25  ;;  %p1116_p10 = scmp.lt.u32.totalorder %s1380_s13, %s1439_s5 }
 0x21b   : > { %p1117_p11 = scmp.lt.u32.totalorder %s1115_s27, %s1111_s25  ;;  %p1119_p13 = scmp.lt.u32.totalorder %s1111_s25, %s1380_s13 }
 0x21c   : > { %p1113_p7 = pnand %p1112_p6, %p1250_p4 }
 0x21d   : > { %p1118_p12 = por %p1117_p11, %p1116_p10 }
 0x21e   : > { %p1114_p9 = pneg %p1113_p7 }
 0x21f   : > { %p1120_p0 = por %p1119_p13, %p1118_p12 }
 0x221   : > { %p1121_p1 = pnand %p1120_p0, %p1114_p9 }
 0x223   : > { %1124 = shalt.err (!%p1121_p1)
}
 0x224   : > { %s1178_s8 = smov 128   ;;  %s1179_s11 = smov 8  }
 0x225   : > { %1002 = dma.vmem_to_hbm [thread:$0]  (%p1250_p4), %s1382_s10, 512, %s1380_s13, %s1388_s21, %s1178_s8, %s1178_s8, %s1179_s11  }
 0x226 PF: > { %p1008_p2 = scmp.ge.s32.totalorder %s1175_s23, 2  ;;  %s779_s12 = sand.u32 1, %s1155_s18  }
 0x227   : > { %s780_s14 = scalar_lea.sflag [#allocation3], %s779_s12 }
 0x228   : > { %p1005_p3 = pnand %p1008_p2, %p1257_p8 }
 0x22a   : > { %1150 = dma.done.wait (!%p1005_p3), %s780_s14, 512  }
 0x22b   : > { %1152 = vsyncadd (!%p1005_p3), %s780_s14, 4294966784  ;;  %s18_s23 = sadd.s32 1, %s1175_s23   ;;  %s1442_s18 = smov %s1159_s19 }
 0x22c   : > { %p15_p5 = scmp.ge.s32.totalorder %s18_s23, 4   ;;  %s1443_s19 = smov %s1163_s20 }
 0x22d   : > { %s1444_s20 = smov %s1263_s6  ;;  %s1445_s21 = smov %s1171_s22 }
 0x22e   : > { %s1446_s22 = smov %s1448_s26  ;;  %17 = sbr.rel (!%p15_p5) target bundleno = 4 (0x4), region = 84 }
 0x235   :  { %785 = vsyncpa [#allocation3], 1 }
 0x236   :  { %787 = vsyncpa [#allocation3 + $0x1], 1 }

// kernel: cross_attention_temporal_3dv2.4
= control target key start
LH: loop header
LB: loop body
LE: loop exit
PB: predicated region body
PF: predicated region fallthrough
CT: control target
= control target key end

     0   :  { %s4454_s12 = smov 0   ;;  %s4456_s13 = smov 0   ;;  %s5747_s0 = inlined_call_operand.vmem [shape: bf16[2,32,768], index: 0, kind: input, shape index: {}, may-alias: {0,1,2}]   ;;  %s5748_s1 = inlined_call_operand.vmem [shape: bf16[2,32,768], index: 1, kind: input, shape index: {}, may-alias: {0,1,2}]   ;;  %s5749_s2 = inlined_call_operand.vmem [shape: bf16[2,32,768], index: 2, kind: input, shape index: {}, may-alias: {0,1,2}]   ;;  %s5750_s3 = inlined_call_operand.vmem [shape: bf16[2,32,256], index: 3, kind: output, shape index: {}]  }
   0x1   :  { %s4458_s14 = smov 0   ;;  %s4460_s15 = smov 0  }
   0x2   :  { %s4462_s16 = smov 0  }
   0x3 LB: > { %s32_s17 = sadd.s32 1, %s4421_s15  ;;  %p48_p1 = scmp.ne.s32.totalorder %s4413_s13, %s4409_s12  ;;  %s4425_s16 = sphi %s4462_s16, %s13_s16   ;;  %s4421_s15 = sphi %s4460_s15, %s5893_s15   ;;  %s4417_s14 = sphi %s4458_s14, %s5892_s14   ;;  %s4413_s13 = sphi %s4456_s13, %s5891_s13   ;;  %s4409_s12 = sphi %s4454_s12, %s5890_s12  }
   0x4   : > { %p34_p0 = scmp.ge.s32.totalorder %s32_s17, 2  ;;  %p49_p2 = scmp.eq.s32.totalorder %s4425_s16, 0 }
   0x5   : > { %s41_s20 = sadd.s32 1, %s4413_s13  ;;  %p3670_p5 = scmp.ge.s32.totalorder %s4425_s16, 2 }
   0x6   : > { %s5895_s17 = smov (%p34_p0, %s32_s17), 0  ;;  %p4485_p3 = por %p49_p2, %p48_p1 }
   0x7   : > { %s36_s19 = ssub.s32 %s4421_s15, %s5895_s17  ;;  %158 = sbr.rel (%p3670_p5) target bundleno = 35 (0x23), region = 16 }
   0x8   : > { %p39_p4 = scmp.eq.s32.totalorder %s36_s19, 0 }
   0xa   : > { %s4493_s21 = scalar_select %p39_p4, %s4413_s13, %s41_s20  }
   0xe   : > { %161 = sbr.rel (!%p4485_p3) target bundleno = 21 (0x15), region = 20  ;;  %s163_s22 = sand.u32 (%p4485_p3), 1, %s4413_s13  }
   0xf   : > { %s4072_s23 = smul.u32 (%p4485_p3), 96, %s4421_s15  ;;  %s3671_s24 = sshll.u32 (%p4485_p3), %s163_s22, 5 }
  0x10   : > { %s165_s28 = scalar_lea.vmem (%p4485_p3), [#allocation6], %s3671_s24 }
  0x11   : > { %s171_s27 = scalar_lea.vmem (%p4485_p3), %s5747_s0, %s4072_s23 }
  0x12   : > { %v205_v0 = vld [vmem:[%s171_s27] sm:$0xff] (%p4485_p3)  ;;  %v207_v1 = vld [vmem:[%s171_s27 + $0x18] sm:$0xff] (%p4485_p3)  ;;  %v209_v2 = vld [vmem:[%s171_s27 + $0x30] sm:$0xff] (%p4485_p3) }
  0x13   : > { %206 = vst [vmem:[%s165_s28] sm:$0xff] (%p4485_p3), %v205_v0  ;;  %208 = vst [vmem:[%s165_s28 + $0x8] sm:$0xff] (%p4485_p3), %v207_v1  ;;  %v211_v3 = vld [vmem:[%s171_s27 + $0x48] sm:$0xff] (%p4485_p3) }
  0x14   : > { %210 = vst [vmem:[%s165_s28 + $0x10] sm:$0xff] (%p4485_p3), %v209_v2  ;;  %212 = vst [vmem:[%s165_s28 + $0x18] sm:$0xff] (%p4485_p3), %v211_v3 }
  0x15 PF: > { %218 = sbr.rel (!%p4485_p3) target bundleno = 28 (0x1c), region = 58  ;;  %s220_s29 = sand.u32 (%p4485_p3), 1, %s4413_s13  }
  0x16   : > { %s3674_s30 = smul.u32 (%p4485_p3), 96, %s4421_s15  ;;  %s3673_s4 = sshll.u32 (%p4485_p3), %s220_s29, 5 }
  0x17   : > { %s222_s8 = scalar_lea.vmem (%p4485_p3), [#allocation7], %s3673_s4 }
  0x18   : > { %s3569_s7 = scalar_lea.vmem (%p4485_p3), %s5748_s1, %s3674_s30 }
  0x19   : > { %v3675_v4 = vld [vmem:[%s3569_s7 + $0x8] sm:$0xff] (%p4485_p3)  ;;  %v3676_v5 = vld [vmem:[%s3569_s7 + $0x20] sm:$0xff] (%p4485_p3)  ;;  %v3677_v6 = vld [vmem:[%s3569_s7 + $0x38] sm:$0xff] (%p4485_p3) }
  0x1a   : > { %264 = vst [vmem:[%s222_s8] sm:$0xff] (%p4485_p3), %v3675_v4  ;;  %266 = vst [vmem:[%s222_s8 + $0x8] sm:$0xff] (%p4485_p3), %v3676_v5  ;;  %v3678_v7 = vld [vmem:[%s3569_s7 + $0x50] sm:$0xff] (%p4485_p3) }
  0x1b   : > { %268 = vst [vmem:[%s222_s8 + $0x10] sm:$0xff] (%p4485_p3), %v3677_v6  ;;  %270 = vst [vmem:[%s222_s8 + $0x18] sm:$0xff] (%p4485_p3), %v3678_v7 }
  0x1c PF: > { %276 = sbr.rel (!%p4485_p3) target bundleno = 35 (0x23), region = 96  ;;  %s278_s9 = sand.u32 (%p4485_p3), 1, %s4413_s13  }
  0x1d   : > { %s3680_s10 = smul.u32 (%p4485_p3), 96, %s4421_s15  ;;  %s3679_s11 = sshll.u32 (%p4485_p3), %s278_s9, 5 }
  0x1e   : > { %s280_s23 = scalar_lea.vmem (%p4485_p3), [#allocation8], %s3679_s11 }
  0x1f   : > { %s3577_s22 = scalar_lea.vmem (%p4485_p3), %s5749_s2, %s3680_s10 }
  0x20   : > { %v3681_v8 = vld [vmem:[%s3577_s22 + $0x10] sm:$0xff] (%p4485_p3)  ;;  %v3682_v9 = vld [vmem:[%s3577_s22 + $0x28] sm:$0xff] (%p4485_p3)  ;;  %v3683_v10 = vld [vmem:[%s3577_s22 + $0x40] sm:$0xff] (%p4485_p3) }
  0x21   : > { %322 = vst [vmem:[%s280_s23] sm:$0xff] (%p4485_p3), %v3681_v8  ;;  %324 = vst [vmem:[%s280_s23 + $0x8] sm:$0xff] (%p4485_p3), %v3682_v9  ;;  %v3684_v11 = vld [vmem:[%s3577_s22 + $0x58] sm:$0xff] (%p4485_p3) }
  0x22   : > { %326 = vst [vmem:[%s280_s23 + $0x10] sm:$0xff] (%p4485_p3), %v3683_v10  ;;  %328 = vst [vmem:[%s280_s23 + $0x18] sm:$0xff] (%p4485_p3), %v3684_v11 }
  0x23 PF: > { %p3685_p6 = scmp.ge.s32.totalorder %s4425_s16, 1  ;;  %p333_p7 = scmp.lt.s32.totalorder %s4425_s16, 3 }
  0x25   : > { %p334_p8 = pnand %p3685_p6, %p333_p7 }
  0x27   : > { %337 = sbr.rel (%p334_p8) target bundleno = 1379 (0x563), region = 134 }
  0x2e   : > { %s340_s18 = sand.u32 1, %s4409_s12   ;;  %vm475_vm0 = vcmask 261120   ;;  %s4427_s27 = smov 96   ;;  %vm410_vm1 = vcmask 7168   ;;  %vm3474_vm2 = vcmask 523264   ;;  %vm3479_vm3 = vcmask 785408  }
  0x2f   : > { %s4520_s24 = sshll.u32 %s340_s18, 5  ;;  %s4428_s12 = smov 64  }
  0x30   : > { %s4523_s25 = scalar_lea.vmem [#allocation7], %s4520_s24  ;;  %s342_s26 = scalar_lea.vmem [#allocation6], %s4520_s24 }
  0x31   : > { %v4182_v12 = vld [vmem:[%s4523_s25] ss:$8 sps:$4 sm:$0xff]   ;;  %v510_v13 = vld [vmem:[%s342_s26 + $0x10] sm:$0xff]  ;;  %v511_v14 = vld [vmem:[%s342_s26 + $0x18] sm:$0xff]  ;;  %s4429_s28 = smov 32   ;;  %s4580_s29 = scalar_lea.vmem [#allocation8], %s4520_s24 }
  0x32   : > { %v508_v15 = vld [vmem:[%s342_s26] sm:$0xff]  ;;  %961 = vrot.lane.b32.xlu0 %v4182_v12, %s4427_s27  ;;  %4056 = vmatprep.subr.msk.bf16.mxu0 %vm475_vm0, %v4182_v12  ;;  %v3692_v16 = vcombine.low %v510_v13, %v511_v14  ;;  %v555_v17 = vrot.slane %v510_v13, 4  ;;  %v556_v18 = vrot.slane %v511_v14, 4  ;;  %v665_v19 = vsel %vm475_vm0, %v4182_v12, 0  ;;  %v509_v20 = vld [vmem:[%s342_s26 + $0x8] sm:$0xff]  ;;  %p394_p9 = scmp.lt.s32.totalorder %s4417_s14, 1 }
  0x33   : > { %3865 = vmatpush3.bf16.xpose.msra.mxu0 %v665_v19  ;;  %v3691_v21 = vcombine.low %v508_v15, %v509_v20  ;;  %v553_v22 = vrot.slane %v508_v15, 4  ;;  %v554_v23 = vrot.slane %v509_v20, 4  ;;  %v4186_v24 = vld [vmem:[%s4523_s25 + $0x10] ss:$8 sps:$4 sm:$0xff]   ;;  %v637_v30 = vld [vmem:[%s4523_s25] sm:$0xff]  ;;  %v638_v31 = vld [vmem:[%s4523_s25 + $0x8] sm:$0xff] }
  0x34   : > { %v3694_v25 = vcombine.low %v555_v17, %v556_v18  ;;  %528 = vrot.lane.b32.xlu1 %v3692_v16, %s4427_s27  ;;  %525 = vst.msk [vmem:[#allocation2 + $0x8] sm:$0xff] %vm475_vm0, %v3692_v16  ;;  %4057 = vmatprep.subr.msk.bf16.mxu0 %vm475_vm0, %v4186_v24  ;;  %v668_v27 = vsel %vm475_vm0, %v4186_v24, 0  ;;  %v4551_v32 = vcombine.high %v637_v30, %v638_v31  ;;  %v4560_v33 = vld [vmem:[%s4523_s25 + $0x14] ss:$8 sps:$4 sm:$0xff]   ;;  %v4583_v34 = vld [vmem:[%s4580_s29] ss:$8 sps:$4 sm:$0xff]  }
  0x35   : > { %v3693_v26 = vcombine.low %v553_v22, %v554_v23  ;;  %524 = vst.msk [vmem:[#allocation2] sm:$0xff] %vm475_vm0, %v3691_v21  ;;  %v4588_v35 = vld [vmem:[%s4580_s29 + $0x10] ss:$8 sps:$4 sm:$0xff]   ;;  %s5897_s14 = smov (!%p394_p9, %s4417_s14), 1 }
  0x36   : > { %567 = vst.msk [vmem:[#allocation2 + $0x48] sm:$0xff] %vm475_vm0, %v3694_v25  ;;  %526 = vrot.lane.b32.xlu0 %v3691_v21, %s4427_s27  ;;  %v1883_v19 = vsel %vm475_vm0, %v4551_v32, 0  ;;  %s3763_s30 = sshll.u32 %s5897_s14, 5 }
  0x37   : > { %566 = vst.msk [vmem:[#allocation2 + $0x40] sm:$0xff] %vm475_vm0, %v3693_v26  ;;  %s402_s14 = scalar_lea.vmem %s5750_s3, %s3763_s30 }
  0x38   : > { %963 = vrot.lane.b32.xlu1 %v4186_v24, %s4427_s27 }
  0x3a   : > { %1264 = vrot.lane.b32.xlu0 %v4182_v12, %s4428_s12 }
  0x3b   : > { %3867 = vmatpush3.bf16.xpose.msra.mxu0 %v668_v27  ;;  %v646_v29 = vld [vmem:[#allocation2 + $0x8] sm:$0xff] }
  0x3c   : > { %v645_v28 = vld [vmem:[#allocation2] sm:$0xff]  ;;  %535 = vrot.lane.b32.xlu1 %v3691_v21, %s4428_s12 }
  0x3d   : > { %3868 = vmatprep.mubr.msk.bf16.mxu0 %vm475_vm0, %v645_v28  ;;  %v1886_v28 = vsel %vm475_vm0, %v4560_v33, 0 }
  0x3e   : > { %537 = vrot.lane.b32.xlu0 %v3692_v16, %s4428_s12 }
  0x40   : > { %1266 = vrot.lane.b32.xlu1 %v4186_v24, %s4428_s12 }
  0x42   : > { %3869 = vmatmul.mubr.msk.bf16.vlgmr.msra.gmra.mrb[0].mxu0 %vm475_vm0, %v646_v29  ;;  %1567 = vrot.lane.b32.xlu0 %v4182_v12, %s4429_s28 }
  0x44   : > { %544 = vrot.lane.b32.xlu1 %v3691_v21, %s4429_s28 }
  0x46   : > { %546 = vrot.lane.b32.xlu0 %v3692_v16, %s4429_s28 }
  0x48   : > { %1569 = vrot.lane.b32.xlu1 %v4186_v24, %s4429_s28 }
  0x4a   : > { %2177 = vrot.lane.b32.xlu0 %v4551_v32, %s4427_s27 }
  0x4c   : > { %568 = vrot.lane.b32.xlu1 %v508_v15, %s4427_s27 }
  0x4e   : > { %570 = vrot.lane.b32.xlu0 %v509_v20, %s4427_s27 }
  0x50   : > { %572 = vrot.lane.b32.xlu1 %v510_v13, %s4427_s27 }
  0x52   : > { %574 = vrot.lane.b32.xlu0 %v511_v14, %s4427_s27 }
  0x54   : > { %2179 = vrot.lane.b32.xlu1 %v4560_v33, %s4427_s27 }
  0x56   : > { %2480 = vrot.lane.b32.xlu0 %v4551_v32, %s4428_s12 }
  0x58   : > { %591 = vrot.lane.b32.xlu1 %v508_v15, %s4428_s12 }
  0x5a   : > { %593 = vrot.lane.b32.xlu0 %v509_v20, %s4428_s12 }
  0x5c   : > { %595 = vrot.lane.b32.xlu1 %v510_v13, %s4428_s12 }
  0x5e   : > { %597 = vrot.lane.b32.xlu0 %v511_v14, %s4428_s12 }
  0x60   : > { %2482 = vrot.lane.b32.xlu1 %v4560_v33, %s4428_s12 }
  0x62   : > { %2783 = vrot.lane.b32.xlu0 %v4551_v32, %s4429_s28 }
  0x64   : > { %614 = vrot.lane.b32.xlu1 %v508_v15, %s4429_s28 }
  0x66   : > { %616 = vrot.lane.b32.xlu0 %v509_v20, %s4429_s28  ;;  %v1868_v20 = vld [vmem:[#allocation2 + $0x40] sm:$0xff] }
  0x68   : > { %618 = vrot.lane.b32.xlu1 %v510_v13, %s4429_s28 }
  0x6a   : > { %620 = vrot.lane.b32.xlu0 %v511_v14, %s4429_s28 }
  0x6c   : > { %2785 = vrot.lane.b32.xlu1 %v4560_v33, %s4429_s28 }
  0x6e   : > { %1194 = vrot.lane.b32.xlu0 %v4583_v34, %s4427_s27 }
  0x70   : > { %1196 = vrot.lane.b32.xlu1 %v4588_v35, %s4427_s27 }
  0xa4   : > { %v962_v36 = vpop.permute.xlu0 %961 }
  0xa5   : > { %4058 = vmatprep.subr.msk.bf16.mxu0 %vm475_vm0, %v962_v36  ;;  %v972_v37 = vsel %vm475_vm0, %v962_v36, 0 }
  0xa6   : > { %3889 = vmatpush3.bf16.xpose.msra.mxu0 %v972_v37  ;;  %v529_v38 = vpop.permute.xlu1 %528  ;;  %v1869_v37 = vld [vmem:[#allocation2 + $0x48] sm:$0xff] }
  0xa7   : > { %534 = vst.msk [vmem:[#allocation2 + $0x18] sm:$0xff] %vm475_vm0, %v529_v38 }
  0xa8   : > { %v527_v39 = vpop.permute.xlu0 %526 }
  0xa9   : > { %533 = vst.msk [vmem:[#allocation2 + $0x10] sm:$0xff] %vm475_vm0, %v527_v39 }
  0xaa   : > { %v964_v40 = vpop.permute.xlu1 %963 }
  0xab   : > { %4059 = vmatprep.subr.msk.bf16.mxu0 %vm475_vm0, %v964_v40  ;;  %v975_v41 = vsel %vm475_vm0, %v964_v40, 0 }
  0xac   : > { %v1265_v42 = vpop.permute.xlu0 %1264 }
  0xad   : > { %v1275_v47 = vsel %vm475_vm0, %v1265_v42, 0 }
  0xae   : > { %3891 = vmatpush3.bf16.xpose.msra.mxu0 %v975_v41  ;;  %v536_v43 = vpop.permute.xlu1 %535  ;;  %v960_v48 = vld [vmem:[#allocation2 + $0x18] sm:$0xff] }
  0xaf   : > { %4060 = vmatprep.subr.msk.bf16.mxu0 %vm475_vm0, %v1265_v42  ;;  %542 = vst.msk [vmem:[#allocation2 + $0x20] sm:$0xff] %vm475_vm0, %v536_v43 }
  0xb0   : > { %v959_v44 = vld [vmem:[#allocation2 + $0x10] sm:$0xff]  ;;  %v538_v45 = vpop.permute.xlu0 %537 }
  0xb1   : > { %3892 = vmatprep.mubr.msk.bf16.mxu0 %vm475_vm0, %v959_v44  ;;  %543 = vst.msk [vmem:[#allocation2 + $0x28] sm:$0xff] %vm475_vm0, %v538_v45 }
  0xb2   : > { %v1267_v46 = vpop.permute.xlu1 %1266 }
  0xb3   : > { %v1278_v54 = vsel %vm475_vm0, %v1267_v46, 0 }
  0xb4   : > { %v1568_v49 = vpop.permute.xlu0 %1567 }
  0xb5   : > { %3893 = vmatmul.mubr.msk.bf16.vlgmr.msra.gmra.mrb[4].mxu0 %vm475_vm0, %v960_v48  ;;  %v1578_v62 = vsel %vm475_vm0, %v1568_v49, 0 }
  0xb6   : > { %3913 = vmatpush3.bf16.xpose.msra.mxu0 %v1275_v47  ;;  %v1262_v50 = vld [vmem:[#allocation2 + $0x20] sm:$0xff]  ;;  %v545_v51 = vpop.permute.xlu1 %544 }
  0xb7   : > { %4061 = vmatprep.subr.msk.bf16.mxu0 %vm475_vm0, %v1267_v46  ;;  %3916 = vmatprep.mubr.msk.bf16.mxu0 %vm475_vm0, %v1262_v50  ;;  %551 = vst.msk [vmem:[#allocation2 + $0x30] sm:$0xff] %vm475_vm0, %v545_v51 }
  0xb8   : > { %v547_v52 = vpop.permute.xlu0 %546  ;;  %v1263_v60 = vld [vmem:[#allocation2 + $0x28] sm:$0xff] }
  0xb9   : > { %552 = vst.msk [vmem:[#allocation2 + $0x38] sm:$0xff] %vm475_vm0, %v547_v52 }
  0xba   : > { %v1570_v53 = vpop.permute.xlu1 %1569 }
  0xbb   : > { %v1581_v8 = vsel %vm475_vm0, %v1570_v53, 0 }
  0xbc   : > { %v4611_v55 = vpop.permute.xlu0 %2177 }
  0xbd   : > { %v2188_v38 = vsel %vm475_vm0, %v4611_v55, 0 }
  0xbe   : > { %3915 = vmatpush3.bf16.xpose.msra.mxu0 %v1278_v54  ;;  %v569_v56 = vpop.permute.xlu1 %568  ;;  %v1565_v63 = vld [vmem:[#allocation2 + $0x30] sm:$0xff] }
  0xbf   : > { %4062 = vmatprep.subr.msk.bf16.mxu0 %vm475_vm0, %v1568_v49  ;;  %v576_v57 = vrot.slane %v569_v56, 4 }
  0xc0   : > { %v571_v58 = vpop.permute.xlu0 %570  ;;  %v1566_v17 = vld [vmem:[#allocation2 + $0x38] sm:$0xff] }
  0xc1   : > { %v577_v59 = vrot.slane %v571_v58, 4  ;;  %v4430_v58 = vmov -inf  }
  0xc2   : > { %v573_v61 = vpop.permute.xlu1 %572  ;;  %413 = vst.msk [vmem:[#allocation3 + $0x10] sm:$0xff] %vm410_vm1, %v4430_v58  ;;  %411 = vst.msk [vmem:[#allocation3] sm:$0xff] %vm410_vm1, %v4430_v58 }
  0xc3   : > { %v3695_v0 = vcombine.low %v576_v57, %v577_v59  ;;  %v578_v1 = vrot.slane %v573_v61, 4  ;;  %412 = vst.msk [vmem:[#allocation3 + $0x8] sm:$0xff] %vm410_vm1, %v4430_v58  ;;  %414 = vst.msk [vmem:[#allocation3 + $0x18] sm:$0xff] %vm410_vm1, %v4430_v58  ;;  %v4431_v59 = vmov 0  }
  0xc4   : > { %v575_v2 = vpop.permute.xlu0 %574  ;;  %415 = vst.msk [vmem:[#allocation3 + $0x20] sm:$0xff] %vm410_vm1, %v4430_v58  ;;  %416 = vst.msk [vmem:[#allocation3 + $0x28] sm:$0xff] %vm410_vm1, %v4430_v58  ;;  %4120 = vset.pattern.permute.xlu1 %v4431_v59  ;;  %4121 = vset.pattern.permute.xlu0 %v4431_v59 }
  0xc5   : > { %3917 = vmatmul.mubr.msk.bf16.vlgmr.msra.gmra.mrb[8].mxu0 %vm475_vm0, %v1263_v60  ;;  %589 = vst.msk [vmem:[#allocation2 + $0x50] sm:$0xff] %vm475_vm0, %v3695_v0  ;;  %v579_v3 = vrot.slane %v575_v2, 4  ;;  %v4432_v60 = vmov 0.0  }
  0xc6   : > { %3937 = vmatpush3.bf16.xpose.msra.mxu0 %v1578_v62  ;;  %3940 = vmatprep.mubr.msk.bf16.mxu0 %vm475_vm0, %v1565_v63  ;;  %v2180_v4 = vpop.permute.xlu1 %2179  ;;  %417 = vst.msk [vmem:[#allocation3 + $0x30] sm:$0xff] %vm410_vm1, %v4430_v58  ;;  %418 = vst.msk [vmem:[#allocation3 + $0x38] sm:$0xff] %vm410_vm1, %v4430_v58 }
  0xc7   : > { %4063 = vmatprep.subr.msk.bf16.mxu0 %vm475_vm0, %v1570_v53  ;;  %v3696_v5 = vcombine.low %v578_v1, %v579_v3  ;;  %419 = vst.msk [vmem:[#allocation3 + $0x40] sm:$0xff] %vm410_vm1, %v4430_v58  ;;  %420 = vst.msk [vmem:[#allocation3 + $0x48] sm:$0xff] %vm410_vm1, %v4430_v58 }
  0xc8   : > { %v2481_v6 = vpop.permute.xlu0 %2480  ;;  %421 = vst.msk [vmem:[#allocation3 + $0x50] sm:$0xff] %vm410_vm1, %v4430_v58  ;;  %422 = vst.msk [vmem:[#allocation3 + $0x58] sm:$0xff] %vm410_vm1, %v4430_v58 }
  0xc9   : > { %590 = vst.msk [vmem:[#allocation2 + $0x58] sm:$0xff] %vm475_vm0, %v3696_v5  ;;  %v2491_v41 = vsel %vm475_vm0, %v2481_v6, 0  ;;  %478 = vst.msk [vmem:[#allocation5 + $0x10] sm:$0xff] %vm475_vm0, %v4432_v60 }
  0xca   : > { %v592_v7 = vpop.permute.xlu1 %591  ;;  %423 = vst.msk [vmem:[#allocation3 + $0x60] sm:$0xff] %vm410_vm1, %v4430_v58  ;;  %424 = vst.msk [vmem:[#allocation3 + $0x68] sm:$0xff] %vm410_vm1, %v4430_v58 }
  0xcb   : > { %v599_v9 = vrot.slane %v592_v7, 4  ;;  %425 = vst.msk [vmem:[#allocation3 + $0x70] sm:$0xff] %vm410_vm1, %v4430_v58  ;;  %426 = vst.msk [vmem:[#allocation3 + $0x78] sm:$0xff] %vm410_vm1, %v4430_v58 }
  0xcc   : > { %v594_v10 = vpop.permute.xlu0 %593  ;;  %v2175_v39 = vld [vmem:[#allocation2 + $0x50] sm:$0xff]  ;;  %427 = vst.msk [vmem:[#allocation3 + $0x80] sm:$0xff] %vm410_vm1, %v4430_v58  ;;  %428 = vst.msk [vmem:[#allocation3 + $0x88] sm:$0xff] %vm410_vm1, %v4430_v58 }
  0xcd   : > { %v600_v11 = vrot.slane %v594_v10, 4  ;;  %429 = vst.msk [vmem:[#allocation3 + $0x90] sm:$0xff] %vm410_vm1, %v4430_v58  ;;  %430 = vst.msk [vmem:[#allocation3 + $0x98] sm:$0xff] %vm410_vm1, %v4430_v58 }
  0xce   : > { %3939 = vmatpush3.bf16.xpose.msra.mxu0 %v1581_v8  ;;  %v596_v12 = vpop.permute.xlu1 %595  ;;  %431 = vst.msk [vmem:[#allocation3 + $0xa0] sm:$0xff] %vm410_vm1, %v4430_v58  ;;  %432 = vst.msk [vmem:[#allocation3 + $0xa8] sm:$0xff] %vm410_vm1, %v4430_v58 }
  0xcf   : > { %4064 = vmatprep.subr.msk.bf16.mxu0 %vm475_vm0, %v4551_v32  ;;  %v3697_v13 = vcombine.low %v599_v9, %v600_v11  ;;  %v601_v14 = vrot.slane %v596_v12, 4  ;;  %433 = vst.msk [vmem:[#allocation3 + $0xb0] sm:$0xff] %vm410_vm1, %v4430_v58  ;;  %434 = vst.msk [vmem:[#allocation3 + $0xb8] sm:$0xff] %vm410_vm1, %v4430_v58 }
  0xd0   : > { %v598_v15 = vpop.permute.xlu0 %597  ;;  %v2176_v40 = vld [vmem:[#allocation2 + $0x58] sm:$0xff]  ;;  %435 = vst.msk [vmem:[#allocation3 + $0xc0] sm:$0xff] %vm410_vm1, %v4430_v58  ;;  %436 = vst.msk [vmem:[#allocation3 + $0xc8] sm:$0xff] %vm410_vm1, %v4430_v58 }
  0xd1   : > { %612 = vst.msk [vmem:[#allocation2 + $0x60] sm:$0xff] %vm475_vm0, %v3697_v13  ;;  %v602_v16 = vrot.slane %v598_v15, 4  ;;  %476 = vst.msk [vmem:[#allocation5] sm:$0xff] %vm475_vm0, %v4432_v60 }
  0xd2   : > { %v2483_v18 = vpop.permute.xlu1 %2482  ;;  %437 = vst.msk [vmem:[#allocation3 + $0xd0] sm:$0xff] %vm410_vm1, %v4430_v58  ;;  %438 = vst.msk [vmem:[#allocation3 + $0xd8] sm:$0xff] %vm410_vm1, %v4430_v58 }
  0xd3   : > { %v3698_v21 = vcombine.low %v601_v14, %v602_v16  ;;  %v2494_v43 = vsel %vm475_vm0, %v2483_v18, 0  ;;  %439 = vst.msk [vmem:[#allocation3 + $0xe0] sm:$0xff] %vm410_vm1, %v4430_v58  ;;  %440 = vst.msk [vmem:[#allocation3 + $0xe8] sm:$0xff] %vm410_vm1, %v4430_v58  ;;  %v721_v14 = vld [vmem:[#allocation3 + $0x10] sm:$0xff] }
  0xd4   : > { %v2784_v22 = vpop.permute.xlu0 %2783  ;;  %441 = vst.msk [vmem:[#allocation3 + $0xf0] sm:$0xff] %vm410_vm1, %v4430_v58  ;;  %442 = vst.msk [vmem:[#allocation3 + $0xf8] sm:$0xff] %vm410_vm1, %v4430_v58 }
  0xd5   : > { %3941 = vmatmul.mubr.msk.bf16.vlgmr.msra.gmra.mrb[12].mxu0 %vm475_vm0, %v1566_v17  ;;  %613 = vst.msk [vmem:[#allocation2 + $0x68] sm:$0xff] %vm475_vm0, %v3698_v21  ;;  %v2794_v45 = vsel %vm475_vm0, %v2784_v22, 0  ;;  %477 = vst.msk [vmem:[#allocation5 + $0x8] sm:$0xff] %vm475_vm0, %v4432_v60 }
  0xd6   : > { %3961 = vmatpush3.bf16.xpose.msra.mxu0 %v1883_v19  ;;  %3964 = vmatprep.mubr.msk.bf16.mxu0 %vm475_vm0, %v1868_v20  ;;  %v615_v23 = vpop.permute.xlu1 %614  ;;  %443 = vst.msk [vmem:[#allocation4] sm:$0xff] %vm410_vm1, %v4432_v60  ;;  %444 = vst.msk [vmem:[#allocation4 + $0x8] sm:$0xff] %vm410_vm1, %v4432_v60  ;;  %v719_v19 = vld [vmem:[#allocation3] sm:$0xff] }
  0xd7   : > { %4065 = vmatprep.subr.msk.bf16.mxu0 %vm475_vm0, %v4560_v33  ;;  %v622_v24 = vrot.slane %v615_v23, 4  ;;  %v2191_v33 = vsel %vm475_vm0, %v2180_v4, 0  ;;  %445 = vst.msk [vmem:[#allocation4 + $0x10] sm:$0xff] %vm410_vm1, %v4432_v60  ;;  %446 = vst.msk [vmem:[#allocation4 + $0x18] sm:$0xff] %vm410_vm1, %v4432_v60 }
  0xd8   : > { %v617_v25 = vpop.permute.xlu0 %616  ;;  %v2478_v42 = vld [vmem:[#allocation2 + $0x60] sm:$0xff]  ;;  %447 = vst.msk [vmem:[#allocation4 + $0x20] sm:$0xff] %vm410_vm1, %v4432_v60  ;;  %448 = vst.msk [vmem:[#allocation4 + $0x28] sm:$0xff] %vm410_vm1, %v4432_v60 }
  0xd9   : > { %v623_v26 = vrot.slane %v617_v25, 4  ;;  %449 = vst.msk [vmem:[#allocation4 + $0x30] sm:$0xff] %vm410_vm1, %v4432_v60  ;;  %450 = vst.msk [vmem:[#allocation4 + $0x38] sm:$0xff] %vm410_vm1, %v4432_v60 }
  0xda   : > { %v619_v27 = vpop.permute.xlu1 %618  ;;  %451 = vst.msk [vmem:[#allocation4 + $0x40] sm:$0xff] %vm410_vm1, %v4432_v60  ;;  %452 = vst.msk [vmem:[#allocation4 + $0x48] sm:$0xff] %vm410_vm1, %v4432_v60 }
  0xdb   : > { %v3699_v29 = vcombine.low %v622_v24, %v623_v26  ;;  %v624_v30 = vrot.slane %v619_v27, 4  ;;  %453 = vst.msk [vmem:[#allocation4 + $0x50] sm:$0xff] %vm410_vm1, %v4432_v60  ;;  %454 = vst.msk [vmem:[#allocation4 + $0x58] sm:$0xff] %vm410_vm1, %v4432_v60 }
  0xdc   : > { %v621_v31 = vpop.permute.xlu0 %620  ;;  %v2479_v44 = vld [vmem:[#allocation2 + $0x68] sm:$0xff]  ;;  %455 = vst.msk [vmem:[#allocation4 + $0x60] sm:$0xff] %vm410_vm1, %v4432_v60  ;;  %456 = vst.msk [vmem:[#allocation4 + $0x68] sm:$0xff] %vm410_vm1, %v4432_v60 }
  0xdd   : > { %635 = vst.msk [vmem:[#allocation2 + $0x70] sm:$0xff] %vm475_vm0, %v3699_v29  ;;  %v625_v32 = vrot.slane %v621_v31, 4  ;;  %479 = vst.msk [vmem:[#allocation5 + $0x18] sm:$0xff] %vm475_vm0, %v4432_v60 }
  0xde   : > { %3963 = vmatpush3.bf16.xpose.msra.mxu0 %v1886_v28  ;;  %v2786_v47 = vpop.permute.xlu1 %2785  ;;  %457 = vst.msk [vmem:[#allocation4 + $0x70] sm:$0xff] %vm410_vm1, %v4432_v60  ;;  %458 = vst.msk [vmem:[#allocation4 + $0x78] sm:$0xff] %vm410_vm1, %v4432_v60  ;;  %v722_v28 = vld [vmem:[#allocation3 + $0x18] sm:$0xff] }
  0xdf   : > { %4066 = vmatprep.subr.msk.bf16.mxu0 %vm475_vm0, %v4611_v55  ;;  %v3700_v36 = vcombine.low %v624_v30, %v625_v32  ;;  %v2797_v48 = vsel %vm475_vm0, %v2786_v47, 0  ;;  %459 = vst.msk [vmem:[#allocation4 + $0x80] sm:$0xff] %vm410_vm1, %v4432_v60  ;;  %460 = vst.msk [vmem:[#allocation4 + $0x88] sm:$0xff] %vm410_vm1, %v4432_v60 }
  0xe0   : > { %461 = vst.msk [vmem:[#allocation4 + $0x90] sm:$0xff] %vm410_vm1, %v4432_v60  ;;  %462 = vst.msk [vmem:[#allocation4 + $0x98] sm:$0xff] %vm410_vm1, %v4432_v60  ;;  %v4862_v12 = vpop.permute.xlu0 %1194 }
  0xe1   : > { %636 = vst.msk [vmem:[#allocation2 + $0x78] sm:$0xff] %vm475_vm0, %v3700_v36  ;;  %480 = vst.msk [vmem:[#allocation5 + $0x20] sm:$0xff] %vm475_vm0, %v4432_v60 }
  0xe2   : > { %463 = vst.msk [vmem:[#allocation4 + $0xa0] sm:$0xff] %vm410_vm1, %v4432_v60  ;;  %464 = vst.msk [vmem:[#allocation4 + $0xa8] sm:$0xff] %vm410_vm1, %v4432_v60  ;;  %v4866_v15 = vpop.permute.xlu1 %1196 }
  0xe3   : > { %465 = vst.msk [vmem:[#allocation4 + $0xb0] sm:$0xff] %vm410_vm1, %v4432_v60  ;;  %466 = vst.msk [vmem:[#allocation4 + $0xb8] sm:$0xff] %vm410_vm1, %v4432_v60 }
  0xe4   : > { %v2781_v46 = vld [vmem:[#allocation2 + $0x70] sm:$0xff]  ;;  %467 = vst.msk [vmem:[#allocation4 + $0xc0] sm:$0xff] %vm410_vm1, %v4432_v60  ;;  %468 = vst.msk [vmem:[#allocation4 + $0xc8] sm:$0xff] %vm410_vm1, %v4432_v60 }
  0xe5   : > { %3965 = vmatmul.mubr.msk.bf16.vlgmr.msra.gmra.mrb[16].mxu0 %vm475_vm0, %v1869_v37  ;;  %469 = vst.msk [vmem:[#allocation4 + $0xd0] sm:$0xff] %vm410_vm1, %v4432_v60  ;;  %470 = vst.msk [vmem:[#allocation4 + $0xd8] sm:$0xff] %vm410_vm1, %v4432_v60 }
  0xe6   : > { %3985 = vmatpush3.bf16.xpose.msra.mxu0 %v2188_v38  ;;  %3988 = vmatprep.mubr.msk.bf16.mxu0 %vm475_vm0, %v2175_v39  ;;  %471 = vst.msk [vmem:[#allocation4 + $0xe0] sm:$0xff] %vm410_vm1, %v4432_v60  ;;  %472 = vst.msk [vmem:[#allocation4 + $0xe8] sm:$0xff] %vm410_vm1, %v4432_v60 }
  0xe7   : > { %4067 = vmatprep.subr.msk.bf16.mxu0 %vm475_vm0, %v2180_v4  ;;  %473 = vst.msk [vmem:[#allocation4 + $0xf0] sm:$0xff] %vm410_vm1, %v4432_v60  ;;  %474 = vst.msk [vmem:[#allocation4 + $0xf8] sm:$0xff] %vm410_vm1, %v4432_v60 }
  0xe8   : > { %v2782_v49 = vld [vmem:[#allocation2 + $0x78] sm:$0xff]  ;;  %481 = vst.msk [vmem:[#allocation5 + $0x28] sm:$0xff] %vm475_vm0, %v4432_v60  ;;  %482 = vst.msk [vmem:[#allocation5 + $0x30] sm:$0xff] %vm475_vm0, %v4432_v60 }
  0xe9   : > { %483 = vst.msk [vmem:[#allocation5 + $0x38] sm:$0xff] %vm475_vm0, %v4432_v60  ;;  %484 = vst.msk [vmem:[#allocation5 + $0x40] sm:$0xff] %vm475_vm0, %v4432_v60 }
  0xea   : > { %485 = vst.msk [vmem:[#allocation5 + $0x48] sm:$0xff] %vm475_vm0, %v4432_v60  ;;  %486 = vst.msk [vmem:[#allocation5 + $0x50] sm:$0xff] %vm475_vm0, %v4432_v60 }
  0xeb   : > { %487 = vst.msk [vmem:[#allocation5 + $0x58] sm:$0xff] %vm475_vm0, %v4432_v60  ;;  %488 = vst.msk [vmem:[#allocation5 + $0x60] sm:$0xff] %vm475_vm0, %v4432_v60 }
  0xec   : > { %489 = vst.msk [vmem:[#allocation5 + $0x68] sm:$0xff] %vm475_vm0, %v4432_v60  ;;  %490 = vst.msk [vmem:[#allocation5 + $0x70] sm:$0xff] %vm475_vm0, %v4432_v60 }
  0xed   : > { %491 = vst.msk [vmem:[#allocation5 + $0x78] sm:$0xff] %vm475_vm0, %v4432_v60  ;;  %492 = vst.msk [vmem:[#allocation5 + $0x80] sm:$0xff] %vm475_vm0, %v4432_v60 }
  0xee   : > { %3987 = vmatpush3.bf16.xpose.msra.mxu0 %v2191_v33  ;;  %493 = vst.msk [vmem:[#allocation5 + $0x88] sm:$0xff] %vm475_vm0, %v4432_v60  ;;  %494 = vst.msk [vmem:[#allocation5 + $0x90] sm:$0xff] %vm475_vm0, %v4432_v60 }
  0xef   : > { %4068 = vmatprep.subr.msk.bf16.mxu0 %vm475_vm0, %v2481_v6  ;;  %495 = vst.msk [vmem:[#allocation5 + $0x98] sm:$0xff] %vm475_vm0, %v4432_v60  ;;  %496 = vst.msk [vmem:[#allocation5 + $0xa0] sm:$0xff] %vm475_vm0, %v4432_v60 }
  0xf0   : > { %497 = vst.msk [vmem:[#allocation5 + $0xa8] sm:$0xff] %vm475_vm0, %v4432_v60  ;;  %498 = vst.msk [vmem:[#allocation5 + $0xb0] sm:$0xff] %vm475_vm0, %v4432_v60 }
  0xf1   : > { %499 = vst.msk [vmem:[#allocation5 + $0xb8] sm:$0xff] %vm475_vm0, %v4432_v60  ;;  %500 = vst.msk [vmem:[#allocation5 + $0xc0] sm:$0xff] %vm475_vm0, %v4432_v60 }
  0xf2   : > { %501 = vst.msk [vmem:[#allocation5 + $0xc8] sm:$0xff] %vm475_vm0, %v4432_v60  ;;  %502 = vst.msk [vmem:[#allocation5 + $0xd0] sm:$0xff] %vm475_vm0, %v4432_v60 }
  0xf3   : > { %503 = vst.msk [vmem:[#allocation5 + $0xd8] sm:$0xff] %vm475_vm0, %v4432_v60  ;;  %504 = vst.msk [vmem:[#allocation5 + $0xe0] sm:$0xff] %vm475_vm0, %v4432_v60 }
  0xf4   : > { %505 = vst.msk [vmem:[#allocation5 + $0xe8] sm:$0xff] %vm475_vm0, %v4432_v60  ;;  %506 = vst.msk [vmem:[#allocation5 + $0xf0] sm:$0xff] %vm475_vm0, %v4432_v60 }
  0xf5   : > { %3989 = vmatmul.mubr.msk.bf16.vlgmr.msra.gmra.mrb[20].mxu0 %vm475_vm0, %v2176_v40  ;;  %507 = vst.msk [vmem:[#allocation5 + $0xf8] sm:$0xff] %vm475_vm0, %v4432_v60 }
  0xf6   : > { %4009 = vmatpush3.bf16.xpose.msra.mxu0 %v2491_v41  ;;  %4012 = vmatprep.mubr.msk.bf16.mxu0 %vm475_vm0, %v2478_v42 }
  0xf7   : > { %4069 = vmatprep.subr.msk.bf16.mxu0 %vm475_vm0, %v2483_v18  ;;  %v720_v18 = vld [vmem:[#allocation3 + $0x8] sm:$0xff] }
  0xfe   : > { %4011 = vmatpush3.bf16.xpose.msra.mxu0 %v2494_v43 }
  0xff   : > { %4070 = vmatprep.subr.msk.bf16.mxu0 %vm475_vm0, %v2784_v22 }
 0x105   : > { %4013 = vmatmul.mubr.msk.bf16.vlgmr.msra.gmra.mrb[24].mxu0 %vm475_vm0, %v2479_v44 }
 0x106   : > { %4033 = vmatpush3.bf16.xpose.msra.mxu0 %v2794_v45  ;;  %4036 = vmatprep.mubr.msk.bf16.mxu0 %vm475_vm0, %v2781_v46 }
 0x107   : > { %4071 = vmatprep.subr.msk.bf16.mxu0 %vm475_vm0, %v2786_v47 }
 0x10e   : > { %4035 = vmatpush3.bf16.xpose.msra.mxu0 %v2797_v48  ;;  %v5751_v48 = vmov 1065369472  }
 0x10f   : > { %3872 = vmatprep.subr.bf16.mxu1 %v5751_v48 }
 0x110   : > { %3873 = vmatpush3.bf16.msra.mxu1 %v5751_v48 }
 0x111   : > { %3874 = vmatprep.subr.bf16.mxu1 %v5751_v48 }
 0x114   : > { %3875 = vmatpush3.bf16.msra.mxu1 %v5751_v48 }
 0x115   : > { %v4655_v50 = vpop.f32.mrb[0].mxu0  ;;  %4037 = vmatmul.mubr.msk.bf16.vlgmr.msra.gmra.mrb[28].mxu0 %vm475_vm0, %v2782_v49  ;;  %3880 = vmatprep.subr.bf16.mxu1 %v4583_v34 }
 0x116   : > { %v729_v51 = vsel %vm475_vm0, %v4655_v50, -inf  ;;  %v4660_v52 = vpop.f32.mrb[1].mxu0 }
 0x117   : > { %730 = vmax.xlane.f32.xlu0 %v729_v51  ;;  %v4662_v53 = vpop.f32.mrb[2].mxu0  ;;  %v723_v54 = vsel %vm475_vm0, %v4660_v52, -inf }
 0x118   : > { %v4666_v55 = vpop.f32.mrb[3].mxu0  ;;  %v732_v57 = vsel %vm475_vm0, %v4662_v53, -inf }
 0x119   : > { %v726_v56 = vsel %vm475_vm0, %v4666_v55, -inf }
 0x11a   : > { %727 = vmax.xlane.f32.xlu1 %v726_v56 }
 0x11b   : > { %724 = vmax.xlane.f32.xlu0 %v723_v54 }
 0x11f   : > { %733 = vmax.xlane.f32.xlu0 %v732_v57 }
 0x188   : > { %v4832_v61 = vpop.f32.mrb[4].mxu0 }
 0x189   : > { %v4834_v62 = vpop.f32.mrb[5].mxu0  ;;  %v1037_v63 = vsel %vm475_vm0, %v4832_v61, -inf }
 0x18a   : > { %v4838_v0 = vpop.f32.mrb[6].mxu0  ;;  %1038 = vmax.xlane.f32.xlu1 %v1037_v63  ;;  %v1031_v3 = vsel %vm475_vm0, %v4834_v62, -inf }
 0x18b   : > { %v4840_v1 = vpop.f32.mrb[7].mxu0  ;;  %v1040_v2 = vsel %vm475_vm0, %v4838_v0, -inf }
 0x18c   : > { %1041 = vmax.xlane.f32.xlu0 %v1040_v2  ;;  %v1034_v4 = vsel %vm475_vm0, %v4840_v1, -inf }
 0x18e   : > { %1032 = vmax.xlane.f32.xlu1 %v1031_v3 }
 0x190   : > { %1035 = vmax.xlane.f32.xlu0 %v1034_v4 }
 0x198   : > { %v4848_v5 = vpop.f32.mrb[8].mxu0 }
 0x199   : > { %v4850_v6 = vpop.f32.mrb[9].mxu0  ;;  %v1340_v7 = vsel %vm475_vm0, %v4848_v5, -inf }
 0x19a   : > { %v4854_v8 = vpop.f32.mrb[10].mxu0  ;;  %1341 = vmax.xlane.f32.xlu0 %v1340_v7  ;;  %v1334_v11 = vsel %vm475_vm0, %v4850_v6, -inf }
 0x19b   : > { %v4856_v9 = vpop.f32.mrb[11].mxu0  ;;  %v1343_v13 = vsel %vm475_vm0, %v4854_v8, -inf }
 0x19c   : > { %v1337_v10 = vsel %vm475_vm0, %v4856_v9, -inf }
 0x19d   : > { %1338 = vmax.xlane.f32.xlu1 %v1337_v10 }
 0x19e   : > { %1335 = vmax.xlane.f32.xlu0 %v1334_v11 }
 0x1a2   : > { %1344 = vmax.xlane.f32.xlu0 %v1343_v13 }
 0x1a4   : > { %v731_v16 = vpop.xlane.xlu0 %730 }
 0x1a5   : > { %v737_v17 = vmax.f32 %v721_v14, %v731_v16 }
 0x1a7   : > { %v741_v20 = vsub.f32 %v721_v14, %v737_v17  ;;  %956 = vst.msk [vmem:[#allocation3 + $0x10] sm:$0xff] %vm410_vm1, %v737_v17  ;;  %v728_v21 = vpop.xlane.xlu1 %727 }
 0x1a8   : > { %v725_v22 = vpop.xlane.xlu0 %724  ;;  %v736_v23 = vmax.f32 %v720_v18, %v728_v21  ;;  %v4869_v24 = vpop.f32.mrb[12].mxu0 }
 0x1a9   : > { %v747_v25 = vmul.f32 1.442695, %v741_v20  ;;  %v735_v26 = vmax.f32 %v719_v19, %v725_v22  ;;  %v4871_v27 = vpop.f32.mrb[13].mxu0  ;;  %v1643_v58 = vsel %vm475_vm0, %v4869_v24, -inf }
 0x1aa   : > { %955 = vst.msk [vmem:[#allocation3 + $0x8] sm:$0xff] %vm410_vm1, %v736_v23  ;;  %v4874_v29 = vpop.f32.mrb[14].mxu0  ;;  %v740_v33 = vsub.f32 %v720_v18, %v736_v23  ;;  %v1637_v63 = vsel %vm475_vm0, %v4871_v27, -inf }
 0x1ab   : > { %v739_v30 = vsub.f32 %v719_v19, %v735_v26  ;;  %954 = vst.msk [vmem:[#allocation3] sm:$0xff] %vm410_vm1, %v735_v26  ;;  %v4877_v31 = vpop.f32.mrb[15].mxu0  ;;  %4193 = vpow2.f32 %v747_v25  ;;  %v1646_v4 = vsel %vm475_vm0, %v4874_v29, -inf }
 0x1ac   : > { %v734_v32 = vpop.xlane.xlu0 %733  ;;  %v745_v40 = vmul.f32 1.442695, %v740_v33  ;;  %v1640_v7 = vsel %vm475_vm0, %v4877_v31, -inf }
 0x1ad   : > { %v743_v36 = vmul.f32 1.442695, %v739_v30  ;;  %v738_v37 = vmax.f32 %v722_v28, %v734_v32 }
 0x1ae   : > { %763 = vperm.xlu1 %4120, %v737_v17  }
 0x1af   : > { %v742_v38 = vsub.f32 %v722_v28, %v738_v37  ;;  %957 = vst.msk [vmem:[#allocation3 + $0x18] sm:$0xff] %vm410_vm1, %v738_v37  ;;  %4195 = vpow2.f32 %v743_v36 }
 0x1b1   : > { %v749_v39 = vmul.f32 1.442695, %v742_v38 }
 0x1b2   : > { %753 = vperm.xlu1 %4120, %v735_v26  }
 0x1b3   : > { %4197 = vpow2.f32 %v749_v39  ;;  %v4965_v39 = vld [vmem:[#allocation3 + $0x38] sm:$0xff] }
 0x1b4   : > { %4199 = vpow2.f32 %v745_v40 }
 0x1b5   : > { %v4880_v41 = vpop.eup %4193 }
 0x1b6   : > { %768 = vperm.xlu1 %4120, %v738_v37   ;;  %5789 = vst [vmem:[#allocation9_spill] sm:$0xff] %v4880_v41  ;;  %v1029_v37 = vld [vmem:[#allocation3 + $0x30] sm:$0xff] }
 0x1b8   : > { %758 = vperm.xlu0 %4121, %v736_v23   ;;  %v4882_v42 = vpop.f32.mrb[16].mxu0 }
 0x1b9   : > { %5790 = vst [vmem:[#allocation10_spill] sm:$0xff] %v4882_v42  ;;  %v4884_v43 = vpop.f32.mrb[17].mxu0  ;;  %v4889_v45 = vpop.eup %4195  ;;  %v1948_v10 = vsel %vm475_vm0, %v4882_v42, -inf }
 0x1ba   : > { %5791 = vst [vmem:[#allocation11_spill] sm:$0xff] %v4884_v43  ;;  %873 = vperm.xlu1 %4120, %v4880_v41   ;;  %v4887_v44 = vpop.f32.mrb[18].mxu0  ;;  %5793 = vst [vmem:[#allocation13_spill] sm:$0xff] %v4889_v45  ;;  %v1942_v16 = vsel %vm475_vm0, %v4884_v43, -inf  ;;  %v5176_v41 = vld [vmem:[#allocation3 + $0xe8] sm:$0xff] }
 0x1bb   : > { %5792 = vst [vmem:[#allocation12_spill] sm:$0xff] %v4887_v44  ;;  %v4891_v46 = vpop.f32.mrb[19].mxu0  ;;  %v1951_v20 = vsel %vm475_vm0, %v4887_v44, -inf  ;;  %5821 = vst [vmem:[#allocation40_spill] sm:$0xff] %v5176_v41 }
 0x1bc   : > { %5794 = vst [vmem:[#allocation14_spill] sm:$0xff] %v4891_v46  ;;  %v1945_v13 = vsel %vm475_vm0, %v4891_v46, -inf }
 0x1bd   : > { %v4894_v47 = vpop.eup %4197 }
 0x1be   : > { %863 = vperm.xlu1 %4120, %v4889_v45   ;;  %5795 = vst [vmem:[#allocation15_spill] sm:$0xff] %v4894_v47  ;;  %v4900_v49 = vpop.eup %4199 }
 0x1bf   : > { %5796 = vst [vmem:[#allocation16_spill] sm:$0xff] %v4900_v49 }
 0x1c2   : > { %878 = vperm.xlu1 %4120, %v4894_v47  }
 0x1c6   : > { %868 = vperm.xlu1 %4120, %v4900_v49   ;;  %v5156_v49 = vld [vmem:[#allocation3 + $0xa0] sm:$0xff] }
 0x1c8   : > { %v4905_v51 = vpop.f32.mrb[20].mxu0 }
 0x1c9   : > { %5797 = vst [vmem:[#allocation17_spill] sm:$0xff] %v4905_v51  ;;  %v4907_v54 = vpop.f32.mrb[21].mxu0  ;;  %v2253_v18 = vsel %vm475_vm0, %v4905_v51, -inf  ;;  %v642_v51 = vld [vmem:[%s4580_s29 + $0x8] sm:$0xff] }
 0x1ca   : > { %5798 = vst [vmem:[#allocation18_spill] sm:$0xff] %v4907_v54  ;;  %v4909_v56 = vpop.f32.mrb[22].mxu0  ;;  %v2247_v22 = vsel %vm475_vm0, %v4907_v54, -inf  ;;  %v643_v54 = vld [vmem:[%s4580_s29 + $0x10] sm:$0xff] }
 0x1cb   : > { %5799 = vst [vmem:[#allocation19_spill] sm:$0xff] %v4909_v56  ;;  %v4911_v57 = vpop.f32.mrb[23].mxu0  ;;  %v2256_v21 = vsel %vm475_vm0, %v4909_v56, -inf  ;;  %v641_v56 = vld [vmem:[%s4580_s29] sm:$0xff] }
 0x1cc   : > { %5800 = vst [vmem:[#allocation20_spill] sm:$0xff] %v4911_v57  ;;  %v2250_v25 = vsel %vm475_vm0, %v4911_v57, -inf  ;;  %v5235_v44 = vcombine.high %v641_v56, %v642_v51 }
 0x1d7   : > { %1644 = vmax.xlane.f32.xlu0 %v1643_v58  ;;  %v1027_v58 = vld [vmem:[#allocation3 + $0x20] sm:$0xff] }
 0x1d8   : > { %v4915_v59 = vpop.f32.mrb[24].mxu0 }
 0x1d9   : > { %5801 = vst [vmem:[#allocation21_spill] sm:$0xff] %v4915_v59  ;;  %v4917_v60 = vpop.f32.mrb[25].mxu0  ;;  %v2556_v26 = vsel %vm475_vm0, %v4915_v59, -inf }
 0x1da   : > { %5802 = vst [vmem:[#allocation22_spill] sm:$0xff] %v4917_v60  ;;  %v4921_v2 = vpop.f32.mrb[26].mxu0  ;;  %v2550_v28 = vsel %vm475_vm0, %v4917_v60, -inf }
 0x1db   : > { %5803 = vst [vmem:[#allocation23_spill] sm:$0xff] %v4921_v2  ;;  %1638 = vmax.xlane.f32.xlu0 %v1637_v63  ;;  %v4923_v3 = vpop.f32.mrb[27].mxu0  ;;  %v2559_v30 = vsel %vm475_vm0, %v4921_v2, -inf }
 0x1dc   : > { %5804 = vst [vmem:[#allocation24_spill] sm:$0xff] %v4923_v3  ;;  %v2553_v32 = vsel %vm475_vm0, %v4923_v3, -inf  ;;  %v5187_v3 = vld [vmem:[#allocation3 + $0xd0] sm:$0xff] }
 0x1df   : > { %1647 = vmax.xlane.f32.xlu0 %v1646_v4 }
 0x1e3   : > { %1641 = vmax.xlane.f32.xlu0 %v1640_v7 }
 0x1e7   : > { %1949 = vmax.xlane.f32.xlu0 %v1948_v10  ;;  %v4971_v10 = vld [vmem:[#allocation3 + $0x28] sm:$0xff] }
 0x1e8   : > { %v4931_v11 = vpop.f32.mrb[28].mxu0 }
 0x1e9   : > { %5805 = vst [vmem:[#allocation25_spill] sm:$0xff] %v4931_v11  ;;  %v4935_v14 = vpop.f32.mrb[29].mxu0 }
 0x1ea   : > { %5806 = vst [vmem:[#allocation26_spill] sm:$0xff] %v4935_v14  ;;  %1946 = vmax.xlane.f32.xlu1 %v1945_v13  ;;  %v4939_v17 = vpop.f32.mrb[30].mxu0  ;;  %v2853_v36 = vsel %vm475_vm0, %v4935_v14, -inf  ;;  %v5170_v14 = vld [vmem:[#allocation3 + $0xa8] sm:$0xff] }
 0x1eb   : > { %5807 = vst [vmem:[#allocation27_spill] sm:$0xff] %v4939_v17  ;;  %1943 = vmax.xlane.f32.xlu0 %v1942_v16  ;;  %v4943_v19 = vpop.f32.mrb[31].mxu0  ;;  %5820 = vst [vmem:[#allocation39_spill] sm:$0xff] %v5170_v14 }
 0x1ec   : > { %5808 = vst [vmem:[#allocation28_spill] sm:$0xff] %v4943_v19  ;;  %v2856_v23 = vsel %vm475_vm0, %v4943_v19, -inf }
 0x1ee   : > { %2254 = vmax.xlane.f32.xlu1 %v2253_v18 }
 0x1ef   : > { %1952 = vmax.xlane.f32.xlu0 %v1951_v20 }
 0x1f2   : > { %2257 = vmax.xlane.f32.xlu1 %v2256_v21 }
 0x1f3   : > { %2248 = vmax.xlane.f32.xlu0 %v2247_v22 }
 0x1f6   : > { %2251 = vmax.xlane.f32.xlu1 %v2250_v25 }
 0x1f7   : > { %2857 = vmax.xlane.f32.xlu0 %v2856_v23  ;;  %v4983_v23 = vld [vmem:[#allocation3 + $0x50] sm:$0xff] }
 0x1fa   : > { %2557 = vmax.xlane.f32.xlu1 %v2556_v26 }
 0x1fe   : > { %2551 = vmax.xlane.f32.xlu1 %v2550_v28 }
 0x202   : > { %2560 = vmax.xlane.f32.xlu1 %v2559_v30  ;;  %v4990_v30 = vld [vmem:[#allocation3 + $0x48] sm:$0xff] }
 0x206   : > { %2554 = vmax.xlane.f32.xlu1 %v2553_v32  ;;  %v4993_v32 = vld [vmem:[#allocation3 + $0x40] sm:$0xff] }
 0x20a   : > { %2854 = vmax.xlane.f32.xlu1 %v2853_v36 }
 0x217   : > { %v1039_v38 = vpop.xlane.xlu1 %1038 }
 0x218   : > { %v1045_v33 = vmax.f32 %v1029_v37, %v1039_v38 }
 0x219   : > { %v1042_v40 = vpop.xlane.xlu0 %1041 }
 0x21a   : > { %v1049_v63 = vsub.f32 %v1029_v37, %v1045_v33  ;;  %1259 = vst.msk [vmem:[#allocation3 + $0x30] sm:$0xff] %vm410_vm1, %v1045_v33  ;;  %v4969_v4 = vmax.f32 %v4965_v39, %v1042_v40 }
 0x21b   : > { %1071 = vperm.xlu1 %4120, %v1045_v33   ;;  %v1033_v7 = vpop.xlane.xlu1 %1032 }
 0x21c   : > { %v1055_v13 = vmul.f32 1.442695, %v1049_v63  ;;  %1260 = vst.msk [vmem:[#allocation3 + $0x38] sm:$0xff] %vm410_vm1, %v4969_v4  ;;  %v1043_v16 = vmax.f32 %v1027_v58, %v1033_v7  ;;  %v5012_v7 = vld [vmem:[#allocation3 + $0x58] sm:$0xff] }
 0x21d   : > { %v1036_v18 = vpop.xlane.xlu0 %1035 }
 0x21e   : > { %4201 = vpow2.f32 %v1055_v13  ;;  %v1047_v20 = vsub.f32 %v1027_v58, %v1043_v16  ;;  %1257 = vst.msk [vmem:[#allocation3 + $0x20] sm:$0xff] %vm410_vm1, %v1043_v16  ;;  %v4977_v21 = vmax.f32 %v4971_v10, %v1036_v18 }
 0x21f   : > { %1061 = vperm.xlu1 %4120, %v1043_v16  }
 0x220   : > { %v1051_v22 = vmul.f32 1.442695, %v1047_v20  ;;  %1258 = vst.msk [vmem:[#allocation3 + $0x28] sm:$0xff] %vm410_vm1, %v4977_v21  ;;  %1066 = vperm.xlu0 %4121, %v4977_v21  }
 0x222   : > { %4203 = vpow2.f32 %v1051_v22 }
 0x223   : > { %1076 = vperm.xlu1 %4120, %v4969_v4  }
 0x227   : > { %v1342_v25 = vpop.xlane.xlu0 %1341 }
 0x228   : > { %v4985_v26 = vpop.eup %4201  ;;  %v4988_v28 = vmax.f32 %v4983_v23, %v1342_v25 }
 0x229   : > { %5809 = vst [vmem:[#allocation29_spill] sm:$0xff] %v4985_v26  ;;  %1182 = vperm.xlu0 %4121, %v4985_v26  }
 0x22a   : > { %1562 = vst.msk [vmem:[#allocation3 + $0x50] sm:$0xff] %vm410_vm1, %v4988_v28  ;;  %v1339_v37 = vpop.xlane.xlu1 %1338 }
 0x22b   : > { %v5000_v38 = vmax.f32 %v4990_v30, %v1339_v37  ;;  %v1336_v33 = vpop.xlane.xlu0 %1335 }
 0x22c   : > { %v5002_v40 = vpop.eup %4203  ;;  %v5005_v58 = vmax.f32 %v4993_v32, %v1336_v33 }
 0x22d   : > { %5810 = vst [vmem:[#allocation30_spill] sm:$0xff] %v5002_v40  ;;  %1561 = vst.msk [vmem:[#allocation3 + $0x48] sm:$0xff] %vm410_vm1, %v5000_v38  ;;  %1172 = vperm.xlu0 %4121, %v5002_v40  }
 0x22e   : > { %1560 = vst.msk [vmem:[#allocation3 + $0x40] sm:$0xff] %vm410_vm1, %v5005_v58  ;;  %v764_v16 = vpop.permute.xlu1 %763 }
 0x22f   : > { %v1345_v18 = vpop.xlane.xlu0 %1344  ;;  %v773_v22 = vsub.f32 %v4655_v50, %v764_v16 }
 0x230   : > { %v5019_v20 = vmax.f32 %v5012_v7, %v1345_v18 }
 0x231   : > { %v779_v63 = vmul.f32 1.442695, %v773_v22 }
 0x232   : > { %1563 = vst.msk [vmem:[#allocation3 + $0x58] sm:$0xff] %vm410_vm1, %v5019_v20  ;;  %1379 = vperm.xlu0 %4121, %v5019_v20   ;;  %v754_v37 = vpop.permute.xlu1 %753 }
 0x233   : > { %v771_v33 = vsub.f32 %v4660_v52, %v754_v37  ;;  %4205 = vpow2.f32 %v779_v63  ;;  %v1050_v52 = vsub.f32 %v4965_v39, %v4969_v4  ;;  %v2859_v37 = vsel %vm475_vm0, %v4931_v11, -inf  ;;  %v5130_v11 = vld [vmem:[#allocation3 + $0xb0] sm:$0xff] }
 0x234   : > { %v2862_v39 = vsel %vm475_vm0, %v4939_v17, -inf }
 0x235   : > { %v775_v36 = vmul.f32 1.442695, %v771_v33 }
 0x236   : > { %1369 = vperm.xlu0 %4121, %v5000_v38   ;;  %v769_v13 = vpop.permute.xlu1 %768 }
 0x237   : > { %v774_v18 = vsub.f32 %v4662_v53, %v769_v13  ;;  %v759_v48 = vpop.permute.xlu0 %758  ;;  %4207 = vpow2.f32 %v775_v36 }
 0x238   : > { %v772_v50 = vsub.f32 %v4666_v55, %v759_v48  ;;  %v1057_v55 = vmul.f32 1.442695, %v1050_v52  ;;  %v5811_v48 = vmov 1065369472  }
 0x239   : > { %v781_v16 = vmul.f32 1.442695, %v774_v18 }
 0x23a   : > { %v777_v25 = vmul.f32 1.442695, %v772_v50  ;;  %v5077_v50 = vld [vmem:[#allocation3 + $0x78] sm:$0xff] }
 0x23b   : > { %4209 = vpow2.f32 %v781_v16  ;;  %v4386_v16 = vld [vmem:[%s4580_s29] ss:$8 sps:$4 sm:$0xff]  }
 0x23c   : > { %4211 = vpow2.f32 %v777_v25 }
 0x23d   : > { %v4206_v40 = vpop.eup %4205  ;;  %4213 = vpow2.f32 %v1057_v55 }
 0x241   : > { %v4208_v26 = vpop.eup %4207 }
 0x245   : > { %v4210_v19 = vpop.eup %4209 }
 0x246   : > { %v4212_v22 = vpop.eup %4211  ;;  %v784_v53 = vpack.c.bf16 %v4210_v19, %v4206_v40  ;;  %v1048_v19 = vsub.f32 %v4971_v10, %v4977_v21  ;;  %v5058_v10 = vld [vmem:[#allocation3 + $0x70] sm:$0xff]  ;;  %v5066_v40 = vld [vmem:[#allocation3 + $0x60] sm:$0xff] }
 0x247   : > { %2860 = vmax.xlane.f32.xlu1 %v2859_v37  ;;  %v783_v13 = vpack.c.bf16 %v4212_v22, %v4208_v26  ;;  %v5049_v4 = vpop.eup %4213 }
 0x248   : > { %5812 = vst [vmem:[#allocation31_spill] sm:$0xff] %v5049_v4 }
 0x249   : > { %3876 = vmatprep.mubr.msk.bf16.mxu1 %vm475_vm0, %v783_v13 }
 0x24a   : > { %3877 = vmatmul.mubr.msk.bf16.vlgmr.msra.gmra.mrb[0].mxu1 %vm475_vm0, %v784_v53 }
 0x24b   : > { %3881 = vmatpush3.bf16.msra.mxu1 %v4583_v34  ;;  %3884 = vmatprep.mubr.msk.bf16.mxu1 %vm475_vm0, %v783_v13  ;;  %v1053_v34 = vmul.f32 1.442695, %v1048_v19  ;;  %v5114_v13 = vld [vmem:[#allocation3 + $0x80] sm:$0xff] }
 0x24c   : > { %3882 = vmatprep.subr.bf16.mxu1 %v4588_v35 }
 0x24d   : > { %4215 = vpow2.f32 %v1053_v34 }
 0x24f   : > { %3883 = vmatpush3.bf16.msra.mxu1 %v4588_v35  ;;  %v5056_v35 = vpop.permute.xlu1 %873 }
 0x250   : > { %3896 = vmatprep.subr.bf16.mxu1 %v5811_v48  ;;  %5813 = vst [vmem:[#allocation32_spill] sm:$0xff] %v5056_v35  ;;  %v5150_v35 = vld [vmem:[#allocation3 + $0xb8] sm:$0xff] }
 0x251   : > { %5818 = vst [vmem:[#allocation37_spill] sm:$0xff] %v5150_v35 }
 0x252   : > { %3885 = vmatmul.mubr.msk.bf16.vlgmr.msra.gmra.mrb[4].mxu1 %vm475_vm0, %v784_v53  ;;  %v5089_v53 = vld [vmem:[#allocation3 + $0x68] sm:$0xff] }
 0x253   : > { %3897 = vmatpush3.bf16.msra.mxu1 %v5811_v48  ;;  %v5068_v63 = vpop.permute.xlu1 %863 }
 0x254   : > { %3898 = vmatprep.subr.bf16.mxu1 %v5811_v48  ;;  %5815 = vst [vmem:[#allocation34_spill] sm:$0xff] %v5068_v63 }
 0x255   : > { %2863 = vmax.xlane.f32.xlu0 %v2862_v39  ;;  %v5099_v39 = vld [vmem:[#allocation3 + $0x90] sm:$0xff] }
 0x257   : > { %3899 = vmatpush3.bf16.msra.mxu1 %v5811_v48  ;;  %v5060_v21 = vpop.eup %4215  ;;  %v5084_v22 = vpop.permute.xlu1 %878 }
 0x258   : > { %3904 = vmatprep.subr.bf16.mxu1 %v4862_v12  ;;  %1187 = vperm.xlu1 %4120, %v5049_v4   ;;  %5814 = vst [vmem:[#allocation33_spill] sm:$0xff] %v5060_v21  ;;  %5816 = vst [vmem:[#allocation35_spill] sm:$0xff] %v5084_v22 }
 0x25b   : > { %v5101_v34 = vpop.permute.xlu1 %868 }
 0x25c   : > { %1364 = vperm.xlu1 %4120, %v5005_v58   ;;  %5817 = vst [vmem:[#allocation36_spill] sm:$0xff] %v5101_v34  ;;  %v5136_v34 = vld [vmem:[#allocation3 + $0x98] sm:$0xff] }
 0x260   : > { %1374 = vperm.xlu1 %4120, %v4988_v28  }
 0x264   : > { %v1645_v26 = vpop.xlane.xlu0 %1644  ;;  %1177 = vperm.xlu1 %4120, %v5060_v21  }
 0x265   : > { %v5064_v36 = vmax.f32 %v5058_v10, %v1645_v26  ;;  %v4385_v26 = vld [vmem:[%s4580_s29 + $0x10] ss:$8 sps:$4 sm:$0xff]  }
 0x267   : > { %1865 = vst.msk [vmem:[#allocation3 + $0x70] sm:$0xff] %vm410_vm1, %v5064_v36 }
 0x268   : > { %v1639_v33 = vpop.xlane.xlu0 %1638 }
 0x269   : > { %v5075_v18 = vmax.f32 %v5066_v40, %v1639_v33 }
 0x26b   : > { %1863 = vst.msk [vmem:[#allocation3 + $0x60] sm:$0xff] %vm410_vm1, %v5075_v18  ;;  %1667 = vperm.xlu1 %4120, %v5075_v18  }
 0x26c   : > { %v1648_v52 = vpop.xlane.xlu0 %1647 }
 0x26d   : > { %v5087_v37 = vmax.f32 %v5077_v50, %v1648_v52 }
 0x26f   : > { %1866 = vst.msk [vmem:[#allocation3 + $0x78] sm:$0xff] %vm410_vm1, %v5087_v37  ;;  %1677 = vperm.xlu1 %4120, %v5064_v36  }
 0x270   : > { %v1642_v55 = vpop.xlane.xlu0 %1641 }
 0x271   : > { %v5097_v19 = vmax.f32 %v5089_v53, %v1642_v55  ;;  %v5112_v55 = vld [vmem:[#allocation3 + $0x88] sm:$0xff] }
 0x273   : > { %1864 = vst.msk [vmem:[#allocation3 + $0x68] sm:$0xff] %vm410_vm1, %v5097_v19  ;;  %1682 = vperm.xlu1 %4120, %v5087_v37   ;;  %1672 = vperm.xlu0 %4121, %v5097_v19  }
 0x274   : > { %v1950_v33 = vpop.xlane.xlu0 %1949 }
 0x275   : > { %v5110_v52 = vmax.f32 %v5099_v39, %v1950_v33 }
 0x277   : > { %2172 = vst.msk [vmem:[#allocation3 + $0x90] sm:$0xff] %vm410_vm1, %v5110_v52  ;;  %1499 = vrot.lane.b32.xlu1 %v4385_v26, %s4428_s12  ;;  %1497 = vrot.lane.b32.xlu0 %v4386_v16, %s4428_s12  ;;  %v1947_v21 = vpop.xlane.xlu1 %1946 }
 0x278   : > { %v5125_v33 = vmax.f32 %v5112_v55, %v1947_v21  ;;  %v1944_v4 = vpop.xlane.xlu0 %1943 }
 0x279   : > { %v5128_v17 = vmax.f32 %v5114_v13, %v1944_v4 }
 0x27a   : > { %2171 = vst.msk [vmem:[#allocation3 + $0x88] sm:$0xff] %vm410_vm1, %v5125_v33 }
 0x27b   : > { %2170 = vst.msk [vmem:[#allocation3 + $0x80] sm:$0xff] %vm410_vm1, %v5128_v17  ;;  %1972 = vperm.xlu0 %4121, %v5128_v17   ;;  %1977 = vperm.xlu1 %4120, %v5125_v33   ;;  %v2255_v4 = vpop.xlane.xlu1 %2254 }
 0x27c   : > { %v5145_v21 = vmax.f32 %v5130_v11, %v2255_v4  ;;  %v1953_v25 = vpop.xlane.xlu0 %1952 }
 0x27d   : > { %v5148_v63 = vmax.f32 %v5136_v34, %v1953_v25 }
 0x27e   : > { %2475 = vst.msk [vmem:[#allocation3 + $0xb0] sm:$0xff] %vm410_vm1, %v5145_v21 }
 0x27f   : > { %2173 = vst.msk [vmem:[#allocation3 + $0x98] sm:$0xff] %vm410_vm1, %v5148_v63  ;;  %1982 = vperm.xlu0 %4121, %v5110_v52   ;;  %1987 = vperm.xlu1 %4120, %v5148_v63   ;;  %v2258_v25 = vpop.xlane.xlu1 %2257 }
 0x280   : > { %v5165_v4 = vmax.f32 %v5150_v35, %v2258_v25  ;;  %v2249_v22 = vpop.xlane.xlu0 %2248 }
 0x281   : > { %v5168_v45 = vmax.f32 %v5156_v49, %v2249_v22 }
 0x282   : > { %5819 = vst [vmem:[#allocation38_spill] sm:$0xff] %v5165_v4  ;;  %2476 = vst.msk [vmem:[#allocation3 + $0xb8] sm:$0xff] %vm410_vm1, %v5165_v4 }
 0x283   : > { %2473 = vst.msk [vmem:[#allocation3 + $0xa0] sm:$0xff] %vm410_vm1, %v5168_v45  ;;  %1800 = vrot.lane.b32.xlu0 %v4386_v16, %s4429_s28  ;;  %1802 = vrot.lane.b32.xlu1 %v4385_v26, %s4429_s28  ;;  %v2252_v22 = vpop.xlane.xlu1 %2251 }
 0x284   : > { %v5185_v25 = vmax.f32 %v5170_v14, %v2252_v22  ;;  %v2858_v47 = vpop.xlane.xlu0 %2857  ;;  %v5205_v22 = vld [vmem:[#allocation3 + $0xc0] sm:$0xff] }
 0x285   : > { %v5190_v59 = vmax.f32 %v5176_v41, %v2858_v47  ;;  %v5216_v41 = vld [vmem:[#allocation3 + $0xd8] sm:$0xff] }
 0x286   : > { %5822 = vst [vmem:[#allocation41_spill] sm:$0xff] %v5185_v25  ;;  %2474 = vst.msk [vmem:[#allocation3 + $0xa8] sm:$0xff] %vm410_vm1, %v5185_v25 }
 0x287   : > { %2277 = vperm.xlu0 %4121, %v5168_v45   ;;  %2282 = vperm.xlu1 %4120, %v5185_v25   ;;  %v2558_v16 = vpop.xlane.xlu1 %2557  ;;  %3080 = vst.msk [vmem:[#allocation3 + $0xe8] sm:$0xff] %vm410_vm1, %v5190_v59  ;;  %5823 = vst [vmem:[#allocation42_spill] sm:$0xff] %v5216_v41 }
 0x288   : > { %v5203_v47 = vmax.f32 %v5187_v3, %v2558_v16 }
 0x28a   : > { %2778 = vst.msk [vmem:[#allocation3 + $0xd0] sm:$0xff] %vm410_vm1, %v5203_v47 }
 0x28b   : > { %2287 = vperm.xlu0 %4121, %v5145_v21   ;;  %2292 = vperm.xlu1 %4120, %v5165_v4   ;;  %v2552_v26 = vpop.xlane.xlu1 %2551  ;;  %v5240_v4 = vld [vmem:[#allocation3 + $0xe0] sm:$0xff] }
 0x28c   : > { %v5214_v60 = vmax.f32 %v5205_v22, %v2552_v26  ;;  %v5228_v26 = vld [vmem:[#allocation3 + $0xc8] sm:$0xff]  ;;  %5827 = vst [vmem:[#allocation46_spill] sm:$0xff] %v5240_v4 }
 0x28d   : > { %5825 = vst [vmem:[#allocation44_spill] sm:$0xff] %v5228_v26 }
 0x28e   : > { %2776 = vst.msk [vmem:[#allocation3 + $0xc0] sm:$0xff] %vm410_vm1, %v5214_v60 }
 0x28f   : > { %2580 = vperm.xlu0 %4121, %v5214_v60   ;;  %v2561_v2 = vpop.xlane.xlu1 %2560 }
 0x290   : > { %v5226_v57 = vmax.f32 %v5216_v41, %v2561_v2  ;;  %v644_v41 = vld [vmem:[%s4580_s29 + $0x18] sm:$0xff] }
 0x291   : > { %v5259_v2 = vcombine.high %v643_v54, %v644_v41 }
 0x292   : > { %5824 = vst [vmem:[#allocation43_spill] sm:$0xff] %v5226_v57  ;;  %2779 = vst.msk [vmem:[#allocation3 + $0xd8] sm:$0xff] %vm410_vm1, %v5226_v57 }
 0x293   : > { %2590 = vperm.xlu0 %4121, %v5203_v47   ;;  %v2555_v16 = vpop.xlane.xlu1 %2554 }
 0x294   : > { %v5238_v42 = vmax.f32 %v5228_v26, %v2555_v16 }
 0x296   : > { %5826 = vst [vmem:[#allocation45_spill] sm:$0xff] %v5238_v42  ;;  %2777 = vst.msk [vmem:[#allocation3 + $0xc8] sm:$0xff] %vm410_vm1, %v5238_v42  ;;  %2585 = vperm.xlu1 %4120, %v5238_v42  }
 0x297   : > { %2410 = vrot.lane.b32.xlu0 %v5235_v44, %s4427_s27  ;;  %v2855_v51 = vpop.xlane.xlu1 %2854 }
 0x298   : > { %v5252_v56 = vmax.f32 %v5240_v4, %v2855_v51 }
 0x29a   : > { %5828 = vst [vmem:[#allocation47_spill] sm:$0xff] %v5252_v56  ;;  %3079 = vst.msk [vmem:[#allocation3 + $0xe0] sm:$0xff] %vm410_vm1, %v5252_v56  ;;  %2595 = vperm.xlu1 %4120, %v5226_v57  }
 0x29b   : > { %2883 = vperm.xlu0 %4121, %v5252_v56   ;;  %v1072_v42 = vpop.permute.xlu1 %1071 }
 0x29c   : > { %v1081_v26 = vsub.f32 %v4832_v61, %v1072_v42 }
 0x29e   : > { %2412 = vrot.lane.b32.xlu1 %v5259_v2, %s4427_s27  ;;  %v1087_v41 = vmul.f32 1.442695, %v1081_v26 }
 0x29f   : > { %v1067_v51 = vpop.permute.xlu0 %1066  ;;  %v1062_v35 = vpop.permute.xlu1 %1061 }
 0x2a0   : > { %v1080_v46 = vsub.f32 %v4840_v1, %v1067_v51  ;;  %v1079_v16 = vsub.f32 %v4834_v62, %v1062_v35 }
 0x2a2   : > { %v1085_v4 = vmul.f32 1.442695, %v1080_v46  ;;  %v1083_v43 = vmul.f32 1.442695, %v1079_v16  ;;  %2888 = vperm.xlu1 %4120, %v5190_v59   ;;  %v5284_v46 = vld [vmem:[#allocation3 + $0xf0] sm:$0xff] }
 0x2a3   : > { %v1077_v54 = vpop.permute.xlu1 %1076 }
 0x2a4   : > { %4217 = vpow2.f32 %v1085_v4  ;;  %v1082_v57 = vsub.f32 %v4838_v0, %v1077_v54 }
 0x2a5   : > { %4219 = vpow2.f32 %v1083_v43 }
 0x2a6   : > { %v1089_v56 = vmul.f32 1.442695, %v1082_v57  ;;  %4221 = vpow2.f32 %v1087_v41 }
 0x2a8   : > { %4223 = vpow2.f32 %v1089_v56  ;;  %v5280_v0 = vpop.permute.xlu0 %1182 }
 0x2ac   : > { %v5282_v43 = vpop.permute.xlu0 %1172 }
 0x2ae   : > { %v4218_v61 = vpop.eup %4217 }
 0x2af   : > { %v4220_v42 = vpop.eup %4219 }
 0x2b0   : > { %v1091_v25 = vpack.c.bf16 %v4218_v61, %v4220_v42  ;;  %v4222_v14 = vpop.eup %4221  ;;  %v5313_v42 = vld [vmem:[#allocation3 + $0xf8] sm:$0xff] }
 0x2b2   : > { %v4224_v1 = vpop.eup %4223  ;;  %3900 = vmatprep.mubr.msk.bf16.mxu1 %vm475_vm0, %v1091_v25 }
 0x2b3   : > { %v1092_v62 = vpack.c.bf16 %v4224_v1, %v4222_v14 }
 0x2b5   : > { %3901 = vmatmul.mubr.msk.bf16.vlgmr.msra.gmra.mrb[8].mxu1 %vm475_vm0, %v1092_v62 }
 0x2b6   : > { %3905 = vmatpush3.bf16.msra.mxu1 %v4862_v12  ;;  %3908 = vmatprep.mubr.msk.bf16.mxu1 %vm475_vm0, %v1091_v25  ;;  %v1380_v12 = vpop.permute.xlu0 %1379  ;;  %v5830_v25 = vsub.f32 %v4983_v23, %v4988_v28  ;;  %v5832_v28 = vsub.f32 %v5058_v10, %v5064_v36 }
 0x2b7   : > { %3906 = vmatprep.subr.bf16.mxu1 %v4866_v15  ;;  %v1385_v51 = vsub.f32 %v4854_v8, %v1380_v12 }
 0x2b8   : > { %v1358_v26 = vmul.f32 1.442695, %v5830_v25 }
 0x2ba   : > { %3907 = vmatpush3.bf16.msra.mxu1 %v4866_v15  ;;  %v5829_v15 = vsub.f32 %v4993_v32, %v5005_v58  ;;  %v1370_v35 = vpop.permute.xlu0 %1369  ;;  %v5831_v32 = vsub.f32 %v5066_v40, %v5075_v18  ;;  %v1392_v40 = vmul.f32 1.442695, %v1385_v51  ;;  %v5839_v51 = vsub.f32 %v5077_v50, %v5087_v37 }
 0x2bb   : > { %3920 = vmatprep.subr.bf16.mxu1 %v5811_v48  ;;  %v1383_v56 = vsub.f32 %v4856_v9, %v1370_v35  ;;  %v1661_v9 = vmul.f32 1.442695, %v5832_v28  ;;  %v5841_v28 = vsub.f32 %v5130_v11, %v5145_v21 }
 0x2bc   : > { %v1354_v57 = vmul.f32 1.442695, %v5829_v15  ;;  %v1657_v58 = vmul.f32 1.442695, %v5831_v32  ;;  %v5834_v15 = vsub.f32 %v5114_v13, %v5128_v17  ;;  %v5836_v17 = vsub.f32 %v5099_v39, %v5110_v52 }
 0x2bd   : > { %3909 = vmatmul.mubr.msk.bf16.vlgmr.msra.gmra.mrb[12].mxu1 %vm475_vm0, %v1092_v62  ;;  %v1388_v41 = vmul.f32 1.442695, %v1383_v56  ;;  %v5838_v39 = vsub.f32 %v5156_v49, %v5168_v45  ;;  %v2271_v50 = vmul.f32 1.442695, %v5841_v28 }
 0x2be   : > { %3921 = vmatpush3.bf16.msra.mxu1 %v5811_v48  ;;  %4225 = vpow2.f32 %v1354_v57  ;;  %v1962_v57 = vmul.f32 1.442695, %v5834_v15  ;;  %v1966_v13 = vmul.f32 1.442695, %v5836_v17 }
 0x2bf   : > { %3922 = vmatprep.subr.bf16.mxu1 %v5811_v48  ;;  %4227 = vpow2.f32 %v1358_v26  ;;  %v2267_v52 = vmul.f32 1.442695, %v5838_v39 }
 0x2c0   : > { %4229 = vpow2.f32 %v1657_v58 }
 0x2c1   : > { %4231 = vpow2.f32 %v1388_v41  ;;  %v1663_v41 = vmul.f32 1.442695, %v5839_v51  ;;  %v5851_v51 = vld [vmem:[#allocation38_spill] sm:$0xff] }
 0x2c2   : > { %3923 = vmatpush3.bf16.msra.mxu1 %v5811_v48 }
 0x2c8   : > { %v5316_v1 = vpop.eup %4225 }
 0x2d4   : > { %v2861_v14 = vpop.xlane.xlu1 %2860 }
 0x2d5   : > { %v5290_v4 = vmax.f32 %v5284_v46, %v2861_v14 }
 0x2d7   : > { %3081 = vst.msk [vmem:[#allocation3 + $0xf0] sm:$0xff] %vm410_vm1, %v5290_v4  ;;  %2893 = vperm.xlu0 %4121, %v5290_v4  }
 0x2d8   : > { %v5299_v16 = vpop.permute.xlu1 %1187 }
 0x2db   : > { %2713 = vrot.lane.b32.xlu0 %v5235_v44, %s4428_s12 }
 0x2dc   : > { %v1365_v54 = vpop.permute.xlu1 %1364 }
 0x2dd   : > { %v1382_v23 = vsub.f32 %v4850_v6, %v1365_v54  ;;  %v5833_v6 = vsub.f32 %v4990_v30, %v5000_v38  ;;  %v5835_v30 = vsub.f32 %v5012_v7, %v5019_v20  ;;  %v5837_v7 = vsub.f32 %v5089_v53, %v5097_v19 }
 0x2de   : > { %v5840_v19 = vsub.f32 %v5112_v55, %v5125_v33 }
 0x2df   : > { %v1386_v61 = vmul.f32 1.442695, %v1382_v23  ;;  %3016 = vrot.lane.b32.xlu0 %v5235_v44, %s4429_s28  ;;  %v1356_v10 = vmul.f32 1.442695, %v5833_v6  ;;  %v1360_v38 = vmul.f32 1.442695, %v5835_v30  ;;  %v5844_v30 = vsub.f32 %v5187_v3, %v5203_v47 }
 0x2e0   : > { %v1375_v18 = vpop.permute.xlu1 %1374  ;;  %v1659_v20 = vmul.f32 1.442695, %v5837_v7  ;;  %v1964_v23 = vmul.f32 1.442695, %v5840_v19  ;;  %v5849_v47 = vld [vmem:[#allocation14_spill] sm:$0xff] }
 0x2e1   : > { %4233 = vpow2.f32 %v1386_v61  ;;  %v1384_v8 = vsub.f32 %v4848_v5, %v1375_v18  ;;  %v5331_v5 = vpop.eup %4227 }
 0x2e2   : > { %v2864_v36 = vpop.xlane.xlu0 %2863  ;;  %4235 = vpow2.f32 %v1661_v9  ;;  %v5342_v35 = vpop.eup %4229  ;;  %v5842_v9 = vsub.f32 %v5205_v22, %v5214_v60 }
 0x2e3   : > { %v1390_v62 = vmul.f32 1.442695, %v1384_v8  ;;  %v5322_v12 = vmax.f32 %v5313_v42, %v2864_v36  ;;  %1475 = vperm.xlu0 %4121, %v5316_v1   ;;  %4237 = vpow2.f32 %v1392_v40  ;;  %v4232_v25 = vpop.eup %4231  ;;  %v5843_v36 = vsub.f32 %v5136_v34, %v5148_v63  ;;  %v5845_v63 = vld [vmem:[#allocation39_spill] sm:$0xff]  ;;  %v5846_v34 = vld [vmem:[#allocation41_spill] sm:$0xff] }
 0x2e4   : > { %v5336_v14 = vpop.permute.xlu1 %1177  ;;  %v2570_v55 = vmul.f32 1.442695, %v5842_v9  ;;  %v5847_v17 = vsub.f32 %v5845_v63, %v5846_v34 }
 0x2e5   : > { %4239 = vpow2.f32 %v1390_v62  ;;  %3082 = vst.msk [vmem:[#allocation3 + $0xf8] sm:$0xff] %vm410_vm1, %v5322_v12  ;;  %2898 = vperm.xlu1 %4120, %v5322_v12  }
 0x2e6   : > { %4241 = vpow2.f32 %v1356_v10 }
 0x2e7   : > { %1485 = vperm.xlu0 %4121, %v5331_v5   ;;  %4243 = vpow2.f32 %v1962_v57 }
 0x2e8   : > { %4245 = vpow2.f32 %v1360_v38  ;;  %v2574_v38 = vmul.f32 1.442695, %v5844_v30 }
 0x2e9   : > { %2715 = vrot.lane.b32.xlu1 %v5259_v2, %s4428_s12  ;;  %4247 = vpow2.f32 %v1966_v13  ;;  %v2269_v13 = vmul.f32 1.442695, %v5847_v17 }
 0x2ea   : > { %v1668_v26 = vpop.permute.xlu1 %1667  ;;  %4249 = vpow2.f32 %v1659_v20 }
 0x2eb   : > { %v4234_v56 = vpop.eup %4233  ;;  %1778 = vperm.xlu0 %4121, %v5342_v35   ;;  %v1685_v54 = vsub.f32 %v4871_v27, %v1668_v26  ;;  %4251 = vpow2.f32 %v2267_v52  ;;  %v5848_v26 = vld [vmem:[#allocation11_spill] sm:$0xff] }
 0x2ec   : > { %v1394_v32 = vpack.c.bf16 %v4232_v25, %v4234_v56  ;;  %v5353_v58 = vpop.eup %4235  ;;  %4253 = vpow2.f32 %v1663_v41 }
 0x2ed   : > { %3018 = vrot.lane.b32.xlu1 %v5259_v2, %s4429_s28  ;;  %v4238_v53 = vpop.eup %4237  ;;  %v1689_v61 = vmul.f32 1.442695, %v1685_v54  ;;  %4255 = vpow2.f32 %v1964_v23 }
 0x2ee   : > { %3924 = vmatprep.mubr.msk.bf16.mxu1 %vm475_vm0, %v1394_v32  ;;  %v1678_v45 = vpop.permute.xlu1 %1677  ;;  %4257 = vpow2.f32 %v2271_v50 }
 0x2ef   : > { %v4240_v49 = vpop.eup %4239  ;;  %v1687_v37 = vsub.f32 %v4869_v24, %v1678_v45  ;;  %1788 = vperm.xlu0 %4121, %v5353_v58   ;;  %4259 = vpow2.f32 %v2570_v55  ;;  %v5853_v45 = vld [vmem:[#allocation46_spill] sm:$0xff] }
 0x2f0   : > { %v5370_v27 = vpop.eup %4241  ;;  %v5375_v33 = vpack.c.bf16 %v4238_v53, %v4240_v49  ;;  %4261 = vpow2.f32 %v1689_v61  ;;  %v5854_v49 = vld [vmem:[#allocation47_spill] sm:$0xff]  ;;  %v5856_v61 = vld [vmem:[#allocation10_spill] sm:$0xff] }
 0x2f1   : > { %1480 = vperm.xlu1 %4120, %v5370_v27   ;;  %v5378_v40 = vpop.eup %4243  ;;  %v1693_v11 = vmul.f32 1.442695, %v1687_v37  ;;  %v5855_v28 = vsub.f32 %v5853_v45, %v5854_v49 }
 0x2f2   : > { %v1673_v24 = vpop.permute.xlu0 %1672  ;;  %3925 = vmatmul.mubr.msk.bf16.vlgmr.msra.gmra.mrb[16].mxu1 %vm475_vm0, %v5375_v33  ;;  %v1683_v21 = vpop.permute.xlu1 %1682 }
 0x2f3   : > { %v1686_v18 = vsub.f32 %v4877_v31, %v1673_v24  ;;  %v1688_v60 = vsub.f32 %v4874_v29, %v1683_v21  ;;  %2083 = vperm.xlu0 %4121, %v5378_v40   ;;  %3932 = vmatprep.mubr.msk.bf16.mxu1 %vm475_vm0, %v1394_v32  ;;  %v5386_v22 = vpop.eup %4245  ;;  %v1968_v31 = vmul.f32 1.442695, %v5843_v36  ;;  %v2871_v29 = vsub.f32 %v5284_v46, %v5290_v4  ;;  %v5850_v32 = vld [vmem:[#allocation37_spill] sm:$0xff]  ;;  %v5857_v24 = vld [vmem:[#allocation12_spill] sm:$0xff] }
 0x2f4   : > { %v5389_v10 = vpop.eup %4247  ;;  %4263 = vpow2.f32 %v1693_v11  ;;  %v5852_v41 = vsub.f32 %v5850_v32, %v5851_v51  ;;  %v2873_v50 = vmul.f32 1.442695, %v5855_v28  ;;  %v5864_v32 = vld [vmem:[#allocation18_spill] sm:$0xff] }
 0x2f5   : > { %v1691_v8 = vmul.f32 1.442695, %v1686_v18  ;;  %v1695_v6 = vmul.f32 1.442695, %v1688_v60  ;;  %1490 = vperm.xlu1 %4120, %v5386_v22   ;;  %v5397_v57 = vpop.eup %4249  ;;  %v2877_v4 = vmul.f32 1.442695, %v2871_v29 }
 0x2f6   : > { %v1498_v62 = vpop.permute.xlu0 %1497  ;;  %v1500_v15 = vpop.permute.xlu1 %1499  ;;  %v2273_v54 = vmul.f32 1.442695, %v5852_v41  ;;  %v5859_v29 = vld [vmem:[#allocation45_spill] sm:$0xff]  ;;  %v5865_v41 = vld [vmem:[#allocation20_spill] sm:$0xff] }
 0x2f7   : > { %4265 = vpow2.f32 %v1691_v8  ;;  %3928 = vmatprep.subr.bf16.mxu1 %v1498_v62  ;;  %2093 = vperm.xlu0 %4121, %v5389_v10   ;;  %v5406_v46 = vpop.eup %4251 }
 0x2f8   : > { %4267 = vpow2.f32 %v1695_v6  ;;  %3929 = vmatpush3.bf16.msra.mxu1 %v1498_v62  ;;  %v5408_v20 = vpop.eup %4253 }
 0x2f9   : > { %1783 = vperm.xlu1 %4120, %v5397_v57   ;;  %3930 = vmatprep.subr.bf16.mxu1 %v1500_v15  ;;  %4269 = vpow2.f32 %v1968_v31  ;;  %v5413_v39 = vpop.eup %4255  ;;  %v5858_v31 = vld [vmem:[#allocation44_spill] sm:$0xff] }
 0x2fa   : > { %v1973_v25 = vpop.permute.xlu0 %1972  ;;  %v1978_v7 = vpop.permute.xlu1 %1977  ;;  %4271 = vpow2.f32 %v2574_v38  ;;  %v5860_v62 = vsub.f32 %v5858_v31, %v5859_v29 }
 0x2fb   : > { %v1990_v3 = vsub.f32 %v5848_v26, %v1973_v25  ;;  %v1991_v56 = vsub.f32 %v5849_v47, %v1978_v7  ;;  %2388 = vperm.xlu0 %4121, %v5406_v46   ;;  %v5415_v52 = vpop.eup %4257  ;;  %4273 = vpow2.f32 %v2269_v13  ;;  %v5861_v13 = vld [vmem:[#allocation42_spill] sm:$0xff]  ;;  %v2872_v26 = vsub.f32 %v5313_v42, %v5322_v12 }
 0x2fc   : > { %3931 = vmatpush3.bf16.msra.mxu1 %v1500_v15  ;;  %v5422_v23 = vpop.eup %4259  ;;  %4275 = vpow2.f32 %v2877_v4  ;;  %v2572_v15 = vmul.f32 1.442695, %v5860_v62  ;;  %v5862_v4 = vld [vmem:[#allocation43_spill] sm:$0xff] }
 0x2fd   : > { %v1994_v53 = vmul.f32 1.442695, %v1990_v3  ;;  %v1996_v19 = vmul.f32 1.442695, %v1991_v56  ;;  %1793 = vperm.xlu1 %4120, %v5408_v20   ;;  %3944 = vmatprep.subr.bf16.mxu1 %v5811_v48  ;;  %v4262_v55 = vpop.eup %4261  ;;  %v5863_v25 = vsub.f32 %v5861_v13, %v5862_v4  ;;  %v2879_v49 = vmul.f32 1.442695, %v2872_v26 }
 0x2fe   : > { %v1983_v37 = vpop.permute.xlu0 %1982  ;;  %v1988_v9 = vpop.permute.xlu1 %1987 }
 0x2ff   : > { %4277 = vpow2.f32 %v1994_v53  ;;  %v1992_v11 = vsub.f32 %v5856_v61, %v1983_v37  ;;  %v1993_v21 = vsub.f32 %v5857_v24, %v1988_v9  ;;  %2398 = vperm.xlu0 %4121, %v5415_v52   ;;  %3933 = vmatmul.mubr.msk.bf16.vlgmr.msra.gmra.mrb[20].mxu1 %vm475_vm0, %v5375_v33  ;;  %v4264_v18 = vpop.eup %4263  ;;  %v2576_v7 = vmul.f32 1.442695, %v5863_v25  ;;  %v5866_v9 = vld [vmem:[#allocation17_spill] sm:$0xff]  ;;  %v5867_v61 = vld [vmem:[#allocation19_spill] sm:$0xff] }
 0x300   : > { %4279 = vpow2.f32 %v1996_v19  ;;  %3945 = vmatpush3.bf16.msra.mxu1 %v5811_v48  ;;  %v5871_v25 = vld [vmem:[#allocation21_spill] sm:$0xff] }
 0x301   : > { %v4266_v60 = vpop.eup %4265  ;;  %4281 = vpow2.f32 %v2273_v54  ;;  %v1998_v8 = vmul.f32 1.442695, %v1992_v11  ;;  %v2000_v6 = vmul.f32 1.442695, %v1993_v21  ;;  %2088 = vperm.xlu1 %4120, %v5413_v39   ;;  %3946 = vmatprep.subr.bf16.mxu1 %v5811_v48 }
 0x302   : > { %v4268_v36 = vpop.eup %4267  ;;  %4283 = vpow2.f32 %v2873_v50  ;;  %v1801_v30 = vpop.permute.xlu0 %1800  ;;  %v1697_v38 = vpack.c.bf16 %v4266_v60, %v4262_v55 }
 0x303   : > { %v1803_v33 = vpop.permute.xlu1 %1802  ;;  %4285 = vpow2.f32 %v1998_v8  ;;  %2691 = vperm.xlu0 %4121, %v5422_v23   ;;  %v1698_v63 = vpack.c.bf16 %v4268_v36, %v4264_v18  ;;  %v5439_v34 = vpop.eup %4269  ;;  %v5868_v36 = vld [vmem:[#allocation40_spill] sm:$0xff] }
 0x304   : > { %4287 = vpow2.f32 %v2000_v6  ;;  %3947 = vmatpush3.bf16.msra.mxu1 %v5811_v48  ;;  %3948 = vmatprep.mubr.msk.bf16.mxu1 %vm475_vm0, %v1697_v38  ;;  %v5444_v17 = vpop.eup %4271  ;;  %v5869_v31 = vsub.f32 %v5868_v36, %v5190_v59  ;;  %v5875_v36 = vld [vmem:[#allocation26_spill] sm:$0xff] }
 0x305   : > { %2098 = vperm.xlu1 %4120, %v5439_v34   ;;  %3952 = vmatprep.subr.bf16.mxu1 %v1801_v30  ;;  %4289 = vpow2.f32 %v2572_v15  ;;  %v5451_v56 = vpop.eup %4273 }
 0x306   : > { %v2278_v3 = vpop.permute.xlu0 %2277  ;;  %v5457_v53 = vpop.eup %4275  ;;  %4291 = vpow2.f32 %v2576_v7  ;;  %v2875_v29 = vmul.f32 1.442695, %v5869_v31 }
 0x307   : > { %v2283_v47 = vpop.permute.xlu1 %2282  ;;  %v2295_v51 = vsub.f32 %v5864_v32, %v2278_v3  ;;  %2701 = vperm.xlu0 %4121, %v5444_v17   ;;  %3949 = vmatmul.mubr.msk.bf16.vlgmr.msra.gmra.mrb[24].mxu1 %vm475_vm0, %v1698_v63 }
 0x308   : > { %v2296_v54 = vsub.f32 %v5865_v41, %v2283_v47  ;;  %3953 = vmatpush3.bf16.msra.mxu1 %v1801_v30  ;;  %3956 = vmatprep.mubr.msk.bf16.mxu1 %vm475_vm0, %v1697_v38  ;;  %v5872_v47 = vld [vmem:[#allocation24_spill] sm:$0xff] }
 0x309   : > { %v4278_v19 = vpop.eup %4277  ;;  %v2299_v45 = vmul.f32 1.442695, %v2295_v51  ;;  %2393 = vperm.xlu1 %4120, %v5451_v56   ;;  %3954 = vmatprep.subr.bf16.mxu1 %v1803_v33 }
 0x30a   : > { %v2301_v42 = vmul.f32 1.442695, %v2296_v54  ;;  %v4280_v12 = vpop.eup %4279  ;;  %v2288_v28 = vpop.permute.xlu0 %2287 }
 0x30b   : > { %v2293_v50 = vpop.permute.xlu1 %2292  ;;  %v5461_v37 = vpop.eup %4281  ;;  %4293 = vpow2.f32 %v2299_v45  ;;  %v2297_v55 = vsub.f32 %v5866_v9, %v2288_v28  ;;  %3004 = vperm.xlu0 %4121, %v5457_v53   ;;  %v2002_v24 = vpack.c.bf16 %v4280_v12, %v4278_v19 }
 0x30c   : > { %v2298_v11 = vsub.f32 %v5867_v61, %v2293_v50  ;;  %v5466_v21 = vpop.eup %4283  ;;  %4295 = vpow2.f32 %v2301_v42  ;;  %3955 = vmatpush3.bf16.msra.mxu1 %v1803_v33  ;;  %v5870_v33 = vld [vmem:[#allocation22_spill] sm:$0xff]  ;;  %v5873_v50 = vld [vmem:[#allocation23_spill] sm:$0xff]  ;;  %v785_v61 = vld [vmem:[#allocation4] sm:$0xff] }
 0x30d   : > { %v4286_v18 = vpop.eup %4285  ;;  %v2303_v60 = vmul.f32 1.442695, %v2297_v55  ;;  %2403 = vperm.xlu1 %4120, %v5461_v37   ;;  %3968 = vmatprep.subr.bf16.mxu1 %v5811_v48  ;;  %4297 = vpow2.f32 %v2879_v49  ;;  %v787_v49 = vld [vmem:[#allocation4 + $0x10] sm:$0xff] }
 0x30e   : > { %v2305_v8 = vmul.f32 1.442695, %v2298_v11  ;;  %v4288_v6 = vpop.eup %4287  ;;  %v2581_v62 = vpop.permute.xlu0 %2580  ;;  %v788_v11 = vld [vmem:[#allocation4 + $0x18] sm:$0xff] }
 0x30f   : > { %4299 = vpow2.f32 %v2303_v60  ;;  %2994 = vperm.xlu0 %4121, %v5466_v21   ;;  %3957 = vmatmul.mubr.msk.bf16.vlgmr.msra.gmra.mrb[28].mxu1 %vm475_vm0, %v1698_v63  ;;  %v2003_v15 = vpack.c.bf16 %v4288_v6, %v4286_v18  ;;  %v5475_v30 = vpop.eup %4289  ;;  %v2598_v38 = vsub.f32 %v5870_v33, %v2581_v62  ;;  %v5874_v60 = vld [vmem:[#allocation9_spill] sm:$0xff]  ;;  %v786_v6 = vld [vmem:[#allocation4 + $0x8] sm:$0xff] }
 0x310   : > { %4301 = vpow2.f32 %v2305_v8  ;;  %3969 = vmatpush3.bf16.msra.mxu1 %v5811_v48  ;;  %3972 = vmatprep.mubr.msk.bf16.mxu1 %vm475_vm0, %v2002_v24  ;;  %v5482_v13 = vpop.eup %4291  ;;  %v791_v8 = vmul.f32 %v5874_v60, %v787_v49  ;;  %v5876_v33 = vld [vmem:[#allocation13_spill] sm:$0xff]  ;;  %v5879_v49 = vld [vmem:[#allocation28_spill] sm:$0xff] }
 0x311   : > { %2696 = vperm.xlu1 %4120, %v5475_v30   ;;  %3970 = vmatprep.subr.bf16.mxu1 %v5811_v48  ;;  %4303 = vpow2.f32 %v2875_v29  ;;  %v2602_v4 = vmul.f32 1.442695, %v2598_v38  ;;  %v789_v38 = vmul.f32 %v5876_v33, %v785_v61  ;;  %v5880_v61 = vld [vmem:[#allocation32_spill] sm:$0xff] }
 0x312   : > { %v2591_v59 = vpop.permute.xlu0 %2590 }
 0x313   : > { %v2600_v7 = vsub.f32 %v5871_v25, %v2591_v59  ;;  %4305 = vpow2.f32 %v2602_v4  ;;  %v5877_v4 = vld [vmem:[#allocation15_spill] sm:$0xff] }
 0x314   : > { %3971 = vmatpush3.bf16.msra.mxu1 %v5811_v48 }
 0x315   : > { %v4294_v63 = vpop.eup %4293  ;;  %2706 = vperm.xlu1 %4120, %v5482_v13   ;;  %v2586_v26 = vpop.permute.xlu1 %2585  ;;  %3976 = vmatprep.subr.bf16.mxu1 %v5235_v44  ;;  %v2606_v42 = vmul.f32 1.442695, %v2600_v7 }
 0x316   : > { %v4296_v3 = vpop.eup %4295  ;;  %v2599_v32 = vsub.f32 %v5872_v47, %v2586_v26  ;;  %v5489_v51 = vpop.permute.xlu0 %2410  ;;  %v5878_v26 = vld [vmem:[#allocation16_spill] sm:$0xff] }
 0x317   : > { %3973 = vmatmul.mubr.msk.bf16.vlgmr.msra.gmra.mrb[32].mxu1 %vm475_vm0, %v2003_v15  ;;  %v5492_v41 = vpack.c.bf16 %v4296_v3, %v4294_v63  ;;  %v5494_v54 = vpop.eup %4297  ;;  %v790_v3 = vmul.f32 %v5878_v26, %v786_v6 }
 0x318   : > { %v2604_v19 = vmul.f32 1.442695, %v2599_v32  ;;  %3977 = vmatpush3.bf16.msra.mxu1 %v5235_v44  ;;  %3980 = vmatprep.mubr.msk.bf16.mxu1 %vm475_vm0, %v2002_v24 }
 0x319   : > { %v4300_v45 = vpop.eup %4299  ;;  %3009 = vperm.xlu1 %4120, %v5494_v54   ;;  %v2596_v12 = vpop.permute.xlu1 %2595  ;;  %3978 = vmatprep.subr.bf16.mxu1 %v5259_v2 }
 0x31a   : > { %v4302_v28 = vpop.eup %4301  ;;  %4307 = vpow2.f32 %v2604_v19  ;;  %v2601_v9 = vsub.f32 %v5873_v50, %v2596_v12  ;;  %v2884_v55 = vpop.permute.xlu0 %2883  ;;  %v859_v19 = vld [vmem:[#allocation5 + $0x10] sm:$0xff] }
 0x31b   : > { %v5501_v18 = vpack.c.bf16 %v4302_v28, %v4300_v45  ;;  %v5503_v44 = vpop.eup %4303  ;;  %4309 = vpow2.f32 %v2606_v42  ;;  %v2901_v31 = vsub.f32 %v5875_v36, %v2884_v55 }
 0x31c   : > { %v2608_v24 = vmul.f32 1.442695, %v2601_v9  ;;  %3979 = vmatpush3.bf16.msra.mxu1 %v5259_v2  ;;  %v792_v2 = vmul.f32 %v5877_v4, %v788_v11  ;;  %v860_v9 = vld [vmem:[#allocation5 + $0x18] sm:$0xff]  ;;  %v883_v11 = vmul.f32 %v5880_v61, %v859_v19  ;;  %v5884_v61 = vld [vmem:[#allocation25_spill] sm:$0xff] }
 0x31d   : > { %v3878_v29 = vpop.f32.mrb[0].mxu1  ;;  %2999 = vperm.xlu1 %4120, %v5503_v44   ;;  %v5509_v62 = vpop.permute.xlu1 %2412  ;;  %3992 = vmatprep.subr.bf16.mxu1 %v5811_v48  ;;  %v2905_v45 = vmul.f32 1.442695, %v2901_v31  ;;  %v5883_v4 = vld [vmem:[#allocation36_spill] sm:$0xff] }
 0x31e   : > { %4311 = vpow2.f32 %v2608_v24  ;;  %v850_v59 = vadd.f32 %v3878_v29, %v791_v8  ;;  %v833_v63 = vpop.f32.mrb[1].mxu1  ;;  %v4306_v50 = vpop.eup %4305  ;;  %v858_v24 = vld [vmem:[#allocation5 + $0x8] sm:$0xff]  ;;  %v5882_v29 = vld [vmem:[#allocation35_spill] sm:$0xff] }
 0x31f   : > { %v848_v25 = vadd.f32 %v833_v63, %v789_v38  ;;  %v3879_v7 = vpop.f32.mrb[2].mxu1  ;;  %3981 = vmatmul.mubr.msk.bf16.vlgmr.msra.gmra.mrb[36].mxu1 %vm475_vm0, %v2003_v15  ;;  %v857_v15 = vld [vmem:[#allocation5] sm:$0xff]  ;;  %v5881_v8 = vld [vmem:[#allocation34_spill] sm:$0xff]  ;;  %4313 = vpow2.f32 %v2905_v45  ;;  %v884_v33 = vmul.f32 %v5882_v29, %v860_v9 }
 0x320   : > { %855 = vst.msk [vmem:[#allocation4 + $0x10] sm:$0xff] %vm410_vm1, %v850_v59  ;;  %v851_v47 = vadd.f32 %v3879_v7, %v792_v2  ;;  %v836_v32 = vpop.f32.mrb[3].mxu1  ;;  %3993 = vmatpush3.bf16.msra.mxu1 %v5811_v48  ;;  %3996 = vmatprep.mubr.msk.bf16.mxu1 %vm475_vm0, %v5492_v41  ;;  %v881_v6 = vmul.f32 %v5881_v8, %v857_v15  ;;  %v5885_v8 = vld [vmem:[#allocation27_spill] sm:$0xff] }
 0x321   : > { %853 = vst.msk [vmem:[#allocation4] sm:$0xff] %vm410_vm1, %v848_v25  ;;  %v849_v42 = vadd.f32 %v836_v32, %v790_v3  ;;  %v2889_v12 = vpop.permute.xlu1 %2888  ;;  %3994 = vmatprep.subr.bf16.mxu1 %v5811_v48  ;;  %v882_v2 = vmul.f32 %v5883_v4, %v858_v24  ;;  %v1096_v4 = vld [vmem:[#allocation4 + $0x30] sm:$0xff] }
 0x322   : > { %856 = vst.msk [vmem:[#allocation4 + $0x18] sm:$0xff] %vm410_vm1, %v851_v47  ;;  %v2902_v28 = vsub.f32 %v5879_v49, %v2889_v12 }
 0x323   : > { %854 = vst.msk [vmem:[#allocation4 + $0x8] sm:$0xff] %vm410_vm1, %v849_v42 }
 0x324   : > { %v4308_v55 = vpop.eup %4307  ;;  %v2907_v60 = vmul.f32 1.442695, %v2902_v28  ;;  %3995 = vmatpush3.bf16.msra.mxu1 %v5811_v48 }
 0x325   : > { %v3886_v36 = vpop.f32.mrb[4].mxu1  ;;  %4000 = vmatprep.subr.bf16.mxu1 %v5489_v51  ;;  %v2610_v31 = vpack.c.bf16 %v4308_v55, %v4306_v50  ;;  %v4310_v63 = vpop.eup %4309 }
 0x326   : > { %4315 = vpow2.f32 %v2907_v60  ;;  %v948_v38 = vadd.f32 %v3886_v36, %v883_v11  ;;  %v931_v59 = vpop.f32.mrb[5].mxu1 }
 0x327   : > { %v3088_v25 = vld [vmem:[#allocation4 + $0x10] sm:$0xff]  ;;  %v946_v7 = vadd.f32 %v931_v59, %v881_v6  ;;  %v3887_v26 = vpop.f32.mrb[6].mxu1  ;;  %3997 = vmatmul.mubr.msk.bf16.vlgmr.msra.gmra.mrb[40].mxu1 %vm475_vm0, %v5501_v18 }
 0x328   : > { %v4312_v3 = vpop.eup %4311  ;;  %4317 = vrcp.f32 %v3088_v25  ;;  %952 = vst.msk [vmem:[#allocation5 + $0x10] sm:$0xff] %vm475_vm0, %v948_v38  ;;  %v949_v47 = vadd.f32 %v3887_v26, %v884_v33  ;;  %v934_v32 = vpop.f32.mrb[7].mxu1  ;;  %4001 = vmatpush3.bf16.msra.mxu1 %v5489_v51  ;;  %4004 = vmatprep.mubr.msk.bf16.mxu1 %vm475_vm0, %v5492_v41  ;;  %v3086_v19 = vld [vmem:[#allocation4] sm:$0xff]  ;;  %v1097_v25 = vld [vmem:[#allocation4 + $0x38] sm:$0xff] }
 0x329   : > { %v3089_v45 = vld [vmem:[#allocation4 + $0x18] sm:$0xff]  ;;  %950 = vst.msk [vmem:[#allocation5] sm:$0xff] %vm475_vm0, %v946_v7  ;;  %v947_v42 = vadd.f32 %v934_v32, %v882_v2  ;;  %4002 = vmatprep.subr.bf16.mxu1 %v5509_v62  ;;  %v2611_v12 = vpack.c.bf16 %v4312_v3, %v4310_v63  ;;  %v4314_v51 = vpop.eup %4313  ;;  %v1094_v2 = vld [vmem:[#allocation4 + $0x20] sm:$0xff]  ;;  %v1095_v3 = vld [vmem:[#allocation4 + $0x28] sm:$0xff] }
 0x32a   : > { %4319 = vrcp.f32 %v3089_v45  ;;  %953 = vst.msk [vmem:[#allocation5 + $0x18] sm:$0xff] %vm475_vm0, %v949_v47  ;;  %v3087_v15 = vld [vmem:[#allocation4 + $0x8] sm:$0xff]  ;;  %v5886_v7 = vld [vmem:[#allocation29_spill] sm:$0xff] }
 0x32b   : > { %951 = vst.msk [vmem:[#allocation5 + $0x8] sm:$0xff] %vm475_vm0, %v947_v42  ;;  %4321 = vrcp.f32 %v3086_v19  ;;  %v1100_v26 = vmul.f32 %v5886_v7, %v1096_v4  ;;  %v5887_v47 = vld [vmem:[#allocation30_spill] sm:$0xff]  ;;  %v5888_v42 = vld [vmem:[#allocation31_spill] sm:$0xff] }
 0x32c   : > { %4003 = vmatpush3.bf16.msra.mxu1 %v5509_v62  ;;  %4323 = vrcp.f32 %v3087_v15  ;;  %v1098_v32 = vmul.f32 %v5887_v47, %v1094_v2 }
 0x32d   : > { %4016 = vmatprep.subr.bf16.mxu1 %v5811_v48 }
 0x32f   : > { %4005 = vmatmul.mubr.msk.bf16.vlgmr.msra.gmra.mrb[44].mxu1 %vm475_vm0, %v5501_v18 }
 0x330   : > { %v4316_v41 = vpop.eup %4315  ;;  %4017 = vmatpush3.bf16.msra.mxu1 %v5811_v48  ;;  %4020 = vmatprep.mubr.msk.bf16.mxu1 %vm475_vm0, %v2610_v31 }
 0x331   : > { %4018 = vmatprep.subr.bf16.mxu1 %v5811_v48  ;;  %v2913_v49 = vpack.c.bf16 %v4316_v41, %v4314_v51  ;;  %v5889_v41 = vld [vmem:[#allocation33_spill] sm:$0xff] }
 0x332   : > { %v4318_v28 = vpop.eup %4317 }
 0x333   : > { %3110 = vperm.xlu0 %4121, %v4318_v28  }
 0x334   : > { %v4320_v50 = vpop.eup %4319  ;;  %4019 = vmatpush3.bf16.msra.mxu1 %v5811_v48 }
 0x335   : > { %3115 = vperm.xlu1 %4120, %v4320_v50   ;;  %v4322_v62 = vpop.eup %4321 }
 0x336   : > { %v4324_v9 = vpop.eup %4323 }
 0x337   : > { %3100 = vperm.xlu0 %4121, %v4322_v62   ;;  %4021 = vmatmul.mubr.msk.bf16.vlgmr.msra.gmra.mrb[48].mxu1 %vm475_vm0, %v2611_v12  ;;  %v1168_v62 = vld [vmem:[#allocation5 + $0x30] sm:$0xff] }
 0x338   : > { %4028 = vmatprep.mubr.msk.bf16.mxu1 %vm475_vm0, %v2610_v31 }
 0x339   : > { %3105 = vperm.xlu1 %4120, %v4324_v9  }
 0x356   : > { %v2894_v18 = vpop.permute.xlu0 %2893 }
 0x357   : > { %v2903_v11 = vsub.f32 %v5884_v61, %v2894_v18  ;;  %v1166_v18 = vld [vmem:[#allocation5 + $0x20] sm:$0xff]  ;;  %v1192_v61 = vmul.f32 %v5280_v0, %v1168_v62 }
 0x359   : > { %v2909_v24 = vmul.f32 1.442695, %v2903_v11  ;;  %v1167_v11 = vld [vmem:[#allocation5 + $0x28] sm:$0xff] }
 0x35a   : > { %v2714_v55 = vpop.permute.xlu0 %2713 }
 0x35b   : > { %4024 = vmatprep.subr.bf16.mxu1 %v2714_v55  ;;  %4325 = vpow2.f32 %v2909_v24  ;;  %v1190_v24 = vmul.f32 %v5282_v43, %v1166_v18 }
 0x35c   : > { %4025 = vmatpush3.bf16.msra.mxu1 %v2714_v55  ;;  %v1169_v55 = vld [vmem:[#allocation5 + $0x38] sm:$0xff] }
 0x35e   : > { %v3017_v33 = vpop.permute.xlu0 %3016 }
 0x364   : > { %v2899_v60 = vpop.permute.xlu1 %2898 }
 0x365   : > { %v2904_v6 = vsub.f32 %v5885_v8, %v2899_v60  ;;  %v4326_v31 = vpop.eup %4325  ;;  %v1193_v8 = vmul.f32 %v5299_v16, %v1169_v55 }
 0x367   : > { %v2911_v36 = vmul.f32 1.442695, %v2904_v6 }
 0x368   : > { %v2716_v29 = vpop.permute.xlu1 %2715 }
 0x369   : > { %4327 = vpow2.f32 %v2911_v36  ;;  %4026 = vmatprep.subr.bf16.mxu1 %v2716_v29 }
 0x36a   : > { %4027 = vmatpush3.bf16.msra.mxu1 %v2716_v29  ;;  %v1191_v29 = vmul.f32 %v5336_v14, %v1167_v11 }
 0x36b   : > { %4040 = vmatprep.subr.bf16.mxu1 %v5811_v48 }
 0x36c   : > { %v3019_v63 = vpop.permute.xlu1 %3018 }
 0x36d   : > { %4029 = vmatmul.mubr.msk.bf16.vlgmr.msra.gmra.mrb[52].mxu1 %vm475_vm0, %v2611_v12  ;;  %v1101_v12 = vmul.f32 %v5888_v42, %v1097_v25 }
 0x36e   : > { %4041 = vmatpush3.bf16.msra.mxu1 %v5811_v48  ;;  %4044 = vmatprep.mubr.msk.bf16.mxu1 %vm475_vm0, %v2913_v49 }
 0x36f   : > { %4042 = vmatprep.subr.bf16.mxu1 %v5811_v48 }
 0x372   : > { %4043 = vmatpush3.bf16.msra.mxu1 %v5811_v48 }
 0x373   : > { %v4328_v38 = vpop.eup %4327  ;;  %4048 = vmatprep.subr.bf16.mxu1 %v3017_v33 }
 0x374   : > { %v2914_v59 = vpack.c.bf16 %v4328_v38, %v4326_v31 }
 0x376   : > { %4045 = vmatmul.mubr.msk.bf16.vlgmr.msra.gmra.mrb[56].mxu1 %vm475_vm0, %v2914_v59 }
 0x377   : > { %4049 = vmatpush3.bf16.msra.mxu1 %v3017_v33  ;;  %4052 = vmatprep.mubr.msk.bf16.mxu1 %vm475_vm0, %v2913_v49  ;;  %v1099_v49 = vmul.f32 %v5889_v41, %v1095_v3  ;;  %v1397_v3 = vld [vmem:[#allocation4 + $0x40] sm:$0xff] }
 0x378   : > { %4050 = vmatprep.subr.bf16.mxu1 %v3019_v63 }
 0x37b   : > { %4051 = vmatpush3.bf16.msra.mxu1 %v3019_v63 }
 0x37e   : > { %4053 = vmatmul.mubr.msk.bf16.vlgmr.msra.gmra.mrb[60].mxu1 %vm475_vm0, %v2914_v59 }
 0x388   : > { %v3902_v48 = vpop.f32.mrb[8].mxu1 }
 0x389   : > { %v1159_v19 = vadd.f32 %v3902_v48, %v1100_v26  ;;  %v1142_v45 = vpop.f32.mrb[9].mxu1  ;;  %v1399_v26 = vld [vmem:[#allocation4 + $0x50] sm:$0xff]  ;;  %v1400_v48 = vld [vmem:[#allocation4 + $0x58] sm:$0xff] }
 0x38a   : > { %v1157_v15 = vadd.f32 %v1142_v45, %v1098_v32  ;;  %v3903_v51 = vpop.f32.mrb[10].mxu1  ;;  %v1403_v47 = vmul.f32 %v5331_v5, %v1399_v26  ;;  %v1398_v32 = vld [vmem:[#allocation4 + $0x48] sm:$0xff]  ;;  %v1401_v45 = vmul.f32 %v5316_v1, %v1397_v3  ;;  %v1471_v1 = vld [vmem:[#allocation5 + $0x50] sm:$0xff] }
 0x38b   : > { %1163 = vst.msk [vmem:[#allocation4 + $0x30] sm:$0xff] %vm410_vm1, %v1159_v19  ;;  %v1160_v28 = vadd.f32 %v3903_v51, %v1101_v12  ;;  %v1145_v50 = vpop.f32.mrb[11].mxu1  ;;  %v1701_v3 = vld [vmem:[#allocation4 + $0x68] sm:$0xff] }
 0x38c   : > { %1161 = vst.msk [vmem:[#allocation4 + $0x20] sm:$0xff] %vm410_vm1, %v1157_v15  ;;  %v1158_v9 = vadd.f32 %v1145_v50, %v1099_v49  ;;  %v1404_v15 = vmul.f32 %v5386_v22, %v1400_v48  ;;  %v1402_v49 = vmul.f32 %v5370_v27, %v1398_v32  ;;  %v1469_v22 = vld [vmem:[#allocation5 + $0x40] sm:$0xff] }
 0x38d   : > { %1164 = vst.msk [vmem:[#allocation4 + $0x38] sm:$0xff] %vm410_vm1, %v1160_v28  ;;  %v1476_v28 = vpop.permute.xlu0 %1475 }
 0x38e   : > { %1162 = vst.msk [vmem:[#allocation4 + $0x28] sm:$0xff] %vm410_vm1, %v1158_v9  ;;  %v1481_v9 = vpop.permute.xlu1 %1480 }
 0x390   : > { %v3910_v60 = vpop.f32.mrb[12].mxu1 }
 0x391   : > { %v1251_v6 = vadd.f32 %v3910_v60, %v1192_v61  ;;  %v1234_v36 = vpop.f32.mrb[13].mxu1  ;;  %v1486_v18 = vpop.permute.xlu0 %1485  ;;  %v1472_v61 = vld [vmem:[#allocation5 + $0x58] sm:$0xff] }
 0x392   : > { %v3124_v31 = vld [vmem:[#allocation4 + $0x30] sm:$0xff]  ;;  %v1249_v33 = vadd.f32 %v1234_v36, %v1190_v24  ;;  %v3911_v38 = vpop.f32.mrb[14].mxu1  ;;  %v1491_v11 = vpop.permute.xlu1 %1490  ;;  %v1495_v27 = vmul.f32 %v1486_v18, %v1471_v1  ;;  %v1470_v24 = vld [vmem:[#allocation5 + $0x48] sm:$0xff]  ;;  %v1775_v1 = vld [vmem:[#allocation5 + $0x78] sm:$0xff] }
 0x393   : > { %4329 = vrcp.f32 %v3124_v31  ;;  %1255 = vst.msk [vmem:[#allocation5 + $0x30] sm:$0xff] %vm475_vm0, %v1251_v6  ;;  %v1252_v59 = vadd.f32 %v3911_v38, %v1193_v8  ;;  %v1237_v63 = vpop.f32.mrb[15].mxu1  ;;  %v3122_v4 = vld [vmem:[#allocation4 + $0x20] sm:$0xff]  ;;  %v1493_v6 = vmul.f32 %v1476_v28, %v1469_v22  ;;  %v1773_v22 = vld [vmem:[#allocation5 + $0x68] sm:$0xff] }
 0x394   : > { %v3125_v0 = vld [vmem:[#allocation4 + $0x38] sm:$0xff]  ;;  %1253 = vst.msk [vmem:[#allocation5 + $0x20] sm:$0xff] %vm475_vm0, %v1249_v33  ;;  %v1250_v43 = vadd.f32 %v1237_v63, %v1191_v29  ;;  %v1496_v29 = vmul.f32 %v1491_v11, %v1472_v61 }
 0x395   : > { %4331 = vrcp.f32 %v3125_v0  ;;  %1256 = vst.msk [vmem:[#allocation5 + $0x38] sm:$0xff] %vm475_vm0, %v1252_v59  ;;  %v3123_v16 = vld [vmem:[#allocation4 + $0x28] sm:$0xff]  ;;  %v1494_v59 = vmul.f32 %v1481_v9, %v1470_v24  ;;  %v1772_v9 = vld [vmem:[#allocation5 + $0x60] sm:$0xff] }
 0x396   : > { %1254 = vst.msk [vmem:[#allocation5 + $0x28] sm:$0xff] %vm475_vm0, %v1250_v43  ;;  %4333 = vrcp.f32 %v3122_v4 }
 0x397   : > { %4335 = vrcp.f32 %v3123_v16 }
 0x39d   : > { %v4330_v14 = vpop.eup %4329 }
 0x39e   : > { %3146 = vperm.xlu0 %4121, %v4330_v14   ;;  %v1702_v14 = vld [vmem:[#allocation4 + $0x70] sm:$0xff] }
 0x39f   : > { %v4332_v2 = vpop.eup %4331  ;;  %v1706_v26 = vmul.f32 %v5353_v58, %v1702_v14 }
 0x3a0   : > { %3151 = vperm.xlu1 %4120, %v4332_v2   ;;  %v4334_v25 = vpop.eup %4333  ;;  %v1700_v2 = vld [vmem:[#allocation4 + $0x60] sm:$0xff] }
 0x3a1   : > { %v4336_v7 = vpop.eup %4335 }
 0x3a2   : > { %3136 = vperm.xlu0 %4121, %v4334_v25   ;;  %v1779_v25 = vpop.permute.xlu0 %1778 }
 0x3a4   : > { %3141 = vperm.xlu1 %4120, %v4336_v7   ;;  %v1703_v7 = vld [vmem:[#allocation4 + $0x78] sm:$0xff] }
 0x3c5   : > { %v3926_v19 = vpop.f32.mrb[16].mxu1 }
 0x3c6   : > { %v1462_v42 = vadd.f32 %v3926_v19, %v1403_v47  ;;  %v1445_v12 = vpop.f32.mrb[17].mxu1  ;;  %v1784_v47 = vpop.permute.xlu1 %1783  ;;  %v1704_v19 = vmul.f32 %v5342_v35, %v1700_v2  ;;  %v2006_v2 = vld [vmem:[#allocation4 + $0x88] sm:$0xff] }
 0x3c7   : > { %v1460_v51 = vadd.f32 %v1445_v12, %v1401_v45  ;;  %v3927_v41 = vpop.f32.mrb[18].mxu1  ;;  %v1707_v12 = vmul.f32 %v5408_v20, %v1703_v7 }
 0x3c8   : > { %1466 = vst.msk [vmem:[#allocation4 + $0x50] sm:$0xff] %vm410_vm1, %v1462_v42  ;;  %v1463_v50 = vadd.f32 %v3927_v41, %v1404_v15  ;;  %v1448_v62 = vpop.f32.mrb[19].mxu1 }
 0x3c9   : > { %1464 = vst.msk [vmem:[#allocation4 + $0x40] sm:$0xff] %vm410_vm1, %v1460_v51  ;;  %v1461_v5 = vadd.f32 %v1448_v62, %v1402_v49  ;;  %v1705_v49 = vmul.f32 %v5397_v57, %v1701_v3  ;;  %v1774_v62 = vld [vmem:[#allocation5 + $0x70] sm:$0xff] }
 0x3ca   : > { %1467 = vst.msk [vmem:[#allocation4 + $0x58] sm:$0xff] %vm410_vm1, %v1463_v50  ;;  %v1794_v18 = vpop.permute.xlu1 %1793 }
 0x3cb   : > { %1465 = vst.msk [vmem:[#allocation4 + $0x48] sm:$0xff] %vm410_vm1, %v1461_v5  ;;  %v1789_v5 = vpop.permute.xlu0 %1788  ;;  %v1799_v11 = vmul.f32 %v1794_v18, %v1775_v1 }
 0x3cc   : > { %v1798_v57 = vmul.f32 %v1789_v5, %v1774_v62 }
 0x3cf   : > { %v3160_v55 = vld [vmem:[#allocation4 + $0x50] sm:$0xff] }
 0x3d0   : > { %4337 = vrcp.f32 %v3160_v55  ;;  %v3158_v60 = vld [vmem:[#allocation4 + $0x40] sm:$0xff]  ;;  %v1796_v55 = vmul.f32 %v1779_v25, %v1772_v9  ;;  %v2089_v25 = vpop.permute.xlu1 %2088 }
 0x3d1   : > { %v3161_v8 = vld [vmem:[#allocation4 + $0x58] sm:$0xff] }
 0x3d2   : > { %4339 = vrcp.f32 %v3161_v8  ;;  %v3934_v36 = vpop.f32.mrb[20].mxu1  ;;  %v3159_v31 = vld [vmem:[#allocation4 + $0x48] sm:$0xff] }
 0x3d3   : > { %v1554_v33 = vadd.f32 %v3934_v36, %v1495_v27  ;;  %v1537_v38 = vpop.f32.mrb[21].mxu1  ;;  %4341 = vrcp.f32 %v3158_v60  ;;  %v1797_v60 = vmul.f32 %v1784_v47, %v1773_v22 }
 0x3d4   : > { %v1552_v63 = vadd.f32 %v1537_v38, %v1493_v6  ;;  %v3935_v4 = vpop.f32.mrb[22].mxu1  ;;  %4343 = vrcp.f32 %v3159_v31 }
 0x3d5   : > { %1558 = vst.msk [vmem:[#allocation5 + $0x50] sm:$0xff] %vm475_vm0, %v1554_v33  ;;  %v1555_v0 = vadd.f32 %v3935_v4, %v1496_v29  ;;  %v1540_v43 = vpop.f32.mrb[23].mxu1  ;;  %v2005_v4 = vld [vmem:[#allocation4 + $0x80] sm:$0xff] }
 0x3d6   : > { %1556 = vst.msk [vmem:[#allocation5 + $0x40] sm:$0xff] %vm475_vm0, %v1552_v63  ;;  %v1553_v16 = vadd.f32 %v1540_v43, %v1494_v59  ;;  %v2007_v63 = vld [vmem:[#allocation4 + $0x90] sm:$0xff] }
 0x3d7   : > { %1559 = vst.msk [vmem:[#allocation5 + $0x58] sm:$0xff] %vm475_vm0, %v1555_v0  ;;  %v2084_v0 = vpop.permute.xlu0 %2083  ;;  %v2011_v14 = vmul.f32 %v5389_v10, %v2007_v63 }
 0x3d8   : > { %1557 = vst.msk [vmem:[#allocation5 + $0x48] sm:$0xff] %vm475_vm0, %v1553_v16  ;;  %v2008_v16 = vld [vmem:[#allocation4 + $0x98] sm:$0xff] }
 0x3d9   : > { %v2012_v47 = vmul.f32 %v5439_v34, %v2008_v16 }
 0x3da   : > { %v4338_v48 = vpop.eup %4337  ;;  %v3950_v32 = vpop.f32.mrb[24].mxu1 }
 0x3db   : > { %v1765_v45 = vadd.f32 %v3950_v32, %v1706_v26  ;;  %3182 = vperm.xlu0 %4121, %v4338_v48   ;;  %v1748_v42 = vpop.f32.mrb[25].mxu1  ;;  %v2009_v26 = vmul.f32 %v5378_v40, %v2005_v4  ;;  %v2094_v10 = vpop.permute.xlu0 %2093  ;;  %v2077_v40 = vld [vmem:[#allocation5 + $0x80] sm:$0xff] }
 0x3dc   : > { %v4340_v15 = vpop.eup %4339  ;;  %v1763_v51 = vadd.f32 %v1748_v42, %v1704_v19  ;;  %v3951_v41 = vpop.f32.mrb[26].mxu1 }
 0x3dd   : > { %1769 = vst.msk [vmem:[#allocation4 + $0x70] sm:$0xff] %vm410_vm1, %v1765_v45  ;;  %v1766_v28 = vadd.f32 %v3951_v41, %v1707_v12  ;;  %3187 = vperm.xlu1 %4120, %v4340_v15   ;;  %v1751_v58 = vpop.f32.mrb[27].mxu1  ;;  %v4342_v50 = vpop.eup %4341  ;;  %v2010_v45 = vmul.f32 %v5413_v39, %v2006_v2  ;;  %v2079_v15 = vld [vmem:[#allocation5 + $0x90] sm:$0xff] }
 0x3de   : > { %1767 = vst.msk [vmem:[#allocation4 + $0x60] sm:$0xff] %vm410_vm1, %v1763_v51  ;;  %v1764_v35 = vadd.f32 %v1751_v58, %v1705_v49  ;;  %v4344_v20 = vpop.eup %4343  ;;  %v2080_v49 = vld [vmem:[#allocation5 + $0x98] sm:$0xff]  ;;  %v2103_v39 = vmul.f32 %v2094_v10, %v2079_v15  ;;  %v2078_v58 = vld [vmem:[#allocation5 + $0x88] sm:$0xff] }
 0x3df   : > { %1770 = vst.msk [vmem:[#allocation4 + $0x78] sm:$0xff] %vm410_vm1, %v1766_v28  ;;  %3172 = vperm.xlu0 %4121, %v4342_v50   ;;  %v2099_v28 = vpop.permute.xlu1 %2098  ;;  %v2101_v50 = vmul.f32 %v2084_v0, %v2077_v40  ;;  %v2102_v1 = vmul.f32 %v2089_v25, %v2078_v58 }
 0x3e0   : > { %1768 = vst.msk [vmem:[#allocation4 + $0x68] sm:$0xff] %vm410_vm1, %v1764_v35  ;;  %v2104_v35 = vmul.f32 %v2099_v28, %v2080_v49 }
 0x3e1   : > { %3177 = vperm.xlu1 %4120, %v4344_v20  }
 0x3e2   : > { %v3958_v61 = vpop.f32.mrb[28].mxu1 }
 0x3e3   : > { %v1857_v27 = vadd.f32 %v3958_v61, %v1798_v57  ;;  %v1840_v24 = vpop.f32.mrb[29].mxu1 }
 0x3e4   : > { %v3196_v8 = vld [vmem:[#allocation4 + $0x70] sm:$0xff]  ;;  %v1855_v6 = vadd.f32 %v1840_v24, %v1796_v55  ;;  %v3959_v36 = vpop.f32.mrb[30].mxu1 }
 0x3e5   : > { %4345 = vrcp.f32 %v3196_v8  ;;  %1861 = vst.msk [vmem:[#allocation5 + $0x70] sm:$0xff] %vm475_vm0, %v1857_v27  ;;  %v1858_v29 = vadd.f32 %v3959_v36, %v1799_v11  ;;  %v1843_v31 = vpop.f32.mrb[31].mxu1  ;;  %v3194_v33 = vld [vmem:[#allocation4 + $0x60] sm:$0xff]  ;;  %v2312_v8 = vld [vmem:[#allocation4 + $0xb0] sm:$0xff]  ;;  %v2389_v36 = vpop.permute.xlu0 %2388 }
 0x3e6   : > { %v3197_v38 = vld [vmem:[#allocation4 + $0x78] sm:$0xff]  ;;  %1859 = vst.msk [vmem:[#allocation5 + $0x60] sm:$0xff] %vm475_vm0, %v1855_v6  ;;  %v1856_v59 = vadd.f32 %v1843_v31, %v1797_v60  ;;  %v2310_v6 = vld [vmem:[#allocation4 + $0xa0] sm:$0xff] }
 0x3e7   : > { %4347 = vrcp.f32 %v3197_v38  ;;  %1862 = vst.msk [vmem:[#allocation5 + $0x78] sm:$0xff] %vm475_vm0, %v1858_v29  ;;  %v3195_v43 = vld [vmem:[#allocation4 + $0x68] sm:$0xff]  ;;  %v2313_v31 = vld [vmem:[#allocation4 + $0xb8] sm:$0xff]  ;;  %v2314_v4 = vmul.f32 %v5406_v46, %v2310_v6  ;;  %v2382_v46 = vld [vmem:[#allocation5 + $0xa0] sm:$0xff] }
 0x3e8   : > { %1860 = vst.msk [vmem:[#allocation5 + $0x68] sm:$0xff] %vm475_vm0, %v1856_v59  ;;  %4349 = vrcp.f32 %v3194_v33  ;;  %v2316_v33 = vmul.f32 %v5415_v52, %v2312_v8  ;;  %v2311_v38 = vld [vmem:[#allocation4 + $0xa8] sm:$0xff]  ;;  %v2394_v59 = vpop.permute.xlu1 %2393  ;;  %v2317_v16 = vmul.f32 %v5461_v37, %v2313_v31 }
 0x3e9   : > { %4351 = vrcp.f32 %v3195_v43  ;;  %v2315_v25 = vmul.f32 %v5451_v56, %v2311_v38  ;;  %v2399_v52 = vpop.permute.xlu0 %2398 }
 0x3ea   : > { %v3974_v7 = vpop.f32.mrb[32].mxu1 }
 0x3eb   : > { %v2070_v3 = vadd.f32 %v3974_v7, %v2011_v14  ;;  %v2053_v48 = vpop.f32.mrb[33].mxu1 }
 0x3ec   : > { %v2068_v32 = vadd.f32 %v2053_v48, %v2009_v26  ;;  %v3975_v19 = vpop.f32.mrb[34].mxu1 }
 0x3ed   : > { %2074 = vst.msk [vmem:[#allocation4 + $0x90] sm:$0xff] %vm410_vm1, %v2070_v3  ;;  %v2071_v42 = vadd.f32 %v3975_v19, %v2012_v47  ;;  %v2056_v12 = vpop.f32.mrb[35].mxu1  ;;  %v2384_v3 = vld [vmem:[#allocation5 + $0xb0] sm:$0xff]  ;;  %v2404_v19 = vpop.permute.xlu1 %2403 }
 0x3ee   : > { %2072 = vst.msk [vmem:[#allocation4 + $0x80] sm:$0xff] %vm410_vm1, %v2068_v32  ;;  %v2069_v51 = vadd.f32 %v2056_v12, %v2010_v45  ;;  %v2385_v32 = vld [vmem:[#allocation5 + $0xb8] sm:$0xff]  ;;  %v2408_v56 = vmul.f32 %v2399_v52, %v2384_v3  ;;  %v2383_v45 = vld [vmem:[#allocation5 + $0xa8] sm:$0xff]  ;;  %v2685_v3 = vld [vmem:[#allocation5 + $0xc0] sm:$0xff] }
 0x3ef   : > { %v4346_v41 = vpop.eup %4345  ;;  %2075 = vst.msk [vmem:[#allocation4 + $0x98] sm:$0xff] %vm410_vm1, %v2071_v42  ;;  %v2406_v42 = vmul.f32 %v2389_v36, %v2382_v46  ;;  %v2409_v10 = vmul.f32 %v2404_v19, %v2385_v32  ;;  %v2407_v40 = vmul.f32 %v2394_v59, %v2383_v45  ;;  %v2688_v52 = vld [vmem:[#allocation5 + $0xd8] sm:$0xff] }
 0x3f0   : > { %2073 = vst.msk [vmem:[#allocation4 + $0x88] sm:$0xff] %vm410_vm1, %v2069_v51  ;;  %3218 = vperm.xlu0 %4121, %v4346_v41  }
 0x3f1   : > { %v4348_v34 = vpop.eup %4347 }
 0x3f2   : > { %3223 = vperm.xlu1 %4120, %v4348_v34   ;;  %v3982_v62 = vpop.f32.mrb[36].mxu1  ;;  %v4350_v5 = vpop.eup %4349 }
 0x3f3   : > { %v2164_v9 = vadd.f32 %v3982_v62, %v2103_v39  ;;  %v2147_v20 = vpop.f32.mrb[37].mxu1  ;;  %v4352_v55 = vpop.eup %4351 }
 0x3f4   : > { %v3232_v18 = vld [vmem:[#allocation4 + $0x90] sm:$0xff]  ;;  %v2162_v57 = vadd.f32 %v2147_v20, %v2101_v50  ;;  %3208 = vperm.xlu0 %4121, %v4350_v5   ;;  %v3983_v22 = vpop.f32.mrb[38].mxu1  ;;  %v2613_v20 = vld [vmem:[#allocation4 + $0xc0] sm:$0xff] }
 0x3f5   : > { %4353 = vrcp.f32 %v3232_v18  ;;  %2168 = vst.msk [vmem:[#allocation5 + $0x90] sm:$0xff] %vm475_vm0, %v2164_v9  ;;  %v2165_v61 = vadd.f32 %v3983_v22, %v2104_v35  ;;  %v2150_v11 = vpop.f32.mrb[39].mxu1  ;;  %v3230_v27 = vld [vmem:[#allocation4 + $0x80] sm:$0xff]  ;;  %v2615_v9 = vld [vmem:[#allocation4 + $0xd0] sm:$0xff]  ;;  %v2616_v18 = vld [vmem:[#allocation4 + $0xd8] sm:$0xff] }
 0x3f6   : > { %v3233_v24 = vld [vmem:[#allocation4 + $0x98] sm:$0xff]  ;;  %2166 = vst.msk [vmem:[#allocation5 + $0x80] sm:$0xff] %vm475_vm0, %v2162_v57  ;;  %v2163_v60 = vadd.f32 %v2150_v11, %v2102_v1  ;;  %3213 = vperm.xlu1 %4120, %v4352_v55   ;;  %v2619_v57 = vmul.f32 %v5444_v17, %v2615_v9  ;;  %v2614_v22 = vld [vmem:[#allocation4 + $0xc8] sm:$0xff] }
 0x3f7   : > { %4355 = vrcp.f32 %v3233_v24  ;;  %2169 = vst.msk [vmem:[#allocation5 + $0x98] sm:$0xff] %vm475_vm0, %v2165_v61  ;;  %v3231_v29 = vld [vmem:[#allocation4 + $0x88] sm:$0xff]  ;;  %v2617_v61 = vmul.f32 %v5422_v23, %v2613_v20  ;;  %v2620_v24 = vmul.f32 %v5482_v13, %v2616_v18  ;;  %v2618_v6 = vmul.f32 %v5475_v30, %v2614_v22 }
 0x3f8   : > { %2167 = vst.msk [vmem:[#allocation5 + $0x88] sm:$0xff] %vm475_vm0, %v2163_v60  ;;  %4357 = vrcp.f32 %v3230_v27 }
 0x3f9   : > { %4359 = vrcp.f32 %v3231_v29 }
 0x3fa   : > { %v3998_v63 = vpop.f32.mrb[40].mxu1 }
 0x3fb   : > { %v2375_v0 = vadd.f32 %v3998_v63, %v2316_v33  ;;  %v2358_v43 = vpop.f32.mrb[41].mxu1 }
 0x3fc   : > { %v2373_v14 = vadd.f32 %v2358_v43, %v2314_v4  ;;  %v3999_v2 = vpop.f32.mrb[42].mxu1 }
 0x3fd   : > { %2379 = vst.msk [vmem:[#allocation4 + $0xb0] sm:$0xff] %vm410_vm1, %v2375_v0  ;;  %v2376_v7 = vadd.f32 %v3999_v2, %v2317_v16  ;;  %v2361_v26 = vpop.f32.mrb[43].mxu1  ;;  %v2692_v2 = vpop.permute.xlu0 %2691 }
 0x3fe   : > { %2377 = vst.msk [vmem:[#allocation4 + $0xa0] sm:$0xff] %vm410_vm1, %v2373_v14  ;;  %v2374_v48 = vadd.f32 %v2361_v26, %v2315_v25  ;;  %v2697_v14 = vpop.permute.xlu1 %2696  ;;  %v2687_v26 = vld [vmem:[#allocation5 + $0xd0] sm:$0xff]  ;;  %v2709_v32 = vmul.f32 %v2692_v2, %v2685_v3 }
 0x3ff   : > { %v4354_v47 = vpop.eup %4353  ;;  %2380 = vst.msk [vmem:[#allocation4 + $0xb8] sm:$0xff] %vm410_vm1, %v2376_v7 }
 0x400   : > { %2378 = vst.msk [vmem:[#allocation4 + $0xa8] sm:$0xff] %vm410_vm1, %v2374_v48  ;;  %3254 = vperm.xlu0 %4121, %v4354_v47   ;;  %v2686_v47 = vld [vmem:[#allocation5 + $0xc8] sm:$0xff] }
 0x401   : > { %v4356_v37 = vpop.eup %4355  ;;  %v2702_v7 = vpop.permute.xlu0 %2701 }
 0x402   : > { %3259 = vperm.xlu1 %4120, %v4356_v37   ;;  %v4006_v12 = vpop.f32.mrb[44].mxu1  ;;  %v4358_v15 = vpop.eup %4357  ;;  %v2711_v48 = vmul.f32 %v2702_v7, %v2687_v26 }
 0x403   : > { %v2467_v51 = vadd.f32 %v4006_v12, %v2408_v56  ;;  %v2450_v41 = vpop.f32.mrb[45].mxu1  ;;  %v4360_v39 = vpop.eup %4359  ;;  %v2710_v12 = vmul.f32 %v2697_v14, %v2686_v47  ;;  %v3131_v47 = vld [vmem:[#allocation5 + $0x28] sm:$0xff] }
 0x404   : > { %v3268_v49 = vld [vmem:[#allocation4 + $0xb0] sm:$0xff]  ;;  %v2465_v28 = vadd.f32 %v2450_v41, %v2406_v42  ;;  %3244 = vperm.xlu0 %4121, %v4358_v15   ;;  %v4007_v34 = vpop.f32.mrb[46].mxu1  ;;  %v2707_v25 = vpop.permute.xlu1 %2706 }
 0x405   : > { %4361 = vrcp.f32 %v3268_v49  ;;  %2471 = vst.msk [vmem:[#allocation5 + $0xb0] sm:$0xff] %vm475_vm0, %v2467_v51  ;;  %v2468_v58 = vadd.f32 %v4007_v34, %v2409_v10  ;;  %v2453_v50 = vpop.f32.mrb[47].mxu1  ;;  %v3266_v62 = vld [vmem:[#allocation4 + $0xa0] sm:$0xff]  ;;  %v3005_v37 = vpop.permute.xlu0 %3004  ;;  %v2712_v56 = vmul.f32 %v2707_v25, %v2688_v52 }
 0x406   : > { %v3269_v5 = vld [vmem:[#allocation4 + $0xb8] sm:$0xff]  ;;  %2469 = vst.msk [vmem:[#allocation5 + $0xa0] sm:$0xff] %vm475_vm0, %v2465_v28  ;;  %v2466_v35 = vadd.f32 %v2453_v50, %v2407_v40  ;;  %3249 = vperm.xlu1 %4120, %v4360_v39   ;;  %v2918_v28 = vld [vmem:[#allocation4 + $0xf0] sm:$0xff]  ;;  %v2916_v34 = vld [vmem:[#allocation4 + $0xe0] sm:$0xff] }
 0x407   : > { %4363 = vrcp.f32 %v3269_v5  ;;  %2472 = vst.msk [vmem:[#allocation5 + $0xb8] sm:$0xff] %vm475_vm0, %v2468_v58  ;;  %v3267_v1 = vld [vmem:[#allocation4 + $0xa8] sm:$0xff]  ;;  %v2919_v58 = vld [vmem:[#allocation4 + $0xf8] sm:$0xff]  ;;  %v2922_v50 = vmul.f32 %v5457_v53, %v2918_v28  ;;  %v2920_v9 = vmul.f32 %v5466_v21, %v2916_v34  ;;  %v3166_v34 = vld [vmem:[#allocation5 + $0x40] sm:$0xff] }
 0x408   : > { %2470 = vst.msk [vmem:[#allocation5 + $0xa8] sm:$0xff] %vm475_vm0, %v2466_v35  ;;  %4365 = vrcp.f32 %v3266_v62  ;;  %v3010_v46 = vpop.permute.xlu1 %3009  ;;  %v2917_v62 = vld [vmem:[#allocation4 + $0xe8] sm:$0xff]  ;;  %v2923_v18 = vmul.f32 %v5494_v54, %v2919_v58  ;;  %v2991_v21 = vld [vmem:[#allocation5 + $0xf8] sm:$0xff] }
 0x409   : > { %4367 = vrcp.f32 %v3267_v1  ;;  %v2995_v39 = vpop.permute.xlu0 %2994  ;;  %v3169_v28 = vld [vmem:[#allocation5 + $0x58] sm:$0xff] }
 0x40a   : > { %v4022_v55 = vpop.f32.mrb[48].mxu1 }
 0x40b   : > { %v2678_v11 = vadd.f32 %v4022_v55, %v2619_v57  ;;  %v2661_v27 = vpop.f32.mrb[49].mxu1 }
 0x40c   : > { %v2676_v60 = vadd.f32 %v2661_v27, %v2617_v61  ;;  %v4023_v8 = vpop.f32.mrb[50].mxu1  ;;  %v3000_v49 = vpop.permute.xlu1 %2999  ;;  %v2921_v61 = vmul.f32 %v5503_v44, %v2917_v62  ;;  %v2990_v27 = vld [vmem:[#allocation5 + $0xf0] sm:$0xff] }
 0x40d   : > { %2682 = vst.msk [vmem:[#allocation4 + $0xd0] sm:$0xff] %vm410_vm1, %v2678_v11  ;;  %v2679_v36 = vadd.f32 %v4023_v8, %v2620_v24  ;;  %v2664_v29 = vpop.f32.mrb[51].mxu1  ;;  %v5643_v57 = vpop.permute.xlu0 %3110  ;;  %v3014_v54 = vmul.f32 %v3005_v37, %v2990_v27  ;;  %v3130_v37 = vld [vmem:[#allocation5 + $0x20] sm:$0xff]  ;;  %v3168_v62 = vld [vmem:[#allocation5 + $0x50] sm:$0xff] }
 0x40e   : > { %2680 = vst.msk [vmem:[#allocation4 + $0xc0] sm:$0xff] %vm410_vm1, %v2676_v60  ;;  %v2677_v17 = vadd.f32 %v2664_v29, %v2618_v6  ;;  %v2988_v60 = vld [vmem:[#allocation5 + $0xe0] sm:$0xff]  ;;  %v2989_v6 = vld [vmem:[#allocation5 + $0xe8] sm:$0xff] }
 0x40f   : > { %v4362_v31 = vpop.eup %4361  ;;  %2683 = vst.msk [vmem:[#allocation4 + $0xd8] sm:$0xff] %vm410_vm1, %v2679_v36  ;;  %v3012_v36 = vmul.f32 %v2995_v39, %v2988_v60  ;;  %v3203_v60 = vld [vmem:[#allocation5 + $0x68] sm:$0xff] }
 0x410   : > { %2681 = vst.msk [vmem:[#allocation4 + $0xc8] sm:$0xff] %vm410_vm1, %v2677_v17  ;;  %3290 = vperm.xlu0 %4121, %v4362_v31   ;;  %v5639_v5 = vpop.permute.xlu1 %3115  ;;  %v3015_v17 = vmul.f32 %v3010_v46, %v2991_v21 }
 0x411   : > { %v4364_v23 = vpop.eup %4363  ;;  %v5652_v44 = vpop.permute.xlu0 %3100 }
 0x412   : > { %3295 = vperm.xlu1 %4120, %v4364_v23   ;;  %v4366_v13 = vpop.eup %4365 }
 0x413   : > { %v4368_v38 = vpop.eup %4367 }
 0x414   : > { %v3304_v33 = vld [vmem:[#allocation4 + $0xd0] sm:$0xff]  ;;  %3280 = vperm.xlu0 %4121, %v4366_v13   ;;  %v5649_v8 = vpop.permute.xlu1 %3105  ;;  %v3013_v13 = vmul.f32 %v3000_v49, %v2989_v6 }
 0x415   : > { %4369 = vrcp.f32 %v3304_v33  ;;  %v3302_v30 = vld [vmem:[#allocation4 + $0xc0] sm:$0xff] }
 0x416   : > { %v3305_v59 = vld [vmem:[#allocation4 + $0xd8] sm:$0xff]  ;;  %3285 = vperm.xlu1 %4120, %v4368_v38  }
 0x417   : > { %4371 = vrcp.f32 %v3305_v59  ;;  %v3303_v63 = vld [vmem:[#allocation4 + $0xc8] sm:$0xff] }
 0x418   : > { %4373 = vrcp.f32 %v3302_v30 }
 0x419   : > { %4375 = vrcp.f32 %v3303_v63 }
 0x41f   : > { %v4370_v4 = vpop.eup %4369  ;;  %v3152_v33 = vpop.permute.xlu1 %3151 }
 0x420   : > { %3326 = vperm.xlu0 %4121, %v4370_v4  }
 0x421   : > { %v4372_v0 = vpop.eup %4371 }
 0x422   : > { %3331 = vperm.xlu1 %4120, %v4372_v0   ;;  %v4374_v43 = vpop.eup %4373  ;;  %v3147_v0 = vpop.permute.xlu0 %3146 }
 0x423   : > { %v4376_v16 = vpop.eup %4375  ;;  %v3142_v25 = vpop.permute.xlu1 %3141 }
 0x424   : > { %3316 = vperm.xlu0 %4121, %v4374_v43   ;;  %v3155_v46 = vmul.f32 %v3142_v25, %v3131_v47 }
 0x426   : > { %3321 = vperm.xlu1 %4120, %v4376_v16   ;;  %v3137_v7 = vpop.permute.xlu0 %3136 }
 0x440   : > { %v4030_v19 = vpop.f32.mrb[52].mxu1 }
 0x441   : > { %v2770_v45 = vadd.f32 %v4030_v19, %v2711_v48  ;;  %v2753_v42 = vpop.f32.mrb[53].mxu1  ;;  %v3133_v19 = vld [vmem:[#allocation5 + $0x38] sm:$0xff] }
 0x442   : > { %v2768_v15 = vadd.f32 %v2753_v42, %v2709_v32  ;;  %v4031_v10 = vpop.f32.mrb[54].mxu1  ;;  %v3154_v42 = vmul.f32 %v3137_v7, %v3130_v37 }
 0x443   : > { %2774 = vst.msk [vmem:[#allocation5 + $0xd0] sm:$0xff] %vm475_vm0, %v2770_v45  ;;  %v2771_v51 = vadd.f32 %v4031_v10, %v2712_v56  ;;  %v2756_v41 = vpop.f32.mrb[55].mxu1  ;;  %v3157_v45 = vmul.f32 %v3152_v33, %v3133_v19  ;;  %v3276_v33 = vld [vmem:[#allocation5 + $0xb0] sm:$0xff] }
 0x444   : > { %2772 = vst.msk [vmem:[#allocation5 + $0xc0] sm:$0xff] %vm475_vm0, %v2768_v15  ;;  %v2769_v40 = vadd.f32 %v2756_v41, %v2710_v12  ;;  %v3132_v15 = vld [vmem:[#allocation5 + $0x30] sm:$0xff] }
 0x445   : > { %2775 = vst.msk [vmem:[#allocation5 + $0xd8] sm:$0xff] %vm475_vm0, %v2771_v51  ;;  %v3167_v51 = vld [vmem:[#allocation5 + $0x48] sm:$0xff]  ;;  %v3156_v41 = vmul.f32 %v3147_v0, %v3132_v15 }
 0x446   : > { %2773 = vst.msk [vmem:[#allocation5 + $0xc8] sm:$0xff] %vm475_vm0, %v2769_v40  ;;  %v4127_v40 = vpack.i.bf16 %v3155_v46, %v3154_v42 }
 0x447   : > { %v4122_v39 = vpack.i.bf16 %v3157_v45, %v3156_v41 }
 0x449   : > { %v4046_v35 = vpop.f32.mrb[56].mxu1 }
 0x44a   : > { %v2981_v20 = vadd.f32 %v4046_v35, %v2922_v50  ;;  %v2964_v1 = vpop.f32.mrb[57].mxu1 }
 0x44b   : > { %v2979_v22 = vadd.f32 %v2964_v1, %v2920_v9  ;;  %v4047_v55 = vpop.f32.mrb[58].mxu1  ;;  %v3310_v37 = vld [vmem:[#allocation5 + $0xc0] sm:$0xff] }
 0x44c   : > { %2985 = vst.msk [vmem:[#allocation4 + $0xf0] sm:$0xff] %vm410_vm1, %v2981_v20  ;;  %v2982_v11 = vadd.f32 %v4047_v55, %v2923_v18  ;;  %v2967_v53 = vpop.f32.mrb[59].mxu1  ;;  %v3204_v18 = vld [vmem:[#allocation5 + $0x70] sm:$0xff] }
 0x44d   : > { %2983 = vst.msk [vmem:[#allocation4 + $0xe0] sm:$0xff] %vm410_vm1, %v2979_v22  ;;  %v2980_v24 = vadd.f32 %v2967_v53, %v2921_v61  ;;  %v3205_v22 = vld [vmem:[#allocation5 + $0x78] sm:$0xff] }
 0x44e   : > { %2986 = vst.msk [vmem:[#allocation4 + $0xf8] sm:$0xff] %vm410_vm1, %v2982_v11 }
 0x44f   : > { %2984 = vst.msk [vmem:[#allocation4 + $0xe8] sm:$0xff] %vm410_vm1, %v2980_v24  ;;  %v3202_v24 = vld [vmem:[#allocation5 + $0x60] sm:$0xff] }
 0x451   : > { %v4054_v29 = vpop.f32.mrb[60].mxu1 }
 0x452   : > { %v3073_v31 = vadd.f32 %v4054_v29, %v3014_v54  ;;  %v3056_v23 = vpop.f32.mrb[61].mxu1 }
 0x453   : > { %v3071_v38 = vadd.f32 %v3056_v23, %v3012_v36  ;;  %v4055_v30 = vpop.f32.mrb[62].mxu1  ;;  %v3340_v16 = vld [vmem:[#allocation4 + $0xf0] sm:$0xff] }
 0x454   : > { %v3338_v59 = vld [vmem:[#allocation4 + $0xe0] sm:$0xff]  ;;  %3077 = vst.msk [vmem:[#allocation5 + $0xf0] sm:$0xff] %vm475_vm0, %v3073_v31  ;;  %v3074_v63 = vadd.f32 %v4055_v30, %v3015_v17  ;;  %v3059_v4 = vpop.f32.mrb[63].mxu1 }
 0x455   : > { %4377 = vrcp.f32 %v3338_v59  ;;  %3075 = vst.msk [vmem:[#allocation5 + $0xe0] sm:$0xff] %vm475_vm0, %v3071_v38  ;;  %v3072_v43 = vadd.f32 %v3059_v4, %v3013_v13  ;;  %v3341_v2 = vld [vmem:[#allocation4 + $0xf8] sm:$0xff] }
 0x456   : > { %v3339_v14 = vld [vmem:[#allocation4 + $0xe8] sm:$0xff]  ;;  %3078 = vst.msk [vmem:[#allocation5 + $0xf8] sm:$0xff] %vm475_vm0, %v3074_v63  ;;  %v3277_v38 = vld [vmem:[#allocation5 + $0xb8] sm:$0xff] }
 0x457   : > { %4379 = vrcp.f32 %v3339_v14  ;;  %3076 = vst.msk [vmem:[#allocation5 + $0xe8] sm:$0xff] %vm475_vm0, %v3072_v43  ;;  %v3274_v43 = vld [vmem:[#allocation5 + $0xa0] sm:$0xff] }
 0x458   : > { %4381 = vrcp.f32 %v3340_v16  ;;  %v3275_v16 = vld [vmem:[#allocation5 + $0xa8] sm:$0xff] }
 0x459   : > { %4383 = vrcp.f32 %v3341_v2 }
 0x45a   : > { %v3183_v52 = vpop.permute.xlu0 %3182 }
 0x45b   : > { %v3192_v35 = vmul.f32 %v3183_v52, %v3168_v62  ;;  %v3313_v52 = vld [vmem:[#allocation5 + $0xd8] sm:$0xff] }
 0x45c   : > { %v3188_v26 = vpop.permute.xlu1 %3187 }
 0x45d   : > { %v3193_v58 = vmul.f32 %v3188_v26, %v3169_v28 }
 0x45e   : > { %v3173_v10 = vpop.permute.xlu0 %3172  ;;  %v3347_v41 = vld [vmem:[#allocation5 + $0xe8] sm:$0xff] }
 0x45f   : > { %v4378_v3 = vpop.eup %4377  ;;  %v3190_v50 = vmul.f32 %v3173_v10, %v3166_v34  ;;  %v4132_v20 = vpack.i.bf16 %v3193_v58, %v3192_v35  ;;  %v3348_v58 = vld [vmem:[#allocation5 + $0xf0] sm:$0xff] }
 0x460   : > { %3352 = vperm.xlu0 %4121, %v4378_v3   ;;  %v3178_v56 = vpop.permute.xlu1 %3177  ;;  %v3312_v3 = vld [vmem:[#allocation5 + $0xd0] sm:$0xff] }
 0x461   : > { %v4380_v48 = vpop.eup %4379  ;;  %v3191_v49 = vmul.f32 %v3178_v56, %v3167_v51  ;;  %v3311_v56 = vld [vmem:[#allocation5 + $0xc8] sm:$0xff]  ;;  %v3346_v51 = vld [vmem:[#allocation5 + $0xe0] sm:$0xff] }
 0x462   : > { %3357 = vperm.xlu1 %4120, %v4380_v48   ;;  %v4382_v32 = vpop.eup %4381 }
 0x463   : > { %v4384_v12 = vpop.eup %4383  ;;  %v4137_v9 = vpack.i.bf16 %v3191_v49, %v3190_v50  ;;  %v3349_v50 = vld [vmem:[#allocation5 + $0xf8] sm:$0xff] }
 0x464   : > { %3362 = vperm.xlu0 %4121, %v4382_v32  }
 0x466   : > { %3367 = vperm.xlu1 %4120, %v4384_v12  }
 0x468   : > { %4128 = vrot.lane.b32.xlu0 %v4127_v40, %s4429_s28 }
 0x46a   : > { %4123 = vrot.lane.b32.xlu1 %v4122_v39, %s4429_s28 }
 0x46c   : > { %4138 = vrot.lane.b32.xlu0 %v4137_v9, %s4428_s12 }
 0x46e   : > { %4133 = vrot.lane.b32.xlu1 %v4132_v20, %s4428_s12 }
 0x46f   : > { %v3219_v1 = vpop.permute.xlu0 %3218 }
 0x470   : > { %v3228_v61 = vmul.f32 %v3219_v1, %v3204_v18 }
 0x471   : > { %v3224_v55 = vpop.permute.xlu1 %3223 }
 0x472   : > { %v3229_v11 = vmul.f32 %v3224_v55, %v3205_v22 }
 0x473   : > { %v3209_v53 = vpop.permute.xlu0 %3208 }
 0x474   : > { %v4142_v27 = vpack.i.bf16 %v3229_v11, %v3228_v61  ;;  %v3226_v54 = vmul.f32 %v3209_v53, %v3202_v24  ;;  %v3097_v24 = vld [vmem:[#allocation5 + $0x18] sm:$0xff] }
 0x475   : > { %v3214_v21 = vpop.permute.xlu1 %3213 }
 0x476   : > { %v3227_v6 = vmul.f32 %v3214_v21, %v3203_v60  ;;  %4143 = vrot.lane.b32.xlu1 %v4142_v27, %s4427_s27  ;;  %v3096_v27 = vld [vmem:[#allocation5 + $0x10] sm:$0xff]  ;;  %v3121_v21 = vmul.f32 %v5639_v5, %v3097_v24  ;;  %v3239_v5 = vld [vmem:[#allocation5 + $0x88] sm:$0xff] }
 0x477   : > { %v3120_v60 = vmul.f32 %v5643_v57, %v3096_v27 }
 0x478   : > { %v4147_v36 = vpack.i.bf16 %v3227_v6, %v3226_v54  ;;  %v3094_v54 = vld [vmem:[#allocation5] sm:$0xff]  ;;  %v3095_v6 = vld [vmem:[#allocation5 + $0x8] sm:$0xff] }
 0x47a   : > { %4148 = vrot.lane.b32.xlu0 %v4147_v36, %s4427_s27 }
 0x47f   : > { %v5664_v29 = vpop.permute.xlu0 %3254 }
 0x481   : > { %v5666_v17 = vpop.permute.xlu1 %3259 }
 0x483   : > { %v5668_v31 = vpop.permute.xlu0 %3244 }
 0x485   : > { %v5670_v23 = vpop.permute.xlu1 %3249 }
 0x48f   : > { %v3291_v13 = vpop.permute.xlu0 %3290 }
 0x490   : > { %v3300_v59 = vmul.f32 %v3291_v13, %v3276_v33  ;;  %v3118_v33 = vmul.f32 %v5652_v44, %v3094_v54 }
 0x491   : > { %v3296_v30 = vpop.permute.xlu1 %3295 }
 0x492   : > { %v3301_v63 = vmul.f32 %v3296_v30, %v3277_v38  ;;  %v3119_v38 = vmul.f32 %v5649_v8, %v3095_v6  ;;  %v3240_v30 = vld [vmem:[#allocation5 + $0x90] sm:$0xff]  ;;  %v3263_v8 = vmul.f32 %v5670_v23, %v3239_v5 }
 0x493   : > { %v3281_v4 = vpop.permute.xlu0 %3280 }
 0x494   : > { %v4152_v0 = vpack.i.bf16 %v3301_v63, %v3300_v59  ;;  %v3298_v2 = vmul.f32 %v3281_v4, %v3274_v43  ;;  %v3241_v59 = vld [vmem:[#allocation5 + $0x98] sm:$0xff]  ;;  %v3264_v63 = vmul.f32 %v5664_v29, %v3240_v30  ;;  %v3238_v4 = vld [vmem:[#allocation5 + $0x80] sm:$0xff] }
 0x495   : > { %v3286_v14 = vpop.permute.xlu1 %3285  ;;  %v3265_v57 = vmul.f32 %v5666_v17, %v3241_v59  ;;  %v3262_v44 = vmul.f32 %v5668_v31, %v3238_v4 }
 0x496   : > { %v3299_v25 = vmul.f32 %v3286_v14, %v3275_v16  ;;  %4153 = vrot.lane.b32.xlu1 %v4152_v0, %s4429_s28 }
 0x498   : > { %v4157_v7 = vpack.i.bf16 %v3299_v25, %v3298_v2 }
 0x49a   : > { %4158 = vrot.lane.b32.xlu0 %v4157_v7, %s4429_s28 }
 0x49f   : > { %v3327_v26 = vpop.permute.xlu0 %3326 }
 0x4a0   : > { %v3336_v47 = vmul.f32 %v3327_v26, %v3312_v3 }
 0x4a1   : > { %v3332_v48 = vpop.permute.xlu1 %3331 }
 0x4a2   : > { %v3337_v46 = vmul.f32 %v3332_v48, %v3313_v52 }
 0x4a3   : > { %v3317_v32 = vpop.permute.xlu0 %3316 }
 0x4a4   : > { %v4162_v19 = vpack.i.bf16 %v3337_v46, %v3336_v47  ;;  %v3334_v42 = vmul.f32 %v3317_v32, %v3310_v37 }
 0x4a5   : > { %v3322_v45 = vpop.permute.xlu1 %3321 }
 0x4a6   : > { %v3335_v12 = vmul.f32 %v3322_v45, %v3311_v56  ;;  %4163 = vrot.lane.b32.xlu1 %v4162_v19, %s4428_s12 }
 0x4a8   : > { %v4167_v15 = vpack.i.bf16 %v3335_v12, %v3334_v42 }
 0x4aa   : > { %4168 = vrot.lane.b32.xlu0 %v4167_v15, %s4428_s12 }
 0x4df   : > { %v3353_v10 = vpop.permute.xlu0 %3352 }
 0x4e0   : > { %v3370_v49 = vmul.f32 %v3353_v10, %v3346_v51 }
 0x4e1   : > { %v3358_v40 = vpop.permute.xlu1 %3357 }
 0x4e2   : > { %v3371_v28 = vmul.f32 %v3358_v40, %v3347_v41 }
 0x4e3   : > { %v3363_v34 = vpop.permute.xlu0 %3362 }
 0x4e4   : > { %v4172_v39 = vpack.i.bf16 %v3371_v28, %v3370_v49  ;;  %v3372_v35 = vmul.f32 %v3363_v34, %v3348_v58 }
 0x4e5   : > { %v3368_v62 = vpop.permute.xlu1 %3367 }
 0x4e6   : > { %v3373_v9 = vmul.f32 %v3368_v62, %v3349_v50  ;;  %4173 = vrot.lane.b32.xlu0 %v4172_v39, %s4427_s27 }
 0x4e7   : > { %v4129_v1 = vpop.permute.xlu0 %4128 }
 0x4e8   : > { %v4177_v20 = vpack.i.bf16 %v3373_v9, %v3372_v35  ;;  %v4131_v36 = vunpack.i.h.bf16 %v4129_v1  ;;  %v4130_v13 = vunpack.i.l.bf16 %v4129_v1 }
 0x4e9   : > { %v5678_v18 = vpop.permute.xlu1 %4123 }
 0x4ea   : > { %4178 = vrot.lane.b32.xlu1 %v4177_v20, %s4427_s27  ;;  %v3471_v7 = vsel %vm475_vm0, %v3119_v38, %v4131_v36  ;;  %v3470_v29 = vsel %vm475_vm0, %v3118_v33, %v4130_v13  ;;  %v4126_v3 = vunpack.i.h.bf16 %v5678_v18  ;;  %v4125_v52 = vunpack.i.l.bf16 %v5678_v18 }
 0x4eb   : > { %v4139_v22 = vpop.permute.xlu0 %4138 }
 0x4ec   : > { %v4141_v0 = vunpack.i.h.bf16 %v4139_v22  ;;  %v4140_v43 = vunpack.i.l.bf16 %v4139_v22  ;;  %v3473_v35 = vsel %vm475_vm0, %v3121_v21, %v4126_v3  ;;  %v3472_v9 = vsel %vm475_vm0, %v3120_v60, %v4125_v52 }
 0x4ed   : > { %v5680_v55 = vpop.permute.xlu1 %4133 }
 0x4ee   : > { %v3476_v23 = vsel %vm3474_vm2, %v3471_v7, %v4141_v0  ;;  %v3475_v47 = vsel %vm3474_vm2, %v3470_v29, %v4140_v43  ;;  %v4136_v46 = vunpack.i.h.bf16 %v5680_v55  ;;  %v4135_v32 = vunpack.i.l.bf16 %v5680_v55 }
 0x4ef   : > { %v4149_v61 = vpop.permute.xlu0 %4148 }
 0x4f0   : > { %v4151_v2 = vunpack.i.h.bf16 %v4149_v61  ;;  %v4150_v25 = vunpack.i.l.bf16 %v4149_v61  ;;  %v3478_v27 = vsel %vm3474_vm2, %v3473_v35, %v4136_v46 }
 0x4f1   : > { %v5682_v11 = vpop.permute.xlu1 %4143 }
 0x4f2   : > { %v3481_v37 = vsel %vm3479_vm3, %v3476_v23, %v4151_v2  ;;  %v3480_v56 = vsel %vm3479_vm3, %v3475_v47, %v4150_v25  ;;  %v4146_v39 = vunpack.i.h.bf16 %v5682_v11  ;;  %v4145_v58 = vunpack.i.l.bf16 %v5682_v11 }
 0x4f4   : > { %v3483_v21 = vsel %vm3479_vm3, %v3478_v27, %v4146_v39 }
 0x508   : > { %v4154_v16 = vpop.permute.xlu1 %4153 }
 0x509   : > { %v4156_v45 = vunpack.i.h.bf16 %v4154_v16  ;;  %v4155_v42 = vunpack.i.l.bf16 %v4154_v16 }
 0x50b   : > { %v3487_v22 = vsel %vm475_vm0, %v3265_v57, %v4156_v45  ;;  %v3486_v55 = vsel %vm475_vm0, %v3264_v63, %v4155_v42 }
 0x50c   : > { %v4159_v53 = vpop.permute.xlu0 %4158 }
 0x50d   : > { %v4161_v17 = vunpack.i.h.bf16 %v4159_v53  ;;  %v4160_v26 = vunpack.i.l.bf16 %v4159_v53  ;;  %v3477_v53 = vsel %vm3474_vm2, %v3472_v9, %v4135_v32 }
 0x50e   : > { %v3482_v60 = vsel %vm3479_vm3, %v3477_v53, %v4145_v58 }
 0x50f   : > { %v3485_v15 = vsel %vm475_vm0, %v3263_v8, %v4161_v17  ;;  %v3484_v10 = vsel %vm475_vm0, %v3262_v44, %v4160_v26 }
 0x518   : > { %v4164_v19 = vpop.permute.xlu1 %4163 }
 0x519   : > { %v4166_v40 = vunpack.i.h.bf16 %v4164_v19  ;;  %v4165_v49 = vunpack.i.l.bf16 %v4164_v19 }
 0x51b   : > { %v3490_v24 = vsel %vm3474_vm2, %v3486_v55, %v4165_v49  ;;  %v3491_v54 = vsel %vm3474_vm2, %v3487_v22, %v4166_v40 }
 0x51c   : > { %v4169_v14 = vpop.permute.xlu0 %4168 }
 0x51d   : > { %v4171_v48 = vunpack.i.h.bf16 %v4169_v14  ;;  %v4170_v31 = vunpack.i.l.bf16 %v4169_v14 }
 0x51f   : > { %v3489_v28 = vsel %vm3474_vm2, %v3485_v15, %v4171_v48  ;;  %v3488_v34 = vsel %vm3474_vm2, %v3484_v10, %v4170_v31 }
 0x558   : > { %v4174_v12 = vpop.permute.xlu0 %4173 }
 0x559   : > { %v4176_v51 = vunpack.i.h.bf16 %v4174_v12  ;;  %v4175_v41 = vunpack.i.l.bf16 %v4174_v12 }
 0x55b   : > { %v3493_v50 = vsel %vm3479_vm3, %v3489_v28, %v4176_v51  ;;  %v3492_v62 = vsel %vm3479_vm3, %v3488_v34, %v4175_v41 }
 0x55c   : > { %v3765_v20 = vpack.c.bf16 %v3493_v50, %v3481_v37  ;;  %v3764_v1 = vpack.c.bf16 %v3492_v62, %v3480_v56  ;;  %v4179_v18 = vpop.permute.xlu1 %4178 }
 0x55d   : > { %v4181_v61 = vunpack.i.h.bf16 %v4179_v18  ;;  %v4180_v11 = vunpack.i.l.bf16 %v4179_v18 }
 0x55e   : > { %3521 = vst [vmem:[%s402_s14 + $0x8] sm:$0xff] %v3765_v20  ;;  %3520 = vst [vmem:[%s402_s14] sm:$0xff] %v3764_v1 }
 0x55f   : > { %v3494_v6 = vsel %vm3479_vm3, %v3490_v24, %v4180_v11  ;;  %v3495_v36 = vsel %vm3479_vm3, %v3491_v54, %v4181_v61 }
 0x560   : > { %v3766_v13 = vpack.c.bf16 %v3494_v6, %v3482_v60  ;;  %v3767_v33 = vpack.c.bf16 %v3495_v36, %v3483_v21 }
 0x562   : > { %3522 = vst [vmem:[%s402_s14 + $0x10] sm:$0xff] %v3766_v13  ;;  %3523 = vst [vmem:[%s402_s14 + $0x18] sm:$0xff] %v3767_v33 }
 0x563 PF: > { %s13_s16 = sadd.s32 1, %s4425_s16   ;;  %s5890_s12 = smov %s4413_s13 }
 0x564   : > { %p10_p10 = scmp.ge.s32.totalorder %s13_s16, 4   ;;  %s5891_s13 = smov %s4493_s21 }
 0x565   : > { %s5892_s14 = smov %s4421_s15  ;;  %s5893_s15 = smov %s5895_s17 }
 0x566   :  { %12 = sbr.rel (!%p10_p10) target bundleno = 3 (0x3), region = 240 }

</bundles_post_ra>
